<compile_context>
chip_gen: v5e
topology: v5e:2x2
jax: 0.10.0
libtpu: 0.0.40
codegen_flags: <defaults>
</compile_context>

<pallas_src>
import functools

import jax
import jax.numpy as jnp
import numpy as np
from jax import lax
from jax.experimental import pallas as pl
from jax.experimental.pallas import tpu as pltpu

_HI = jax.lax.Precision.HIGHEST   # keep f32 everywhere (kernel and reference agree)


# ------------------------------------------------------------------- kernel --

def _fused_up_block_kernel(x_ref, br_ref, wup_ref, bup_ref, s_ref, mask_ref,
                           w1_ref, b1_ref, w2_ref, b2_ref, o_ref,
                           img_buf, col_buf, *,
                           h, w, cout, ctot, crop_y, crop_x, rs, plane, mg):
    """Whole UNetUpBlock.forward for one batch element, fused in VMEM."""
    f32 = jnp.float32
    hh, ww = 2 * h, 2 * w
    lw = img_buf.shape[1]                       # plane + 2*mg working lane width
    mask = mask_ref[...]                        # (1, lw): 1.0 on real pixels, 0 on pad

    # ---- ConvTranspose2d(kernel=2, stride=2): channel matmul + 4 tap-scatter matmuls
    x2 = x_ref[0]                                                     # (Cin, h*w)
    y_all = jnp.dot(wup_ref[...], x2, precision=_HI,
                    preferred_element_type=f32)                       # (4*Cout, h*w)
    up = jnp.zeros((cout, lw), f32)
    for tap in range(4):                        # scatter taps straight into padded layout
        up = up + jnp.dot(y_all[tap * cout:(tap + 1) * cout, :], s_ref[tap],
                          precision=_HI, preferred_element_type=f32)
    up = (up + bup_ref[...]) * mask             # bias only on real pixels

    # ---- center_crop(bridge) + channel concat, zero borders included
    img_buf[...] = jnp.zeros_like(img_buf)
    img_buf[0:cout, :] = up
    br = br_ref[0, :, crop_y:crop_y + hh, crop_x:crop_x + ww]         # (Cbr, hh, ww)
    for y in range(hh):
        beg = mg + (y + 1) * rs + 1
        img_buf[cout:ctot, beg:beg + ww] = br[:, y, :]

    # ---- 3x3 conv + ReLU (x2): im2col by 9 static lane-shifted slices, then ONE matmul
    def im2col():
        for dy in range(3):
            for dx in range(3):
                t = dy * 3 + dx
                beg = mg + (dy - 1) * rs + (dx - 1)
                col_buf[t * ctot:(t + 1) * ctot, :] = img_buf[:, beg:beg + plane]

    im2col()
    a1 = jnp.dot(w1_ref[...], col_buf[...], precision=_HI, preferred_element_type=f32)
    a1 = jnp.maximum(a1 + b1_ref[...], 0.0) * mask[:, mg:mg + plane]  # re-zero pad ring

    img_buf[...] = jnp.zeros_like(img_buf)      # rows >= cout stay zero (w2 is 0-padded)
    img_buf[0:cout, mg:mg + plane] = a1
    im2col()
    a2 = jnp.dot(w2_ref[...], col_buf[...], precision=_HI, preferred_element_type=f32)
    a2 = jnp.maximum(a2 + b2_ref[...], 0.0)                           # (Cout, plane)

    # ---- lane-dense (Cout, 4*h*w) output store (last dim 2*w*2*h = 256)
    for y in range(hh):
        beg = (y + 1) * rs + 1
        o_ref[0, :, y * ww:(y + 1) * ww] = a2[:, beg:beg + ww]


# ---------------------------------------------------------------- constants --

def _scatter_and_mask(h, w, rs, plane, mg, lw):
    """0/1 constants: 2x2-stride-2 tap scatter matrices and the real-pixel mask."""
    hh, ww = 2 * h, 2 * w
    s = np.zeros((4, h * w, lw), np.float32)
    for ki in range(2):
        for kj in range(2):
            tap = ki * 2 + kj
            for i in range(h):
                for j in range(w):
                    q = mg + (2 * i + ki + 1) * rs + (2 * j + kj + 1)
                    s[tap, i * w + j, q] = 1.0
    mask = np.zeros((1, lw), np.float32)
    for y in range(hh):
        beg = mg + (y + 1) * rs + 1
        mask[0, beg:beg + ww] = 1.0
    return s, mask


# ----------------------------------------------------------------- wrapper ---

def unet_up_block_forward(x_nchw, bridge_nchw, params):
    """UNetUpBlock.forward: up(x) -> center_crop(bridge) -> concat -> ConvBlock."""
    n, cin, h, w = x_nchw.shape
    cout = params["up_w"].shape[1]
    cbr = bridge_nchw.shape[1]
    ctot = cout + cbr
    assert params["c1_w"].shape[1] == ctot
    hh, ww = 2 * h, 2 * w

    rs = ww + 2                      # row stride of the zero-padded image
    plane = (hh + 2) * rs            # flattened padded-image size
    mg = rs + 1                      # margin so every 3x3 tap is an in-bounds lane slice
    lw = plane + 2 * mg              # working lane width

    s_np, mask_np = _scatter_and_mask(h, w, rs, plane, mg, lw)
    crop_y = (bridge_nchw.shape[2] - hh) // 2
    crop_x = (bridge_nchw.shape[3] - ww) // 2

    # one-time weight re-layouts (all tiny)
    wup = jnp.transpose(params["up_w"], (2, 3, 1, 0)).reshape(4 * cout, cin)  # (ki,kj,co)
    bup = params["up_b"].reshape(cout, 1)
    w1 = jnp.transpose(params["c1_w"], (0, 2, 3, 1)).reshape(cout, 9 * ctot)  # (o,dy,dx,c)
    b1 = params["c1_b"].reshape(cout, 1)
    w2 = jnp.pad(jnp.transpose(params["c2_w"], (0, 2, 3, 1)),
                 ((0, 0), (0, 0), (0, 0), (0, ctot - cout))).reshape(cout, 9 * ctot)
    b2 = params["c2_b"].reshape(cout, 1)

    kernel = functools.partial(
        _fused_up_block_kernel, h=h, w=w, cout=cout, ctot=ctot,
        crop_y=crop_y, crop_x=crop_x, rs=rs, plane=plane, mg=mg)

    out = pl.pallas_call(
        kernel,
        out_shape=jax.ShapeDtypeStruct((n, cout, hh * ww), jnp.float32),
        grid=(n,),
        in_specs=[
            pl.BlockSpec((1, cin, h * w), lambda i: (i, 0, 0)),
            pl.BlockSpec((1, cbr, bridge_nchw.shape[2], bridge_nchw.shape[3]),
                         lambda i: (i, 0, 0, 0)),
            pl.BlockSpec((4 * cout, cin), lambda i: (0, 0)),
            pl.BlockSpec((cout, 1), lambda i: (0, 0)),
            pl.BlockSpec((4, h * w, lw), lambda i: (0, 0, 0)),
            pl.BlockSpec((1, lw), lambda i: (0, 0)),
            pl.BlockSpec((cout, 9 * ctot), lambda i: (0, 0)),
            pl.BlockSpec((cout, 1), lambda i: (0, 0)),
            pl.BlockSpec((cout, 9 * ctot), lambda i: (0, 0)),
            pl.BlockSpec((cout, 1), lambda i: (0, 0)),
        ],
        out_specs=pl.BlockSpec((1, cout, hh * ww), lambda i: (i, 0, 0)),
        scratch_shapes=[
            pltpu.VMEM((ctot, lw), jnp.float32),            # padded concat image
            pltpu.VMEM((9 * ctot, plane), jnp.float32),     # im2col matrix
        ],
        compiler_params=pltpu.CompilerParams(
            dimension_semantics=("parallel",)),             # v7x: batch across both TCs
    )(x_nchw.reshape(n, cin, h * w), bridge_nchw, wup, bup,
      jnp.asarray(s_np), jnp.asarray(mask_np), w1, b1, w2, b2)

    return out.reshape(n, cout, hh, ww)


# --------------------------------------------------------------- reference ---

def reference_forward(x, bridge, params):
    wt, bt = params["up_w"], params["up_b"]
    up = lax.conv_general_dilated(
        x, jnp.transpose(jnp.flip(wt, (2, 3)), (1, 0, 2, 3)),
        window_strides=(1, 1), padding=((1, 1), (1, 1)), lhs_dilation=(2, 2),
        dimension_numbers=("NCHW", "OIHW", "NCHW"),
        precision=_HI) + bt[None, :, None, None]
    th, tw = up.shape[2], up.shape[3]
    dy = (bridge.shape[2] - th) // 2
    dx = (bridge.shape[3] - tw) // 2
    out = jnp.concatenate([up, bridge[:, :, dy:dy + th, dx:dx + tw]], axis=1)

    def conv_relu(z, w, b):
        z = lax.conv_general_dilated(z, w, (1, 1), ((1, 1), (1, 1)),
                                     dimension_numbers=("NCHW", "OIHW", "NCHW"),
                                     precision=_HI)
        return jnp.maximum(z + b[None, :, None, None], 0.0)

    out = conv_relu(out, params["c1_w"], params["c1_b"])
    out = conv_relu(out, params["c2_w"], params["c2_b"])
    return out


# -------------------------------------------------------------------- main ---

if __name__ == "__main__":
    in_size, out_size = 8, 4
    N, H, W = 2, 8, 8                       # x: (2, 8, 8, 8) -> up: (2, 4, 16, 16)

    key = jax.random.PRNGKey(0)
    ks = jax.random.split(key, 8)
    params = {
        "up_w": jax.random.normal(ks[0], (in_size, out_size, 2, 2), jnp.float32) * 0.1,
        "up_b": jax.random.normal(ks[1], (out_size,), jnp.float32) * 0.1,
        "c1_w": jax.random.normal(ks[2], (out_size, in_size, 3, 3), jnp.float32) * 0.1,
        "c1_b": jax.random.normal(ks[3], (out_size,), jnp.float32) * 0.1,
        "c2_w": jax.random.normal(ks[4], (out_size, out_size, 3, 3), jnp.float32) * 0.1,
        "c2_b": jax.random.normal(ks[5], (out_size,), jnp.float32) * 0.1,
    }
    x = jax.random.normal(ks[6], (N, in_size, H, W), jnp.float32)
    bridge = jax.random.normal(ks[7], (N, out_size, 20, 20), jnp.float32)  # cropped to 16x16

    fwd = jax.jit(unet_up_block_forward)
    out = jax.block_until_ready(fwd(x, bridge, params))
    ref = jax.block_until_ready(reference_forward(x, bridge, params))

    assert out.shape == (N, out_size, 2 * H, 2 * W)
    np.testing.assert_allclose(np.asarray(out), np.asarray(ref), rtol=1e-4, atol=1e-4)
    print("KERNEL_OK")
</pallas_src>

<mosaic_0001>
module attributes {stable_mosaic.version = 11 : i64} {
  func.func @_fused_up_block_kernel(%arg0: i32, %arg1: memref<1x8x64xf32, #tpu.memory_space<vmem>>, %arg2: memref<1x4x20x20xf32, #tpu.memory_space<vmem>>, %arg3: memref<16x8xf32, #tpu.memory_space<vmem>>, %arg4: memref<4x1xf32, #tpu.memory_space<vmem>>, %arg5: memref<4x64x362xf32, #tpu.memory_space<vmem>>, %arg6: memref<1x362xf32, #tpu.memory_space<vmem>>, %arg7: memref<4x72xf32, #tpu.memory_space<vmem>>, %arg8: memref<4x1xf32, #tpu.memory_space<vmem>>, %arg9: memref<4x72xf32, #tpu.memory_space<vmem>>, %arg10: memref<4x1xf32, #tpu.memory_space<vmem>>, %arg11: memref<1x4x256xf32, #tpu.memory_space<vmem>>, %arg12: memref<8x362xf32, #tpu.memory_space<vmem>>, %arg13: memref<72x324xf32, #tpu.memory_space<vmem>>) attributes {dimension_semantics = [#tpu.dimension_semantics<parallel>], iteration_bounds = array<i64: 2>, scalar_prefetch = 0 : i64, scratch_operands = 2 : i64, tpu.core_type = #tpu.core_type<tc>, window_params = [{transform_indices = @transform_0, window_bounds = array<i64: 1, 8, 64>}, {transform_indices = @transform_1, window_bounds = array<i64: 1, 4, 20, 20>}, {pipeline_mode = #tpu.pipeline_mode<synchronous>, transform_indices = @transform_2, window_bounds = array<i64: 16, 8>}, {pipeline_mode = #tpu.pipeline_mode<synchronous>, transform_indices = @transform_3, window_bounds = array<i64: 4, 1>}, {pipeline_mode = #tpu.pipeline_mode<synchronous>, transform_indices = @transform_4, window_bounds = array<i64: 4, 64, 362>}, {pipeline_mode = #tpu.pipeline_mode<synchronous>, transform_indices = @transform_5, window_bounds = array<i64: 1, 362>}, {pipeline_mode = #tpu.pipeline_mode<synchronous>, transform_indices = @transform_6, window_bounds = array<i64: 4, 72>}, {pipeline_mode = #tpu.pipeline_mode<synchronous>, transform_indices = @transform_7, window_bounds = array<i64: 4, 1>}, {pipeline_mode = #tpu.pipeline_mode<synchronous>, transform_indices = @transform_8, window_bounds = array<i64: 4, 72>}, {pipeline_mode = #tpu.pipeline_mode<synchronous>, transform_indices = @transform_9, window_bounds = array<i64: 4, 1>}, {transform_indices = @transform_10, window_bounds = array<i64: 1, 4, 256>}]} {
    %c0 = arith.constant 0 : index
    %c0_0 = arith.constant 0 : index
    %0 = vector.load %arg6[%c0, %c0_0] : memref<1x362xf32, #tpu.memory_space<vmem>>, vector<1x362xf32>
    %c0_1 = arith.constant 0 : index
    %c0_2 = arith.constant 0 : index
    %c0_3 = arith.constant 0 : index
    %1 = vector.load %arg1[%c0_1, %c0_2, %c0_3] : memref<1x8x64xf32, #tpu.memory_space<vmem>>, vector<1x8x64xf32>
    %2 = vector.shape_cast %1 : vector<1x8x64xf32> to vector<8x64xf32>
    %c0_4 = arith.constant 0 : index
    %c0_5 = arith.constant 0 : index
    %3 = vector.load %arg3[%c0_4, %c0_5] : memref<16x8xf32, #tpu.memory_space<vmem>>, vector<16x8xf32>
    %cst = arith.constant dense<0.000000e+00> : vector<16x64xf32>
    %4 = tpu.matmul %3, %2, %cst {dimension_numbers = #tpu.dot_dimension_numbers<[1], [0], [0], [1], [0, 0, 1, 1], [], []>, precision = #tpu.contract_precision<fp32>} : vector<16x8xf32>, vector<8x64xf32>, vector<16x64xf32> -> vector<16x64xf32>
    %cst_6 = arith.constant 0.000000e+00 : f32
    %5 = vector.broadcast %cst_6 : f32 to vector<4x362xf32>
    %6 = vector.extract_strided_slice %4 {offsets = [0, 0], sizes = [4, 64], strides = [1, 1]} : vector<16x64xf32> to vector<4x64xf32>
    %c0_7 = arith.constant 0 : index
    %c0_8 = arith.constant 0 : index
    %c0_9 = arith.constant 0 : index
    %7 = vector.load %arg5[%c0_7, %c0_8, %c0_9] : memref<4x64x362xf32, #tpu.memory_space<vmem>>, vector<1x64x362xf32>
    %8 = vector.shape_cast %7 : vector<1x64x362xf32> to vector<64x362xf32>
    %cst_10 = arith.constant dense<0.000000e+00> : vector<4x362xf32>
    %9 = tpu.matmul %6, %8, %cst_10 {dimension_numbers = #tpu.dot_dimension_numbers<[1], [0], [0], [1], [0, 0, 1, 1], [], []>, precision = #tpu.contract_precision<fp32>} : vector<4x64xf32>, vector<64x362xf32>, vector<4x362xf32> -> vector<4x362xf32>
    %10 = arith.addf %5, %9 : vector<4x362xf32>
    %11 = vector.extract_strided_slice %4 {offsets = [4, 0], sizes = [4, 64], strides = [1, 1]} : vector<16x64xf32> to vector<4x64xf32>
    %c1 = arith.constant 1 : index
    %c0_11 = arith.constant 0 : index
    %c0_12 = arith.constant 0 : index
    %12 = vector.load %arg5[%c1, %c0_11, %c0_12] : memref<4x64x362xf32, #tpu.memory_space<vmem>>, vector<1x64x362xf32>
    %13 = vector.shape_cast %12 : vector<1x64x362xf32> to vector<64x362xf32>
    %cst_13 = arith.constant dense<0.000000e+00> : vector<4x362xf32>
    %14 = tpu.matmul %11, %13, %cst_13 {dimension_numbers = #tpu.dot_dimension_numbers<[1], [0], [0], [1], [0, 0, 1, 1], [], []>, precision = #tpu.contract_precision<fp32>} : vector<4x64xf32>, vector<64x362xf32>, vector<4x362xf32> -> vector<4x362xf32>
    %15 = arith.addf %10, %14 : vector<4x362xf32>
    %16 = vector.extract_strided_slice %4 {offsets = [8, 0], sizes = [4, 64], strides = [1, 1]} : vector<16x64xf32> to vector<4x64xf32>
    %c2 = arith.constant 2 : index
    %c0_14 = arith.constant 0 : index
    %c0_15 = arith.constant 0 : index
    %17 = vector.load %arg5[%c2, %c0_14, %c0_15] : memref<4x64x362xf32, #tpu.memory_space<vmem>>, vector<1x64x362xf32>
    %18 = vector.shape_cast %17 : vector<1x64x362xf32> to vector<64x362xf32>
    %cst_16 = arith.constant dense<0.000000e+00> : vector<4x362xf32>
    %19 = tpu.matmul %16, %18, %cst_16 {dimension_numbers = #tpu.dot_dimension_numbers<[1], [0], [0], [1], [0, 0, 1, 1], [], []>, precision = #tpu.contract_precision<fp32>} : vector<4x64xf32>, vector<64x362xf32>, vector<4x362xf32> -> vector<4x362xf32>
    %20 = arith.addf %15, %19 : vector<4x362xf32>
    %21 = vector.extract_strided_slice %4 {offsets = [12, 0], sizes = [4, 64], strides = [1, 1]} : vector<16x64xf32> to vector<4x64xf32>
    %c3 = arith.constant 3 : index
    %c0_17 = arith.constant 0 : index
    %c0_18 = arith.constant 0 : index
    %22 = vector.load %arg5[%c3, %c0_17, %c0_18] : memref<4x64x362xf32, #tpu.memory_space<vmem>>, vector<1x64x362xf32>
    %23 = vector.shape_cast %22 : vector<1x64x362xf32> to vector<64x362xf32>
    %cst_19 = arith.constant dense<0.000000e+00> : vector<4x362xf32>
    %24 = tpu.matmul %21, %23, %cst_19 {dimension_numbers = #tpu.dot_dimension_numbers<[1], [0], [0], [1], [0, 0, 1, 1], [], []>, precision = #tpu.contract_precision<fp32>} : vector<4x64xf32>, vector<64x362xf32>, vector<4x362xf32> -> vector<4x362xf32>
    %25 = arith.addf %20, %24 : vector<4x362xf32>
    %c0_20 = arith.constant 0 : index
    %c0_21 = arith.constant 0 : index
    %26 = vector.load %arg4[%c0_20, %c0_21] : memref<4x1xf32, #tpu.memory_space<vmem>>, vector<4x1xf32>
    %27 = vector.broadcast %26 : vector<4x1xf32> to vector<4x362xf32>
    %28 = arith.addf %25, %27 : vector<4x362xf32>
    %29 = vector.broadcast %0 : vector<1x362xf32> to vector<4x362xf32>
    %30 = arith.mulf %28, %29 : vector<4x362xf32>
    %cst_22 = arith.constant 0.000000e+00 : f32
    %31 = vector.broadcast %cst_22 : f32 to vector<8x362xf32>
    %c0_23 = arith.constant 0 : index
    %c0_24 = arith.constant 0 : index
    %32 = vector.load %arg12[%c0_23, %c0_24] : memref<8x362xf32, #tpu.memory_space<vmem>>, vector<8x362xf32>
    tpu.vector_store %arg12[%c0_23, %c0_24], %31 {strides = array<i32>} : memref<8x362xf32, #tpu.memory_space<vmem>>, vector<8x362xf32>,
    %c0_25 = arith.constant 0 : index
    %c0_26 = arith.constant 0 : index
    %33 = vector.load %arg12[%c0_25, %c0_26] : memref<8x362xf32, #tpu.memory_space<vmem>>, vector<4x362xf32>
    tpu.vector_store %arg12[%c0_25, %c0_26], %30 {strides = array<i32>} : memref<8x362xf32, #tpu.memory_space<vmem>>, vector<4x362xf32>,
    %c0_27 = arith.constant 0 : index
    %c0_28 = arith.constant 0 : index
    %c2_29 = arith.constant 2 : index
    %c2_30 = arith.constant 2 : index
    %34 = vector.load %arg2[%c0_27, %c0_28, %c2_29, %c2_30] : memref<1x4x20x20xf32, #tpu.memory_space<vmem>>, vector<1x4x16x16xf32>
    %35 = vector.shape_cast %34 : vector<1x4x16x16xf32> to vector<4x16x16xf32>
    %36 = vector.extract_strided_slice %35 {offsets = [0, 0, 0], sizes = [4, 1, 16], strides = [1, 1, 1]} : vector<4x16x16xf32> to vector<4x1x16xf32>
    %37 = vector.shape_cast %36 : vector<4x1x16xf32> to vector<4x16xf32>
    %c4 = arith.constant 4 : index
    %c38 = arith.constant 38 : index
    %38 = vector.load %arg12[%c4, %c38] : memref<8x362xf32, #tpu.memory_space<vmem>>, vector<4x16xf32>
    tpu.vector_store %arg12[%c4, %c38], %37 {strides = array<i32>} : memref<8x362xf32, #tpu.memory_space<vmem>>, vector<4x16xf32>,
    %39 = vector.extract_strided_slice %35 {offsets = [0, 1, 0], sizes = [4, 1, 16], strides = [1, 1, 1]} : vector<4x16x16xf32> to vector<4x1x16xf32>
    %40 = vector.shape_cast %39 : vector<4x1x16xf32> to vector<4x16xf32>
    %c4_31 = arith.constant 4 : index
    %c56 = arith.constant 56 : index
    %41 = vector.load %arg12[%c4_31, %c56] : memref<8x362xf32, #tpu.memory_space<vmem>>, vector<4x16xf32>
    tpu.vector_store %arg12[%c4_31, %c56], %40 {strides = array<i32>} : memref<8x362xf32, #tpu.memory_space<vmem>>, vector<4x16xf32>,
    %42 = vector.extract_strided_slice %35 {offsets = [0, 2, 0], sizes = [4, 1, 16], strides = [1, 1, 1]} : vector<4x16x16xf32> to vector<4x1x16xf32>
    %43 = vector.shape_cast %42 : vector<4x1x16xf32> to vector<4x16xf32>
    %c4_32 = arith.constant 4 : index
    %c74 = arith.constant 74 : index
    %44 = vector.load %arg12[%c4_32, %c74] : memref<8x362xf32, #tpu.memory_space<vmem>>, vector<4x16xf32>
    tpu.vector_store %arg12[%c4_32, %c74], %43 {strides = array<i32>} : memref<8x362xf32, #tpu.memory_space<vmem>>, vector<4x16xf32>,
    %45 = vector.extract_strided_slice %35 {offsets = [0, 3, 0], sizes = [4, 1, 16], strides = [1, 1, 1]} : vector<4x16x16xf32> to vector<4x1x16xf32>
    %46 = vector.shape_cast %45 : vector<4x1x16xf32> to vector<4x16xf32>
    %c4_33 = arith.constant 4 : index
    %c92 = arith.constant 92 : index
    %47 = vector.load %arg12[%c4_33, %c92] : memref<8x362xf32, #tpu.memory_space<vmem>>, vector<4x16xf32>
    tpu.vector_store %arg12[%c4_33, %c92], %46 {strides = array<i32>} : memref<8x362xf32, #tpu.memory_space<vmem>>, vector<4x16xf32>,
    %48 = vector.extract_strided_slice %35 {offsets = [0, 4, 0], sizes = [4, 1, 16], strides = [1, 1, 1]} : vector<4x16x16xf32> to vector<4x1x16xf32>
    %49 = vector.shape_cast %48 : vector<4x1x16xf32> to vector<4x16xf32>
    %c4_34 = arith.constant 4 : index
    %c110 = arith.constant 110 : index
    %50 = vector.load %arg12[%c4_34, %c110] : memref<8x362xf32, #tpu.memory_space<vmem>>, vector<4x16xf32>
    tpu.vector_store %arg12[%c4_34, %c110], %49 {strides = array<i32>} : memref<8x362xf32, #tpu.memory_space<vmem>>, vector<4x16xf32>,
    %51 = vector.extract_strided_slice %35 {offsets = [0, 5, 0], sizes = [4, 1, 16], strides = [1, 1, 1]} : vector<4x16x16xf32> to vector<4x1x16xf32>
    %52 = vector.shape_cast %51 : vector<4x1x16xf32> to vector<4x16xf32>
    %c4_35 = arith.constant 4 : index
    %c128 = arith.constant 128 : index
    %53 = vector.load %arg12[%c4_35, %c128] : memref<8x362xf32, #tpu.memory_space<vmem>>, vector<4x16xf32>
    tpu.vector_store %arg12[%c4_35, %c128], %52 {strides = array<i32>} : memref<8x362xf32, #tpu.memory_space<vmem>>, vector<4x16xf32>,
    %54 = vector.extract_strided_slice %35 {offsets = [0, 6, 0], sizes = [4, 1, 16], strides = [1, 1, 1]} : vector<4x16x16xf32> to vector<4x1x16xf32>
    %55 = vector.shape_cast %54 : vector<4x1x16xf32> to vector<4x16xf32>
    %c4_36 = arith.constant 4 : index
    %c146 = arith.constant 146 : index
    %56 = vector.load %arg12[%c4_36, %c146] : memref<8x362xf32, #tpu.memory_space<vmem>>, vector<4x16xf32>
    tpu.vector_store %arg12[%c4_36, %c146], %55 {strides = array<i32>} : memref<8x362xf32, #tpu.memory_space<vmem>>, vector<4x16xf32>,
    %57 = vector.extract_strided_slice %35 {offsets = [0, 7, 0], sizes = [4, 1, 16], strides = [1, 1, 1]} : vector<4x16x16xf32> to vector<4x1x16xf32>
    %58 = vector.shape_cast %57 : vector<4x1x16xf32> to vector<4x16xf32>
    %c4_37 = arith.constant 4 : index
    %c164 = arith.constant 164 : index
    %59 = vector.load %arg12[%c4_37, %c164] : memref<8x362xf32, #tpu.memory_space<vmem>>, vector<4x16xf32>
    tpu.vector_store %arg12[%c4_37, %c164], %58 {strides = array<i32>} : memref<8x362xf32, #tpu.memory_space<vmem>>, vector<4x16xf32>,
    %60 = vector.extract_strided_slice %35 {offsets = [0, 8, 0], sizes = [4, 1, 16], strides = [1, 1, 1]} : vector<4x16x16xf32> to vector<4x1x16xf32>
    %61 = vector.shape_cast %60 : vector<4x1x16xf32> to vector<4x16xf32>
    %c4_38 = arith.constant 4 : index
    %c182 = arith.constant 182 : index
    %62 = vector.load %arg12[%c4_38, %c182] : memref<8x362xf32, #tpu.memory_space<vmem>>, vector<4x16xf32>
    tpu.vector_store %arg12[%c4_38, %c182], %61 {strides = array<i32>} : memref<8x362xf32, #tpu.memory_space<vmem>>, vector<4x16xf32>,
    %63 = vector.extract_strided_slice %35 {offsets = [0, 9, 0], sizes = [4, 1, 16], strides = [1, 1, 1]} : vector<4x16x16xf32> to vector<4x1x16xf32>
    %64 = vector.shape_cast %63 : vector<4x1x16xf32> to vector<4x16xf32>
    %c4_39 = arith.constant 4 : index
    %c200 = arith.constant 200 : index
    %65 = vector.load %arg12[%c4_39, %c200] : memref<8x362xf32, #tpu.memory_space<vmem>>, vector<4x16xf32>
    tpu.vector_store %arg12[%c4_39, %c200], %64 {strides = array<i32>} : memref<8x362xf32, #tpu.memory_space<vmem>>, vector<4x16xf32>,
    %66 = vector.extract_strided_slice %35 {offsets = [0, 10, 0], sizes = [4, 1, 16], strides = [1, 1, 1]} : vector<4x16x16xf32> to vector<4x1x16xf32>
    %67 = vector.shape_cast %66 : vector<4x1x16xf32> to vector<4x16xf32>
    %c4_40 = arith.constant 4 : index
    %c218 = arith.constant 218 : index
    %68 = vector.load %arg12[%c4_40, %c218] : memref<8x362xf32, #tpu.memory_space<vmem>>, vector<4x16xf32>
    tpu.vector_store %arg12[%c4_40, %c218], %67 {strides = array<i32>} : memref<8x362xf32, #tpu.memory_space<vmem>>, vector<4x16xf32>,
    %69 = vector.extract_strided_slice %35 {offsets = [0, 11, 0], sizes = [4, 1, 16], strides = [1, 1, 1]} : vector<4x16x16xf32> to vector<4x1x16xf32>
    %70 = vector.shape_cast %69 : vector<4x1x16xf32> to vector<4x16xf32>
    %c4_41 = arith.constant 4 : index
    %c236 = arith.constant 236 : index
    %71 = vector.load %arg12[%c4_41, %c236] : memref<8x362xf32, #tpu.memory_space<vmem>>, vector<4x16xf32>
    tpu.vector_store %arg12[%c4_41, %c236], %70 {strides = array<i32>} : memref<8x362xf32, #tpu.memory_space<vmem>>, vector<4x16xf32>,
    %72 = vector.extract_strided_slice %35 {offsets = [0, 12, 0], sizes = [4, 1, 16], strides = [1, 1, 1]} : vector<4x16x16xf32> to vector<4x1x16xf32>
    %73 = vector.shape_cast %72 : vector<4x1x16xf32> to vector<4x16xf32>
    %c4_42 = arith.constant 4 : index
    %c254 = arith.constant 254 : index
    %74 = vector.load %arg12[%c4_42, %c254] : memref<8x362xf32, #tpu.memory_space<vmem>>, vector<4x16xf32>
    tpu.vector_store %arg12[%c4_42, %c254], %73 {strides = array<i32>} : memref<8x362xf32, #tpu.memory_space<vmem>>, vector<4x16xf32>,
    %75 = vector.extract_strided_slice %35 {offsets = [0, 13, 0], sizes = [4, 1, 16], strides = [1, 1, 1]} : vector<4x16x16xf32> to vector<4x1x16xf32>
    %76 = vector.shape_cast %75 : vector<4x1x16xf32> to vector<4x16xf32>
    %c4_43 = arith.constant 4 : index
    %c272 = arith.constant 272 : index
    %77 = vector.load %arg12[%c4_43, %c272] : memref<8x362xf32, #tpu.memory_space<vmem>>, vector<4x16xf32>
    tpu.vector_store %arg12[%c4_43, %c272], %76 {strides = array<i32>} : memref<8x362xf32, #tpu.memory_space<vmem>>, vector<4x16xf32>,
    %78 = vector.extract_strided_slice %35 {offsets = [0, 14, 0], sizes = [4, 1, 16], strides = [1, 1, 1]} : vector<4x16x16xf32> to vector<4x1x16xf32>
    %79 = vector.shape_cast %78 : vector<4x1x16xf32> to vector<4x16xf32>
    %c4_44 = arith.constant 4 : index
    %c290 = arith.constant 290 : index
    %80 = vector.load %arg12[%c4_44, %c290] : memref<8x362xf32, #tpu.memory_space<vmem>>, vector<4x16xf32>
    tpu.vector_store %arg12[%c4_44, %c290], %79 {strides = array<i32>} : memref<8x362xf32, #tpu.memory_space<vmem>>, vector<4x16xf32>,
    %81 = vector.extract_strided_slice %35 {offsets = [0, 15, 0], sizes = [4, 1, 16], strides = [1, 1, 1]} : vector<4x16x16xf32> to vector<4x1x16xf32>
    %82 = vector.shape_cast %81 : vector<4x1x16xf32> to vector<4x16xf32>
    %c4_45 = arith.constant 4 : index
    %c308 = arith.constant 308 : index
    %83 = vector.load %arg12[%c4_45, %c308] : memref<8x362xf32, #tpu.memory_space<vmem>>, vector<4x16xf32>
    tpu.vector_store %arg12[%c4_45, %c308], %82 {strides = array<i32>} : memref<8x362xf32, #tpu.memory_space<vmem>>, vector<4x16xf32>,
    %c0_46 = arith.constant 0 : index
    %c0_47 = arith.constant 0 : index
    %84 = vector.load %arg12[%c0_46, %c0_47] : memref<8x362xf32, #tpu.memory_space<vmem>>, vector<8x324xf32>
    %c0_48 = arith.constant 0 : index
    %c0_49 = arith.constant 0 : index
    %85 = vector.load %arg13[%c0_48, %c0_49] : memref<72x324xf32, #tpu.memory_space<vmem>>, vector<8x324xf32>
    tpu.vector_store %arg13[%c0_48, %c0_49], %84 {strides = array<i32>} : memref<72x324xf32, #tpu.memory_space<vmem>>, vector<8x324xf32>,
    %c0_50 = arith.constant 0 : index
    %c1_51 = arith.constant 1 : index
    %86 = vector.load %arg12[%c0_50, %c1_51] : memref<8x362xf32, #tpu.memory_space<vmem>>, vector<8x324xf32>
    %c8 = arith.constant 8 : index
    %c0_52 = arith.constant 0 : index
    %87 = vector.load %arg13[%c8, %c0_52] : memref<72x324xf32, #tpu.memory_space<vmem>>, vector<8x324xf32>
    tpu.vector_store %arg13[%c8, %c0_52], %86 {strides = array<i32>} : memref<72x324xf32, #tpu.memory_space<vmem>>, vector<8x324xf32>,
    %c0_53 = arith.constant 0 : index
    %c2_54 = arith.constant 2 : index
    %88 = vector.load %arg12[%c0_53, %c2_54] : memref<8x362xf32, #tpu.memory_space<vmem>>, vector<8x324xf32>
    %c16 = arith.constant 16 : index
    %c0_55 = arith.constant 0 : index
    %89 = vector.load %arg13[%c16, %c0_55] : memref<72x324xf32, #tpu.memory_space<vmem>>, vector<8x324xf32>
    tpu.vector_store %arg13[%c16, %c0_55], %88 {strides = array<i32>} : memref<72x324xf32, #tpu.memory_space<vmem>>, vector<8x324xf32>,
    %c0_56 = arith.constant 0 : index
    %c18 = arith.constant 18 : index
    %90 = vector.load %arg12[%c0_56, %c18] : memref<8x362xf32, #tpu.memory_space<vmem>>, vector<8x324xf32>
    %c24 = arith.constant 24 : index
    %c0_57 = arith.constant 0 : index
    %91 = vector.load %arg13[%c24, %c0_57] : memref<72x324xf32, #tpu.memory_space<vmem>>, vector<8x324xf32>
    tpu.vector_store %arg13[%c24, %c0_57], %90 {strides = array<i32>} : memref<72x324xf32, #tpu.memory_space<vmem>>, vector<8x324xf32>,
    %c0_58 = arith.constant 0 : index
    %c19 = arith.constant 19 : index
    %92 = vector.load %arg12[%c0_58, %c19] : memref<8x362xf32, #tpu.memory_space<vmem>>, vector<8x324xf32>
    %c32 = arith.constant 32 : index
    %c0_59 = arith.constant 0 : index
    %93 = vector.load %arg13[%c32, %c0_59] : memref<72x324xf32, #tpu.memory_space<vmem>>, vector<8x324xf32>
    tpu.vector_store %arg13[%c32, %c0_59], %92 {strides = array<i32>} : memref<72x324xf32, #tpu.memory_space<vmem>>, vector<8x324xf32>,
    %c0_60 = arith.constant 0 : index
    %c20 = arith.constant 20 : index
    %94 = vector.load %arg12[%c0_60, %c20] : memref<8x362xf32, #tpu.memory_space<vmem>>, vector<8x324xf32>
    %c40 = arith.constant 40 : index
    %c0_61 = arith.constant 0 : index
    %95 = vector.load %arg13[%c40, %c0_61] : memref<72x324xf32, #tpu.memory_space<vmem>>, vector<8x324xf32>
    tpu.vector_store %arg13[%c40, %c0_61], %94 {strides = array<i32>} : memref<72x324xf32, #tpu.memory_space<vmem>>, vector<8x324xf32>,
    %c0_62 = arith.constant 0 : index
    %c36 = arith.constant 36 : index
    %96 = vector.load %arg12[%c0_62, %c36] : memref<8x362xf32, #tpu.memory_space<vmem>>, vector<8x324xf32>
    %c48 = arith.constant 48 : index
    %c0_63 = arith.constant 0 : index
    %97 = vector.load %arg13[%c48, %c0_63] : memref<72x324xf32, #tpu.memory_space<vmem>>, vector<8x324xf32>
    tpu.vector_store %arg13[%c48, %c0_63], %96 {strides = array<i32>} : memref<72x324xf32, #tpu.memory_space<vmem>>, vector<8x324xf32>,
    %c0_64 = arith.constant 0 : index
    %c37 = arith.constant 37 : index
    %98 = vector.load %arg12[%c0_64, %c37] : memref<8x362xf32, #tpu.memory_space<vmem>>, vector<8x324xf32>
    %c56_65 = arith.constant 56 : index
    %c0_66 = arith.constant 0 : index
    %99 = vector.load %arg13[%c56_65, %c0_66] : memref<72x324xf32, #tpu.memory_space<vmem>>, vector<8x324xf32>
    tpu.vector_store %arg13[%c56_65, %c0_66], %98 {strides = array<i32>} : memref<72x324xf32, #tpu.memory_space<vmem>>, vector<8x324xf32>,
    %c0_67 = arith.constant 0 : index
    %c38_68 = arith.constant 38 : index
    %100 = vector.load %arg12[%c0_67, %c38_68] : memref<8x362xf32, #tpu.memory_space<vmem>>, vector<8x324xf32>
    %c64 = arith.constant 64 : index
    %c0_69 = arith.constant 0 : index
    %101 = vector.load %arg13[%c64, %c0_69] : memref<72x324xf32, #tpu.memory_space<vmem>>, vector<8x324xf32>
    tpu.vector_store %arg13[%c64, %c0_69], %100 {strides = array<i32>} : memref<72x324xf32, #tpu.memory_space<vmem>>, vector<8x324xf32>,
    %c0_70 = arith.constant 0 : index
    %c0_71 = arith.constant 0 : index
    %102 = vector.load %arg7[%c0_70, %c0_71] : memref<4x72xf32, #tpu.memory_space<vmem>>, vector<4x72xf32>
    %c0_72 = arith.constant 0 : index
    %c0_73 = arith.constant 0 : index
    %103 = vector.load %arg13[%c0_72, %c0_73] : memref<72x324xf32, #tpu.memory_space<vmem>>, vector<72x324xf32>
    %cst_74 = arith.constant dense<0.000000e+00> : vector<4x324xf32>
    %104 = tpu.matmul %102, %103, %cst_74 {dimension_numbers = #tpu.dot_dimension_numbers<[1], [0], [0], [1], [0, 0, 1, 1], [], []>, precision = #tpu.contract_precision<fp32>} : vector<4x72xf32>, vector<72x324xf32>, vector<4x324xf32> -> vector<4x324xf32>
    %c0_75 = arith.constant 0 : index
    %c0_76 = arith.constant 0 : index
    %105 = vector.load %arg8[%c0_75, %c0_76] : memref<4x1xf32, #tpu.memory_space<vmem>>, vector<4x1xf32>
    %106 = vector.broadcast %105 : vector<4x1xf32> to vector<4x324xf32>
    %107 = arith.addf %104, %106 : vector<4x324xf32>
    %cst_77 = arith.constant 0.000000e+00 : f32
    %108 = vector.broadcast %cst_77 : f32 to vector<4x324xf32>
    %109 = arith.maximumf %107, %108 : vector<4x324xf32>
    %110 = vector.extract_strided_slice %0 {offsets = [0, 19], sizes = [1, 324], strides = [1, 1]} : vector<1x362xf32> to vector<1x324xf32>
    %111 = vector.broadcast %110 : vector<1x324xf32> to vector<4x324xf32>
    %112 = arith.mulf %109, %111 : vector<4x324xf32>
    %cst_78 = arith.constant 0.000000e+00 : f32
    %113 = vector.broadcast %cst_78 : f32 to vector<8x362xf32>
    %c0_79 = arith.constant 0 : index
    %c0_80 = arith.constant 0 : index
    %114 = vector.load %arg12[%c0_79, %c0_80] : memref<8x362xf32, #tpu.memory_space<vmem>>, vector<8x362xf32>
    tpu.vector_store %arg12[%c0_79, %c0_80], %113 {strides = array<i32>} : memref<8x362xf32, #tpu.memory_space<vmem>>, vector<8x362xf32>,
    %c0_81 = arith.constant 0 : index
    %c19_82 = arith.constant 19 : index
    %115 = vector.load %arg12[%c0_81, %c19_82] : memref<8x362xf32, #tpu.memory_space<vmem>>, vector<4x324xf32>
    tpu.vector_store %arg12[%c0_81, %c19_82], %112 {strides = array<i32>} : memref<8x362xf32, #tpu.memory_space<vmem>>, vector<4x324xf32>,
    %c0_83 = arith.constant 0 : index
    %c0_84 = arith.constant 0 : index
    %116 = vector.load %arg12[%c0_83, %c0_84] : memref<8x362xf32, #tpu.memory_space<vmem>>, vector<8x324xf32>
    %c0_85 = arith.constant 0 : index
    %c0_86 = arith.constant 0 : index
    %117 = vector.load %arg13[%c0_85, %c0_86] : memref<72x324xf32, #tpu.memory_space<vmem>>, vector<8x324xf32>
    tpu.vector_store %arg13[%c0_85, %c0_86], %116 {strides = array<i32>} : memref<72x324xf32, #tpu.memory_space<vmem>>, vector<8x324xf32>,
    %c0_87 = arith.constant 0 : index
    %c1_88 = arith.constant 1 : index
    %118 = vector.load %arg12[%c0_87, %c1_88] : memref<8x362xf32, #tpu.memory_space<vmem>>, vector<8x324xf32>
    %c8_89 = arith.constant 8 : index
    %c0_90 = arith.constant 0 : index
    %119 = vector.load %arg13[%c8_89, %c0_90] : memref<72x324xf32, #tpu.memory_space<vmem>>, vector<8x324xf32>
    tpu.vector_store %arg13[%c8_89, %c0_90], %118 {strides = array<i32>} : memref<72x324xf32, #tpu.memory_space<vmem>>, vector<8x324xf32>,
    %c0_91 = arith.constant 0 : index
    %c2_92 = arith.constant 2 : index
    %120 = vector.load %arg12[%c0_91, %c2_92] : memref<8x362xf32, #tpu.memory_space<vmem>>, vector<8x324xf32>
    %c16_93 = arith.constant 16 : index
    %c0_94 = arith.constant 0 : index
    %121 = vector.load %arg13[%c16_93, %c0_94] : memref<72x324xf32, #tpu.memory_space<vmem>>, vector<8x324xf32>
    tpu.vector_store %arg13[%c16_93, %c0_94], %120 {strides = array<i32>} : memref<72x324xf32, #tpu.memory_space<vmem>>, vector<8x324xf32>,
    %c0_95 = arith.constant 0 : index
    %c18_96 = arith.constant 18 : index
    %122 = vector.load %arg12[%c0_95, %c18_96] : memref<8x362xf32, #tpu.memory_space<vmem>>, vector<8x324xf32>
    %c24_97 = arith.constant 24 : index
    %c0_98 = arith.constant 0 : index
    %123 = vector.load %arg13[%c24_97, %c0_98] : memref<72x324xf32, #tpu.memory_space<vmem>>, vector<8x324xf32>
    tpu.vector_store %arg13[%c24_97, %c0_98], %122 {strides = array<i32>} : memref<72x324xf32, #tpu.memory_space<vmem>>, vector<8x324xf32>,
    %c0_99 = arith.constant 0 : index
    %c19_100 = arith.constant 19 : index
    %124 = vector.load %arg12[%c0_99, %c19_100] : memref<8x362xf32, #tpu.memory_space<vmem>>, vector<8x324xf32>
    %c32_101 = arith.constant 32 : index
    %c0_102 = arith.constant 0 : index
    %125 = vector.load %arg13[%c32_101, %c0_102] : memref<72x324xf32, #tpu.memory_space<vmem>>, vector<8x324xf32>
    tpu.vector_store %arg13[%c32_101, %c0_102], %124 {strides = array<i32>} : memref<72x324xf32, #tpu.memory_space<vmem>>, vector<8x324xf32>,
    %c0_103 = arith.constant 0 : index
    %c20_104 = arith.constant 20 : index
    %126 = vector.load %arg12[%c0_103, %c20_104] : memref<8x362xf32, #tpu.memory_space<vmem>>, vector<8x324xf32>
    %c40_105 = arith.constant 40 : index
    %c0_106 = arith.constant 0 : index
    %127 = vector.load %arg13[%c40_105, %c0_106] : memref<72x324xf32, #tpu.memory_space<vmem>>, vector<8x324xf32>
    tpu.vector_store %arg13[%c40_105, %c0_106], %126 {strides = array<i32>} : memref<72x324xf32, #tpu.memory_space<vmem>>, vector<8x324xf32>,
    %c0_107 = arith.constant 0 : index
    %c36_108 = arith.constant 36 : index
    %128 = vector.load %arg12[%c0_107, %c36_108] : memref<8x362xf32, #tpu.memory_space<vmem>>, vector<8x324xf32>
    %c48_109 = arith.constant 48 : index
    %c0_110 = arith.constant 0 : index
    %129 = vector.load %arg13[%c48_109, %c0_110] : memref<72x324xf32, #tpu.memory_space<vmem>>, vector<8x324xf32>
    tpu.vector_store %arg13[%c48_109, %c0_110], %128 {strides = array<i32>} : memref<72x324xf32, #tpu.memory_space<vmem>>, vector<8x324xf32>,
    %c0_111 = arith.constant 0 : index
    %c37_112 = arith.constant 37 : index
    %130 = vector.load %arg12[%c0_111, %c37_112] : memref<8x362xf32, #tpu.memory_space<vmem>>, vector<8x324xf32>
    %c56_113 = arith.constant 56 : index
    %c0_114 = arith.constant 0 : index
    %131 = vector.load %arg13[%c56_113, %c0_114] : memref<72x324xf32, #tpu.memory_space<vmem>>, vector<8x324xf32>
    tpu.vector_store %arg13[%c56_113, %c0_114], %130 {strides = array<i32>} : memref<72x324xf32, #tpu.memory_space<vmem>>, vector<8x324xf32>,
    %c0_115 = arith.constant 0 : index
    %c38_116 = arith.constant 38 : index
    %132 = vector.load %arg12[%c0_115, %c38_116] : memref<8x362xf32, #tpu.memory_space<vmem>>, vector<8x324xf32>
    %c64_117 = arith.constant 64 : index
    %c0_118 = arith.constant 0 : index
    %133 = vector.load %arg13[%c64_117, %c0_118] : memref<72x324xf32, #tpu.memory_space<vmem>>, vector<8x324xf32>
    tpu.vector_store %arg13[%c64_117, %c0_118], %132 {strides = array<i32>} : memref<72x324xf32, #tpu.memory_space<vmem>>, vector<8x324xf32>,
    %c0_119 = arith.constant 0 : index
    %c0_120 = arith.constant 0 : index
    %134 = vector.load %arg9[%c0_119, %c0_120] : memref<4x72xf32, #tpu.memory_space<vmem>>, vector<4x72xf32>
    %c0_121 = arith.constant 0 : index
    %c0_122 = arith.constant 0 : index
    %135 = vector.load %arg13[%c0_121, %c0_122] : memref<72x324xf32, #tpu.memory_space<vmem>>, vector<72x324xf32>
    %cst_123 = arith.constant dense<0.000000e+00> : vector<4x324xf32>
    %136 = tpu.matmul %134, %135, %cst_123 {dimension_numbers = #tpu.dot_dimension_numbers<[1], [0], [0], [1], [0, 0, 1, 1], [], []>, precision = #tpu.contract_precision<fp32>} : vector<4x72xf32>, vector<72x324xf32>, vector<4x324xf32> -> vector<4x324xf32>
    %c0_124 = arith.constant 0 : index
    %c0_125 = arith.constant 0 : index
    %137 = vector.load %arg10[%c0_124, %c0_125] : memref<4x1xf32, #tpu.memory_space<vmem>>, vector<4x1xf32>
    %138 = vector.broadcast %137 : vector<4x1xf32> to vector<4x324xf32>
    %139 = arith.addf %136, %138 : vector<4x324xf32>
    %cst_126 = arith.constant 0.000000e+00 : f32
    %140 = vector.broadcast %cst_126 : f32 to vector<4x324xf32>
    %141 = arith.maximumf %139, %140 : vector<4x324xf32>
    %142 = vector.extract_strided_slice %141 {offsets = [0, 19], sizes = [4, 16], strides = [1, 1]} : vector<4x324xf32> to vector<4x16xf32>
    %c0_127 = arith.constant 0 : index
    %c0_128 = arith.constant 0 : index
    %c0_129 = arith.constant 0 : index
    %143 = vector.load %arg11[%c0_127, %c0_128, %c0_129] : memref<1x4x256xf32, #tpu.memory_space<vmem>>, vector<1x4x16xf32>
    %144 = vector.shape_cast %143 : vector<1x4x16xf32> to vector<4x16xf32>
    %145 = vector.shape_cast %142 : vector<4x16xf32> to vector<1x4x16xf32>
    tpu.vector_store %arg11[%c0_127, %c0_128, %c0_129], %145 {strides = array<i32>} : memref<1x4x256xf32, #tpu.memory_space<vmem>>, vector<1x4x16xf32>,
    %146 = vector.extract_strided_slice %141 {offsets = [0, 37], sizes = [4, 16], strides = [1, 1]} : vector<4x324xf32> to vector<4x16xf32>
    %c0_130 = arith.constant 0 : index
    %c0_131 = arith.constant 0 : index
    %c16_132 = arith.constant 16 : index
    %147 = vector.load %arg11[%c0_130, %c0_131, %c16_132] : memref<1x4x256xf32, #tpu.memory_space<vmem>>, vector<1x4x16xf32>
    %148 = vector.shape_cast %147 : vector<1x4x16xf32> to vector<4x16xf32>
    %149 = vector.shape_cast %146 : vector<4x16xf32> to vector<1x4x16xf32>
    tpu.vector_store %arg11[%c0_130, %c0_131, %c16_132], %149 {strides = array<i32>} : memref<1x4x256xf32, #tpu.memory_space<vmem>>, vector<1x4x16xf32>,
    %150 = vector.extract_strided_slice %141 {offsets = [0, 55], sizes = [4, 16], strides = [1, 1]} : vector<4x324xf32> to vector<4x16xf32>
    %c0_133 = arith.constant 0 : index
    %c0_134 = arith.constant 0 : index
    %c32_135 = arith.constant 32 : index
    %151 = vector.load %arg11[%c0_133, %c0_134, %c32_135] : memref<1x4x256xf32, #tpu.memory_space<vmem>>, vector<1x4x16xf32>
    %152 = vector.shape_cast %151 : vector<1x4x16xf32> to vector<4x16xf32>
    %153 = vector.shape_cast %150 : vector<4x16xf32> to vector<1x4x16xf32>
    tpu.vector_store %arg11[%c0_133, %c0_134, %c32_135], %153 {strides = array<i32>} : memref<1x4x256xf32, #tpu.memory_space<vmem>>, vector<1x4x16xf32>,
    %154 = vector.extract_strided_slice %141 {offsets = [0, 73], sizes = [4, 16], strides = [1, 1]} : vector<4x324xf32> to vector<4x16xf32>
    %c0_136 = arith.constant 0 : index
    %c0_137 = arith.constant 0 : index
    %c48_138 = arith.constant 48 : index
    %155 = vector.load %arg11[%c0_136, %c0_137, %c48_138] : memref<1x4x256xf32, #tpu.memory_space<vmem>>, vector<1x4x16xf32>
    %156 = vector.shape_cast %155 : vector<1x4x16xf32> to vector<4x16xf32>
    %157 = vector.shape_cast %154 : vector<4x16xf32> to vector<1x4x16xf32>
    tpu.vector_store %arg11[%c0_136, %c0_137, %c48_138], %157 {strides = array<i32>} : memref<1x4x256xf32, #tpu.memory_space<vmem>>, vector<1x4x16xf32>,
    %158 = vector.extract_strided_slice %141 {offsets = [0, 91], sizes = [4, 16], strides = [1, 1]} : vector<4x324xf32> to vector<4x16xf32>
    %c0_139 = arith.constant 0 : index
    %c0_140 = arith.constant 0 : index
    %c64_141 = arith.constant 64 : index
    %159 = vector.load %arg11[%c0_139, %c0_140, %c64_141] : memref<1x4x256xf32, #tpu.memory_space<vmem>>, vector<1x4x16xf32>
    %160 = vector.shape_cast %159 : vector<1x4x16xf32> to vector<4x16xf32>
    %161 = vector.shape_cast %158 : vector<4x16xf32> to vector<1x4x16xf32>
    tpu.vector_store %arg11[%c0_139, %c0_140, %c64_141], %161 {strides = array<i32>} : memref<1x4x256xf32, #tpu.memory_space<vmem>>, vector<1x4x16xf32>,
    %162 = vector.extract_strided_slice %141 {offsets = [0, 109], sizes = [4, 16], strides = [1, 1]} : vector<4x324xf32> to vector<4x16xf32>
    %c0_142 = arith.constant 0 : index
    %c0_143 = arith.constant 0 : index
    %c80 = arith.constant 80 : index
    %163 = vector.load %arg11[%c0_142, %c0_143, %c80] : memref<1x4x256xf32, #tpu.memory_space<vmem>>, vector<1x4x16xf32>
    %164 = vector.shape_cast %163 : vector<1x4x16xf32> to vector<4x16xf32>
    %165 = vector.shape_cast %162 : vector<4x16xf32> to vector<1x4x16xf32>
    tpu.vector_store %arg11[%c0_142, %c0_143, %c80], %165 {strides = array<i32>} : memref<1x4x256xf32, #tpu.memory_space<vmem>>, vector<1x4x16xf32>,
    %166 = vector.extract_strided_slice %141 {offsets = [0, 127], sizes = [4, 16], strides = [1, 1]} : vector<4x324xf32> to vector<4x16xf32>
    %c0_144 = arith.constant 0 : index
    %c0_145 = arith.constant 0 : index
    %c96 = arith.constant 96 : index
    %167 = vector.load %arg11[%c0_144, %c0_145, %c96] : memref<1x4x256xf32, #tpu.memory_space<vmem>>, vector<1x4x16xf32>
    %168 = vector.shape_cast %167 : vector<1x4x16xf32> to vector<4x16xf32>
    %169 = vector.shape_cast %166 : vector<4x16xf32> to vector<1x4x16xf32>
    tpu.vector_store %arg11[%c0_144, %c0_145, %c96], %169 {strides = array<i32>} : memref<1x4x256xf32, #tpu.memory_space<vmem>>, vector<1x4x16xf32>,
    %170 = vector.extract_strided_slice %141 {offsets = [0, 145], sizes = [4, 16], strides = [1, 1]} : vector<4x324xf32> to vector<4x16xf32>
    %c0_146 = arith.constant 0 : index
    %c0_147 = arith.constant 0 : index
    %c112 = arith.constant 112 : index
    %171 = vector.load %arg11[%c0_146, %c0_147, %c112] : memref<1x4x256xf32, #tpu.memory_space<vmem>>, vector<1x4x16xf32>
    %172 = vector.shape_cast %171 : vector<1x4x16xf32> to vector<4x16xf32>
    %173 = vector.shape_cast %170 : vector<4x16xf32> to vector<1x4x16xf32>
    tpu.vector_store %arg11[%c0_146, %c0_147, %c112], %173 {strides = array<i32>} : memref<1x4x256xf32, #tpu.memory_space<vmem>>, vector<1x4x16xf32>,
    %174 = vector.extract_strided_slice %141 {offsets = [0, 163], sizes = [4, 16], strides = [1, 1]} : vector<4x324xf32> to vector<4x16xf32>
    %c0_148 = arith.constant 0 : index
    %c0_149 = arith.constant 0 : index
    %c128_150 = arith.constant 128 : index
    %175 = vector.load %arg11[%c0_148, %c0_149, %c128_150] : memref<1x4x256xf32, #tpu.memory_space<vmem>>, vector<1x4x16xf32>
    %176 = vector.shape_cast %175 : vector<1x4x16xf32> to vector<4x16xf32>
    %177 = vector.shape_cast %174 : vector<4x16xf32> to vector<1x4x16xf32>
    tpu.vector_store %arg11[%c0_148, %c0_149, %c128_150], %177 {strides = array<i32>} : memref<1x4x256xf32, #tpu.memory_space<vmem>>, vector<1x4x16xf32>,
    %178 = vector.extract_strided_slice %141 {offsets = [0, 181], sizes = [4, 16], strides = [1, 1]} : vector<4x324xf32> to vector<4x16xf32>
    %c0_151 = arith.constant 0 : index
    %c0_152 = arith.constant 0 : index
    %c144 = arith.constant 144 : index
    %179 = vector.load %arg11[%c0_151, %c0_152, %c144] : memref<1x4x256xf32, #tpu.memory_space<vmem>>, vector<1x4x16xf32>
    %180 = vector.shape_cast %179 : vector<1x4x16xf32> to vector<4x16xf32>
    %181 = vector.shape_cast %178 : vector<4x16xf32> to vector<1x4x16xf32>
    tpu.vector_store %arg11[%c0_151, %c0_152, %c144], %181 {strides = array<i32>} : memref<1x4x256xf32, #tpu.memory_space<vmem>>, vector<1x4x16xf32>,
    %182 = vector.extract_strided_slice %141 {offsets = [0, 199], sizes = [4, 16], strides = [1, 1]} : vector<4x324xf32> to vector<4x16xf32>
    %c0_153 = arith.constant 0 : index
    %c0_154 = arith.constant 0 : index
    %c160 = arith.constant 160 : index
    %183 = vector.load %arg11[%c0_153, %c0_154, %c160] : memref<1x4x256xf32, #tpu.memory_space<vmem>>, vector<1x4x16xf32>
    %184 = vector.shape_cast %183 : vector<1x4x16xf32> to vector<4x16xf32>
    %185 = vector.shape_cast %182 : vector<4x16xf32> to vector<1x4x16xf32>
    tpu.vector_store %arg11[%c0_153, %c0_154, %c160], %185 {strides = array<i32>} : memref<1x4x256xf32, #tpu.memory_space<vmem>>, vector<1x4x16xf32>,
    %186 = vector.extract_strided_slice %141 {offsets = [0, 217], sizes = [4, 16], strides = [1, 1]} : vector<4x324xf32> to vector<4x16xf32>
    %c0_155 = arith.constant 0 : index
    %c0_156 = arith.constant 0 : index
    %c176 = arith.constant 176 : index
    %187 = vector.load %arg11[%c0_155, %c0_156, %c176] : memref<1x4x256xf32, #tpu.memory_space<vmem>>, vector<1x4x16xf32>
    %188 = vector.shape_cast %187 : vector<1x4x16xf32> to vector<4x16xf32>
    %189 = vector.shape_cast %186 : vector<4x16xf32> to vector<1x4x16xf32>
    tpu.vector_store %arg11[%c0_155, %c0_156, %c176], %189 {strides = array<i32>} : memref<1x4x256xf32, #tpu.memory_space<vmem>>, vector<1x4x16xf32>,
    %190 = vector.extract_strided_slice %141 {offsets = [0, 235], sizes = [4, 16], strides = [1, 1]} : vector<4x324xf32> to vector<4x16xf32>
    %c0_157 = arith.constant 0 : index
    %c0_158 = arith.constant 0 : index
    %c192 = arith.constant 192 : index
    %191 = vector.load %arg11[%c0_157, %c0_158, %c192] : memref<1x4x256xf32, #tpu.memory_space<vmem>>, vector<1x4x16xf32>
    %192 = vector.shape_cast %191 : vector<1x4x16xf32> to vector<4x16xf32>
    %193 = vector.shape_cast %190 : vector<4x16xf32> to vector<1x4x16xf32>
    tpu.vector_store %arg11[%c0_157, %c0_158, %c192], %193 {strides = array<i32>} : memref<1x4x256xf32, #tpu.memory_space<vmem>>, vector<1x4x16xf32>,
    %194 = vector.extract_strided_slice %141 {offsets = [0, 253], sizes = [4, 16], strides = [1, 1]} : vector<4x324xf32> to vector<4x16xf32>
    %c0_159 = arith.constant 0 : index
    %c0_160 = arith.constant 0 : index
    %c208 = arith.constant 208 : index
    %195 = vector.load %arg11[%c0_159, %c0_160, %c208] : memref<1x4x256xf32, #tpu.memory_space<vmem>>, vector<1x4x16xf32>
    %196 = vector.shape_cast %195 : vector<1x4x16xf32> to vector<4x16xf32>
    %197 = vector.shape_cast %194 : vector<4x16xf32> to vector<1x4x16xf32>
    tpu.vector_store %arg11[%c0_159, %c0_160, %c208], %197 {strides = array<i32>} : memref<1x4x256xf32, #tpu.memory_space<vmem>>, vector<1x4x16xf32>,
    %198 = vector.extract_strided_slice %141 {offsets = [0, 271], sizes = [4, 16], strides = [1, 1]} : vector<4x324xf32> to vector<4x16xf32>
    %c0_161 = arith.constant 0 : index
    %c0_162 = arith.constant 0 : index
    %c224 = arith.constant 224 : index
    %199 = vector.load %arg11[%c0_161, %c0_162, %c224] : memref<1x4x256xf32, #tpu.memory_space<vmem>>, vector<1x4x16xf32>
    %200 = vector.shape_cast %199 : vector<1x4x16xf32> to vector<4x16xf32>
    %201 = vector.shape_cast %198 : vector<4x16xf32> to vector<1x4x16xf32>
    tpu.vector_store %arg11[%c0_161, %c0_162, %c224], %201 {strides = array<i32>} : memref<1x4x256xf32, #tpu.memory_space<vmem>>, vector<1x4x16xf32>,
    %202 = vector.extract_strided_slice %141 {offsets = [0, 289], sizes = [4, 16], strides = [1, 1]} : vector<4x324xf32> to vector<4x16xf32>
    %c0_163 = arith.constant 0 : index
    %c0_164 = arith.constant 0 : index
    %c240 = arith.constant 240 : index
    %203 = vector.load %arg11[%c0_163, %c0_164, %c240] : memref<1x4x256xf32, #tpu.memory_space<vmem>>, vector<1x4x16xf32>
    %204 = vector.shape_cast %203 : vector<1x4x16xf32> to vector<4x16xf32>
    %205 = vector.shape_cast %202 : vector<4x16xf32> to vector<1x4x16xf32>
    tpu.vector_store %arg11[%c0_163, %c0_164, %c240], %205 {strides = array<i32>} : memref<1x4x256xf32, #tpu.memory_space<vmem>>, vector<1x4x16xf32>,
    return
  }
  func.func @transform_0(%arg0: i32) -> (i32, i32, i32) {
    %c0_i32 = arith.constant 0 : i32
    %c0_i32_0 = arith.constant 0 : i32
    %c0_i32_1 = arith.constant 0 : i32
    return %arg0, %c0_i32, %c0_i32_0 : i32, i32, i32
  }
  func.func @transform_1(%arg0: i32) -> (i32, i32, i32, i32) {
    %c0_i32 = arith.constant 0 : i32
    %c0_i32_0 = arith.constant 0 : i32
    %c0_i32_1 = arith.constant 0 : i32
    %c0_i32_2 = arith.constant 0 : i32
    return %arg0, %c0_i32, %c0_i32_0, %c0_i32_1 : i32, i32, i32, i32
  }
  func.func @transform_2(%arg0: i32) -> (i32, i32) {
    %c0_i32 = arith.constant 0 : i32
    %c0_i32_0 = arith.constant 0 : i32
    %c0_i32_1 = arith.constant 0 : i32
    return %c0_i32, %c0_i32_0 : i32, i32
  }
  func.func @transform_3(%arg0: i32) -> (i32, i32) {
    %c0_i32 = arith.constant 0 : i32
    %c0_i32_0 = arith.constant 0 : i32
    %c0_i32_1 = arith.constant 0 : i32
    return %c0_i32, %c0_i32_0 : i32, i32
  }
  func.func @transform_4(%arg0: i32) -> (i32, i32, i32) {
    %c0_i32 = arith.constant 0 : i32
    %c0_i32_0 = arith.constant 0 : i32
    %c0_i32_1 = arith.constant 0 : i32
    %c0_i32_2 = arith.constant 0 : i32
    return %c0_i32, %c0_i32_0, %c0_i32_1 : i32, i32, i32
  }
  func.func @transform_5(%arg0: i32) -> (i32, i32) {
    %c0_i32 = arith.constant 0 : i32
    %c0_i32_0 = arith.constant 0 : i32
    %c0_i32_1 = arith.constant 0 : i32
    return %c0_i32, %c0_i32_0 : i32, i32
  }
  func.func @transform_6(%arg0: i32) -> (i32, i32) {
    %c0_i32 = arith.constant 0 : i32
    %c0_i32_0 = arith.constant 0 : i32
    %c0_i32_1 = arith.constant 0 : i32
    return %c0_i32, %c0_i32_0 : i32, i32
  }
  func.func @transform_7(%arg0: i32) -> (i32, i32) {
    %c0_i32 = arith.constant 0 : i32
    %c0_i32_0 = arith.constant 0 : i32
    %c0_i32_1 = arith.constant 0 : i32
    return %c0_i32, %c0_i32_0 : i32, i32
  }
  func.func @transform_8(%arg0: i32) -> (i32, i32) {
    %c0_i32 = arith.constant 0 : i32
    %c0_i32_0 = arith.constant 0 : i32
    %c0_i32_1 = arith.constant 0 : i32
    return %c0_i32, %c0_i32_0 : i32, i32
  }
  func.func @transform_9(%arg0: i32) -> (i32, i32) {
    %c0_i32 = arith.constant 0 : i32
    %c0_i32_0 = arith.constant 0 : i32
    %c0_i32_1 = arith.constant 0 : i32
    return %c0_i32, %c0_i32_0 : i32, i32
  }
  func.func @transform_10(%arg0: i32) -> (i32, i32, i32) {
    %c0_i32 = arith.constant 0 : i32
    %c0_i32_0 = arith.constant 0 : i32
    %c0_i32_1 = arith.constant 0 : i32
    return %arg0, %c0_i32, %c0_i32_0 : i32, i32, i32
  }
}

</mosaic_0001>

<bundles_post_ra>
// kernel: unet_up_block_forward.1
= control target key start
LH: loop header
LB: loop body
LE: loop exit
PB: predicated region body
PF: predicated region fallthrough
CT: control target
= control target key end

     0   :  { %15 = vsyncpa [#allocation5], 0  ;;  %s6117_s13 = smov 0   ;;  %s9061_s0 = inlined_call_operand.vmem [shape: f32[2,8,64], index: 0, kind: input, shape index: {}]   ;;  %s9062_s1 = inlined_call_operand.vmem [shape: f32[2,4,20,20], index: 1, kind: input, shape index: {}]   ;;  %s9063_s2 = inlined_call_operand.vmem [shape: f32[16,8], index: 2, kind: input, shape index: {}]   ;;  %s9064_s3 = inlined_call_operand.vmem [shape: f32[4,1], index: 3, kind: input, shape index: {}]   ;;  %s9065_s4 = inlined_call_operand.hbm [shape: f32[4,64,362], index: 4, kind: input, shape index: {}]   ;;  %s9066_s5 = inlined_call_operand.vmem [shape: f32[1,362], index: 5, kind: input, shape index: {}]   ;;  %s9067_s6 = inlined_call_operand.vmem [shape: f32[4,72], index: 6, kind: input, shape index: {}]   ;;  %s9068_s7 = inlined_call_operand.vmem [shape: f32[4,1], index: 7, kind: input, shape index: {}]   ;;  %s9069_s8 = inlined_call_operand.vmem [shape: f32[4,72], index: 8, kind: input, shape index: {}]   ;;  %s9070_s9 = inlined_call_operand.vmem [shape: f32[4,1], index: 9, kind: input, shape index: {}]   ;;  %s9071_s10 = inlined_call_operand.vmem [shape: f32[2,4,256], index: 10, kind: output, shape index: {}]  }
   0x1 LB: > { %s289_s16 = sshll.u32 %s9065_s4, 4  ;;  %s5900_s17 = sadd.s32 4294967295, %s6019_s13   ;;  %s6019_s13 = sphi %s6117_s13, %s21_s13   ;;  %s290_s16 = int_to_ptr.hbm [resolvable:$true] %s289_s16 }
   0x2   : > { %p5902_p0 = scmp.ge.s32.totalorder %s6019_s13, 1  ;;  %p272_p1 = scmp.lt.s32.totalorder %s6019_s13, 3 }
   0x3   : > { %p5925_p2 = scmp.eq.s32.totalorder %s5900_s17, 0  ;;  %s6021_s18 = smov [#allocation4]  }
   0x4   : > { %p273_p3 = pnand %p5902_p0, %p272_p1  ;;  %s291_s19 = sshll.u32 %s6021_s18, 4  ;;  %s292_s19 = int_to_ptr.vmem [resolvable:$true] %s291_s19 }
   0x5   : > { %s6022_s20 = smov 384   ;;  %s6023_s21 = smov 24  }
   0x6   : > { %p5921_p4 = pneg %p273_p3  ;;  %337 = sbr.rel (%p273_p3) target bundleno = 1553 (0x611), region = 60 }
   0x8   : > { %p5922_p5 = pnand %p5925_p2, %p5921_p4 }
   0xa   : > { %5924 = dma.hbm_to_vmem [thread:$0]  (!%p5922_p5), %s290_s16, 12288, %s292_s19, [#allocation5], %s6022_s20, %s6022_s20, %s6023_s21  }
   0xb   : > { %6014 = dma.done.wait (%p5925_p2), [#allocation5], 12288  }
   0xc   : > { %6016 = vsyncadd (%p5925_p2), [#allocation5], 4294955008  ;;  %p380_p6 = scmp.lt.s32.totalorder %s5900_s17, 1  ;;  %vm398_vm0 = vcmask 64512   ;;  %v397_v1 = vld [vmem:[%s9063_s2 + $0x8] sm:$0xff]  ;;  %v396_v2 = vld [vmem:[%s9063_s2] sm:$0xff] }
   0xd   : > { %v403_v4 = vsel %vm398_vm0, %v397_v1, 0  ;;  %v400_v5 = vsel %vm398_vm0, %v396_v2, 0  ;;  %v628_v6 = vld [vmem:[#allocation4 + $0x168] sm:$0xff]  ;;  %v625_v7 = vld [vmem:[#allocation4 + $0x150] sm:$0xff]  ;;  %v622_v8 = vld [vmem:[#allocation4 + $0x138] sm:$0xff]  ;;  %vm633_vm1 = vcmask 523264  }
   0xe   : > { %s9096_s17 = smov (!%p380_p6, %s5900_s17), 1  ;;  %v6142_v9 = vand.u32 4294901760, %v403_v4  ;;  %v422_v10 = vand.u32 4294901760, %v400_v5  ;;  %v6144_v11 = vand.u32 4294901760, %v628_v6  ;;  %v6146_v12 = vand.u32 4294901760, %v625_v7  ;;  %v619_v13 = vld [vmem:[#allocation4 + $0x120] sm:$0xff] }
   0xf   : > { %s5907_s22 = sshll.u32 %s9096_s17, 3  ;;  %v6148_v15 = vand.u32 4294901760, %v622_v8  ;;  %v6150_v16 = vand.u32 4294901760, %v619_v13  ;;  %v616_v44 = vld [vmem:[#allocation4 + $0x108] sm:$0xff]  ;;  %v613_v46 = vld [vmem:[#allocation4 + $0xf0] sm:$0xff]  ;;  %v610_v49 = vld [vmem:[#allocation4 + $0xd8] sm:$0xff] }
  0x10   : > { %s383_s25 = scalar_lea.vmem %s9061_s0, %s5907_s22  ;;  %v431_v17 = vsub.f32 %v403_v4, %v6142_v9  ;;  %v423_v18 = vsub.f32 %v400_v5, %v422_v10  ;;  %v6154_v19 = vsub.f32 %v628_v6, %v6144_v11  ;;  %v6157_v20 = vsub.f32 %v625_v7, %v6146_v12  ;;  %v607_v53 = vld [vmem:[#allocation4 + $0xc0] sm:$0xff]  ;;  %v629_v1 = vld [vmem:[#allocation4 + $0x170] sm:$0xff]  ;;  %v626_v5 = vld [vmem:[#allocation4 + $0x158] sm:$0xff]  ;;  %s5916_s30 = smul.u32 96, %s9096_s17 }
  0x11   : > { %v395_v0 = vld [vmem:[%s383_s25] sm:$0xff]  ;;  %v6160_v22 = vsub.f32 %v622_v8, %v6148_v15  ;;  %v6163_v23 = vsub.f32 %v619_v13, %v6150_v16  ;;  %v6196_v45 = vand.u32 4294901760, %v616_v44  ;;  %v6201_v48 = vand.u32 4294901760, %v613_v46  ;;  %s6024_s15 = smov 126   ;;  %s6026_s19 = smov 16  }
  0x12   : > { %v420_v3 = vand.u32 4294901760, %v395_v0  ;;  %v432_v24 = vand.u32 4294901760, %v431_v17  ;;  %v424_v25 = vand.u32 4294901760, %v423_v18  ;;  %v679_v26 = vand.u32 4294901760, %v6154_v19  ;;  %s7479_s14 = scalar_lea.vmem %s9062_s1, %s5916_s30  ;;  %s6027_s20 = smov 34  }
  0x13   : > { %v685_v27 = vand.u32 4294901760, %v6157_v20  ;;  %v691_v29 = vand.u32 4294901760, %v6160_v22  ;;  %v697_v35 = vand.u32 4294901760, %v6163_v23  ;;  %v6199_v47 = vsub.f32 %v616_v44, %v6196_v45  ;;  %s6028_s21 = smov 54   ;;  %s6029_s23 = smov 70  }
  0x14   : > { %5914 = vmatpush.msra.mxu2 %v420_v3  ;;  %v455_v14 = vsub.f32 %v395_v0, %v420_v3  ;;  %421 = vmatpush.msra.mxu0 %v420_v3  ;;  %v433_v30 = vsub.f32 %v431_v17, %v432_v24  ;;  %v425_v31 = vsub.f32 %v423_v18, %v424_v25  ;;  %v6210_v52 = vand.u32 4294901760, %v610_v49  ;;  %s6030_s24 = smov 88   ;;  %s6031_s25 = smov 90  }
  0x15   : > { %v680_v32 = vsub.f32 %v6154_v19, %v679_v26  ;;  %v686_v33 = vsub.f32 %v6157_v20, %v685_v27  ;;  %v692_v39 = vsub.f32 %v6160_v22, %v691_v29  ;;  %v698_v41 = vsub.f32 %v6163_v23, %v697_v35  ;;  %s6032_s26 = smov 108   ;;  %s6033_s27 = smov 36  }
  0x16   : > { %v456_v21 = vand.u32 4294901760, %v455_v14  ;;  %486 = vmatpush.msrb.mxu2 %v455_v14  ;;  %v434_v36 = vand.u32 4294901760, %v433_v30  ;;  %v426_v37 = vand.u32 4294901760, %v425_v31  ;;  %v703_v50 = vand.u32 4294901760, %v6199_v47  ;;  %s6034_s28 = smov 124   ;;  %s6035_s29 = smov 32  }
  0x17   : > { %v681_v38 = vand.u32 4294901760, %v680_v32  ;;  %v687_v40 = vand.u32 4294901760, %v686_v33  ;;  %v693_v42 = vand.u32 4294901760, %v692_v39  ;;  %v699_v43 = vand.u32 4294901760, %v698_v41  ;;  %v611_v32 = vld [vmem:[#allocation4 + $0xe0] sm:$0xff]  ;;  %s6036_s30 = smov 52  }
  0x18   : > { %v457_v28 = vsub.f32 %v455_v14, %v456_v21  ;;  %546 = vmatpush.msrb.mxu0 %v456_v21  ;;  %435 = vmatmul.f32.vlgmr.msra.gmra.mxu2 %v434_v36  ;;  %v6207_v51 = vsub.f32 %v613_v46, %v6201_v48  ;;  %v704_v54 = vsub.f32 %v6199_v47, %v703_v50  ;;  %v6220_v57 = vand.u32 4294901760, %v607_v53  ;;  %s6037_s11 = smov 50   ;;  %s6038_s12 = smov 72  }
  0x19   : > { %427 = vmatmul.f32.vlgmr.msra.gmra.mxu0 %v426_v37  ;;  %645 = vmatpush.msra.mxu2 %v6144_v11  ;;  %v6217_v56 = vsub.f32 %v610_v49, %v6210_v52  ;;  %v6239_v2 = vand.u32 4294901760, %v629_v1  ;;  %v6250_v7 = vand.u32 4294901760, %v626_v5  ;;  %vm3585_vm2 = vcmask 1045509   ;;  %s6041_s16 = smov 14   ;;  %s6049_s18 = smov 99  }
  0x1a   : > { %v458_v34 = vand.u32 4294901760, %v457_v28  ;;  %740 = vmatpush.msra.mxu0 %v6154_v19  ;;  %v709_v55 = vand.u32 4294901760, %v6207_v51  ;;  %v705_v58 = vand.u32 4294901760, %v704_v54  ;;  %v6229_v61 = vsub.f32 %v607_v53, %v6220_v57  ;;  %v614_v28 = vld [vmem:[#allocation4 + $0xf8] sm:$0xff] }
  0x1b   : > { %647 = vmatpush.msra.mxu2 %v6146_v12  ;;  %v715_v60 = vand.u32 4294901760, %v6217_v56  ;;  %v6248_v6 = vsub.f32 %v629_v1, %v6239_v2  ;;  %v6259_v14 = vsub.f32 %v626_v5, %v6250_v7  ;;  %vm3588_vm3 = vcmask 1046534  }
  0x1c   : > { %5915 = vmatpush.msra.mxu3 %v458_v34  ;;  %459 = vmatpush.msra.mxu1 %v458_v34  ;;  %v710_v59 = vsub.f32 %v6207_v51, %v709_v55  ;;  %v721_v0 = vand.u32 4294901760, %v6229_v61  ;;  %v6302_v34 = vand.u32 4294901760, %v611_v32  ;;  %vm3591_vm4 = vcmask 1047559  }
  0x1d   : > { %465 = vmatmul.f32.vlgmr.msra.gmra.mxu3 %v6142_v9  ;;  %461 = vmatmul.f32.vlgmr.msra.gmra.mxu1 %v422_v10  ;;  %v716_v63 = vsub.f32 %v6217_v56, %v715_v60  ;;  %v922_v19 = vand.u32 4294901760, %v6259_v14  ;;  %vm3654_vm5 = vcmask 130052   ;;  %vm3665_vm6 = vcmask 277652  }
  0x1e   : > { %514 = vmatpush.msrb.mxu3 %v420_v3  ;;  %572 = vmatpush.msrb.mxu1 %v420_v3  ;;  %v711_v62 = vand.u32 4294901760, %v710_v59  ;;  %v722_v4 = vsub.f32 %v6229_v61, %v721_v0  ;;  %v6322_v41 = vsub.f32 %v611_v32, %v6302_v34  ;;  %vm3676_vm7 = vcmask 425252  }
  0x1f   : > { %743 = vmatpush.msra.mxu0 %v6157_v20  ;;  %649 = vmatpush.msra.mxu2 %v6148_v15  ;;  %v717_v3 = vand.u32 4294901760, %v716_v63  ;;  %vm3596_vm8 = vcmask 441652   ;;  %vm3608_vm9 = vcmask 589252   ;;  %vm3692_vm10 = vcmask 572852  }
  0x20   : > { %682 = vmatpush.msra.mxu3 %v681_v38  ;;  %777 = vmatpush.msra.mxu1 %v6144_v11  ;;  %v723_v8 = vand.u32 4294901760, %v722_v4  ;;  %v608_v38 = vld [vmem:[#allocation4 + $0xc8] sm:$0xff]  ;;  %v952_v44 = vand.u32 4294901760, %v6322_v41  ;;  %vm3704_vm11 = vcmask 720452   ;;  %vm3716_vm12 = vcmask 868052  }
  0x21   : > { %746 = vmatpush.msra.mxu0 %v6160_v22  ;;  %489 = vmatmul.f32.vlgmr.msrb.gmra.mxu2 %v423_v18  ;;  %v923_v22 = vsub.f32 %v6259_v14, %v922_v19  ;;  %vm3565_vm13 = vcmask 867328   ;;  %vm3620_vm14 = vcmask 736852   ;;  %vm3632_vm15 = vcmask 884452  }
  0x22   : > { %688 = vmatpush.msra.mxu3 %v687_v40  ;;  %779 = vmatpush.msra.mxu1 %v6146_v12  ;;  %v6319_v40 = vand.u32 4294901760, %v608_v38  ;;  %vm3643_vm0 = vcmask 1032052  }
  0x23   : > { %548 = vmatmul.f32.vlgmr.msrb.gmra.mxu0 %v422_v10  ;;  %651 = vmatpush.msra.mxu2 %v6150_v16 }
  0x24   : > { %694 = vmatpush.msra.mxu3 %v693_v42  ;;  %749 = vmatpush.msra.mxu0 %v6163_v23 }
  0x25   : > { %518 = vmatmul.f32.vlgmr.msrb.gmra.mxu3 %v424_v25  ;;  %574 = vmatmul.f32.vlgmr.msrb.gmra.mxu1 %v422_v10  ;;  %v916_v10 = vand.u32 4294901760, %v6248_v6 }
  0x26   : > { %700 = vmatpush.msra.mxu3 %v699_v43  ;;  %781 = vmatpush.msra.mxu1 %v6148_v15 }
  0x27   : > { %653 = vmatpush.msra.mxu2 %v6196_v45  ;;  %752 = vmatpush.msra.mxu0 %v6199_v47  ;;  %v917_v18 = vsub.f32 %v6248_v6, %v916_v10  ;;  %v953_v47 = vsub.f32 %v6322_v41, %v952_v44 }
  0x28   : > { %783 = vmatpush.msra.mxu1 %v6150_v16  ;;  %706 = vmatpush.msra.mxu3 %v705_v58 }
  0x29   : > { %494 = vmatmul.f32.gmra.mxu2 %v431_v17  ;;  %755 = vmatpush.msra.mxu0 %v6207_v51  ;;  %v620_v17 = vld [vmem:[#allocation4 + $0x128] sm:$0xff]  ;;  %v954_v49 = vand.u32 4294901760, %v953_v47 }
  0x2a   : > { %785 = vmatpush.msra.mxu1 %v6196_v45  ;;  %655 = vmatpush.msra.mxu2 %v6201_v48  ;;  %v6269_v20 = vand.u32 4294901760, %v620_v17 }
  0x2b   : > { %552 = vmatmul.f32.gmra.mxu0 %v6142_v9  ;;  %712 = vmatpush.msra.mxu3 %v711_v62 }
  0x2c   : > { %787 = vmatpush.msra.mxu1 %v6201_v48  ;;  %657 = vmatpush.msra.mxu2 %v6210_v52 }
  0x2d   : > { %524 = vmatmul.f32.gmra.mxu3 %v432_v24  ;;  %578 = vmatmul.f32.gmra.mxu1 %v6142_v9  ;;  %v623_v9 = vld [vmem:[#allocation4 + $0x140] sm:$0xff]  ;;  %v617_v24 = vld [vmem:[#allocation4 + $0x110] sm:$0xff] }
  0x2e   : > { %789 = vmatpush.msra.mxu1 %v6210_v52  ;;  %758 = vmatpush.msra.mxu0 %v6217_v56  ;;  %v6256_v13 = vand.u32 4294901760, %v623_v9 }
  0x2f   : > { %659 = vmatpush.msra.mxu2 %v6220_v57  ;;  %718 = vmatpush.msra.mxu3 %v717_v3 }
  0x30   : > { %791 = vmatpush.msra.mxu1 %v6220_v57  ;;  %761 = vmatpush.msra.mxu0 %v6229_v61  ;;  %v6272_v21 = vsub.f32 %v623_v9, %v6256_v13  ;;  %v630_v9 = vld [vmem:[#allocation4 + $0x178] sm:$0xff] }
  0x31   : > { %810 = vmatpush.msrb.mxu2 %v679_v26  ;;  %724 = vmatpush.msra.mxu3 %v723_v8  ;;  %v6282_v26 = vand.u32 4294901760, %v617_v24 }
  0x32   : > { %882 = vmatpush.msrb.mxu0 %v6239_v2  ;;  %v928_v25 = vand.u32 4294901760, %v6272_v21 }
  0x33   : > { %814 = vmatpush.msrb.mxu2 %v685_v27  ;;  %853 = vmatpush.msrb.mxu3 %v6144_v11  ;;  %v918_v11 = vand.u32 4294901760, %v917_v18  ;;  %v6285_v27 = vsub.f32 %v620_v17, %v6269_v20  ;;  %v6294_v30 = vsub.f32 %v617_v24, %v6282_v26 }
  0x34   : > { %884 = vmatpush.msrb.mxu0 %v6250_v7  ;;  %v929_v23 = vsub.f32 %v6272_v21, %v928_v25 }
  0x35   : > { %818 = vmatpush.msrb.mxu2 %v691_v29  ;;  %855 = vmatpush.msrb.mxu3 %v6146_v12  ;;  %v924_v12 = vand.u32 4294901760, %v923_v22  ;;  %v6291_v29 = vand.u32 4294901760, %v614_v28  ;;  %v934_v31 = vand.u32 4294901760, %v6285_v27  ;;  %v940_v33 = vand.u32 4294901760, %v6294_v30 }
  0x36   : > { %886 = vmatpush.msrb.mxu0 %v6256_v13  ;;  %919 = vmatpush.msrb.mxu1 %v918_v11 }
  0x37   : > { %822 = vmatpush.msrb.mxu2 %v697_v35  ;;  %857 = vmatpush.msrb.mxu3 %v6148_v15  ;;  %v930_v15 = vand.u32 4294901760, %v929_v23  ;;  %v6305_v35 = vsub.f32 %v614_v28, %v6291_v29  ;;  %v935_v36 = vsub.f32 %v6285_v27, %v934_v31  ;;  %v6350_v28 = vand.u32 4294901760, %v630_v9 }
  0x38   : > { %888 = vmatpush.msrb.mxu0 %v6269_v20  ;;  %925 = vmatpush.msrb.mxu1 %v924_v12  ;;  %v627_v12 = vld [vmem:[#allocation4 + $0x160] sm:$0xff] }
  0x39   : > { %826 = vmatpush.msrb.mxu2 %v703_v50  ;;  %859 = vmatpush.msrb.mxu3 %v6150_v16  ;;  %v941_v16 = vsub.f32 %v6294_v30, %v940_v33  ;;  %v946_v37 = vand.u32 4294901760, %v6305_v35  ;;  %v936_v39 = vand.u32 4294901760, %v935_v36  ;;  %v6359_v36 = vand.u32 4294901760, %v627_v12 }
  0x3a   : > { %890 = vmatpush.msrb.mxu0 %v6282_v26  ;;  %931 = vmatpush.msrb.mxu1 %v930_v15 }
  0x3b   : > { %830 = vmatpush.msrb.mxu2 %v709_v55  ;;  %861 = vmatpush.msrb.mxu3 %v6196_v45  ;;  %v942_v42 = vand.u32 4294901760, %v941_v16  ;;  %v947_v43 = vsub.f32 %v6305_v35, %v946_v37  ;;  %v6333_v45 = vsub.f32 %v608_v38, %v6319_v40  ;;  %v624_v16 = vld [vmem:[#allocation4 + $0x148] sm:$0xff] }
  0x3c   : > { %892 = vmatpush.msrb.mxu0 %v6291_v29  ;;  %937 = vmatpush.msrb.mxu1 %v936_v39  ;;  %v6366_v39 = vsub.f32 %v630_v9, %v6350_v28  ;;  %v6375_v47 = vand.u32 4294901760, %v624_v16  ;;  %v597_v9 = vld [vmem:[#allocation4 + $0x78] sm:$0xff] }
  0x3d   : > { %834 = vmatpush.msrb.mxu2 %v715_v60  ;;  %863 = vmatpush.msrb.mxu3 %v6201_v48  ;;  %v948_v46 = vand.u32 4294901760, %v947_v43  ;;  %v958_v48 = vand.u32 4294901760, %v6333_v45  ;;  %v621_v43 = vld [vmem:[#allocation4 + $0x130] sm:$0xff] }
  0x3e   : > { %894 = vmatpush.msrb.mxu0 %v6302_v34  ;;  %943 = vmatpush.msrb.mxu1 %v942_v42 }
  0x3f   : > { %838 = vmatpush.msrb.mxu2 %v721_v0  ;;  %865 = vmatpush.msrb.mxu3 %v6210_v52  ;;  %v959_v50 = vsub.f32 %v6333_v45, %v958_v48 }
  0x40   : > { %896 = vmatpush.msrb.mxu0 %v6319_v40  ;;  %949 = vmatpush.msrb.mxu1 %v948_v46 }
  0x41   : > { %867 = vmatpush.msrb.mxu3 %v6220_v57  ;;  %v960_v51 = vand.u32 4294901760, %v959_v50  ;;  %v6384_v50 = vsub.f32 %v627_v12, %v6359_v36 }
  0x42   : > { %955 = vmatpush.msrb.mxu1 %v954_v49 }
  0x44   : > { %961 = vmatpush.msrb.mxu1 %v960_v51 }
  0x96   : > { %v428_v52 = vpop.f32.mrf.mxu0 }
  0x9a   : > { %v462_v55 = vpop.f32.mrf.mxu1 }
  0x9b   : > { %v436_v53 = vpop.f32.mrf.mxu2  ;;  %v463_v56 = vadd.f32 %v462_v55, %v428_v52  ;;  %v1153_v52 = vand.u32 4294901760, %v6366_v39  ;;  %v1159_v55 = vand.u32 4294901760, %v6384_v50 }
  0xa0   : > { %v466_v54 = vpop.f32.mrf.mxu3  ;;  %v549_v58 = vpop.f32.mrf.mxu0 }
  0xa1   : > { %v467_v0 = vadd.f32 %v466_v54, %v436_v53  ;;  %v6390_v53 = vand.u32 4294901760, %v621_v43 }
  0xa2   : > { %v575_v62 = vpop.f32.mrf.mxu1 }
  0xa4   : > { %v490_v59 = vpop.f32.mrf.mxu2 }
  0xa5   : > { %v491_v61 = vadd.f32 %v490_v59, %v463_v56  ;;  %v612_v56 = vld [vmem:[#allocation4 + $0xe8] sm:$0xff]  ;;  %v609_v59 = vld [vmem:[#allocation4 + $0xd0] sm:$0xff] }
  0xa8   : > { %v519_v60 = vpop.f32.mrf.mxu3  ;;  %v553_v17 = vpop.f32.mrf.mxu0 }
  0xa9   : > { %v520_v57 = vadd.f32 %v519_v60, %v491_v61  ;;  %v6430_v60 = vand.u32 4294901760, %v612_v56 }
  0xaa   : > { %v579_v22 = vpop.f32.mrf.mxu1 }
  0xab   : > { %v550_v63 = vadd.f32 %v549_v58, %v520_v57  ;;  %v6453_v57 = vsub.f32 %v612_v56, %v6430_v60 }
  0xac   : > { %v495_v3 = vpop.f32.mrf.mxu2 }
  0xad   : > { %v6344_v1 = vadd.f32 %v575_v62, %v550_v63  ;;  %v496_v8 = vadd.f32 %v495_v3, %v467_v0  ;;  %v603_v0 = vld [vmem:[#allocation4 + $0xa8] sm:$0xff]  ;;  %v1189_v3 = vand.u32 4294901760, %v6453_v57 }
  0xaf   : > { %v632_v5 = vrot.slane %v6344_v1, 4 }
  0xb0   : > { %v525_v4 = vpop.f32.mrf.mxu3 }
  0xb1   : > { %v634_v18 = vsel %vm633_vm1, %v632_v5, 0  ;;  %v526_v24 = vadd.f32 %v525_v4, %v496_v8 }
  0xb2   : > { %v6348_v11 = vand.u32 4294901760, %v634_v18 }
  0xb3   : > { %v554_v23 = vadd.f32 %v553_v17, %v526_v24  ;;  %v594_v24 = vld [vmem:[#allocation4 + $0x60] sm:$0xff] }
  0xb4   : > { %v6353_v32 = vsub.f32 %v634_v18, %v6348_v11  ;;  %726 = vmatmul.f32.vlgmr.msra.gmra.mxu3 %v6348_v11 }
  0xb5   : > { %v6356_v15 = vadd.f32 %v579_v22, %v554_v23  ;;  %1014 = vmatpush.msra.mxu3 %v6239_v2  ;;  %v6501_v22 = vand.u32 4294901760, %v597_v9 }
  0xb6   : > { %764 = vmatmul.f32.vlgmr.msra.gmra.mxu0 %v6353_v32  ;;  %v6363_v38 = vand.u32 4294901760, %v6353_v32 }
  0xb7   : > { %v2827_v42 = vrot.slane %v6356_v15, 4  ;;  %1016 = vmatpush.msra.mxu3 %v6250_v7  ;;  %1047 = vmatpush.msra.mxu0 %v916_v10  ;;  %v618_v10 = vld [vmem:[#allocation4 + $0x118] sm:$0xff] }
  0xb8   : > { %795 = vmatmul.f32.vlgmr.msra.gmra.mxu1 %v6363_v38  ;;  %v663_v46 = vsub.f32 %v6353_v32, %v6363_v38  ;;  %v6400_v54 = vand.u32 4294901760, %v618_v10 }
  0xb9   : > { %v6378_v49 = vsel %vm633_vm1, %v2827_v42, 0  ;;  %1018 = vmatpush.msra.mxu3 %v6256_v13  ;;  %1051 = vmatpush.msra.mxu0 %v922_v19  ;;  %v6398_v19 = vsub.f32 %v624_v16, %v6375_v47  ;;  %v591_v16 = vld [vmem:[#allocation4 + $0x48] sm:$0xff]  ;;  %v6510_v42 = vand.u32 4294901760, %v594_v24 }
  0xba   : > { %1090 = vmatpush.msra.mxu1 %v6239_v2  ;;  %v6387_v51 = vand.u32 4294901760, %v663_v46  ;;  %v615_v2 = vld [vmem:[#allocation4 + $0x100] sm:$0xff]  ;;  %v6422_v58 = vsub.f32 %v618_v10, %v6400_v54  ;;  %v588_v46 = vld [vmem:[#allocation4 + $0x30] sm:$0xff]  ;;  %v6517_v10 = vsub.f32 %v597_v9, %v6501_v22 }
  0xbb   : > { %1020 = vmatpush.msra.mxu3 %v6269_v20  ;;  %1055 = vmatpush.msra.mxu0 %v928_v25  ;;  %v6412_v25 = vsub.f32 %v621_v43, %v6390_v53  ;;  %v6526_v56 = vsub.f32 %v594_v24, %v6510_v42 }
  0xbc   : > { %1092 = vmatpush.msra.mxu1 %v6250_v7  ;;  %665 = vmatmul.f32.vlgmr.msra.gmra.mxu2 %v6387_v51  ;;  %v1154_v7 = vsub.f32 %v6366_v39, %v1153_v52  ;;  %v1177_v62 = vand.u32 4294901760, %v6422_v58 }
  0xbd   : > { %869 = vmatmul.f32.vlgmr.msrb.gmra.mxu3 %v6348_v11  ;;  %977 = vmatpush.msra.mxu2 %v6248_v6  ;;  %v6416_v6 = vand.u32 4294901760, %v615_v2  ;;  %v1171_v61 = vand.u32 4294901760, %v6412_v25 }
  0xbe   : > { %1022 = vmatpush.msra.mxu3 %v6282_v26  ;;  %1059 = vmatpush.msra.mxu0 %v934_v31  ;;  %v1165_v31 = vand.u32 4294901760, %v6398_v19 }
  0xbf   : > { %1094 = vmatpush.msra.mxu1 %v6256_v13  ;;  %902 = vmatmul.f32.vlgmr.msrb.gmra.mxu0 %v6387_v51  ;;  %v1160_v13 = vsub.f32 %v6384_v50, %v1159_v55 }
  0xc0   : > { %980 = vmatpush.msra.mxu2 %v6259_v14  ;;  %1024 = vmatpush.msra.mxu3 %v6291_v29  ;;  %v1155_v14 = vand.u32 4294901760, %v1154_v7 }
  0xc1   : > { %1063 = vmatpush.msra.mxu0 %v940_v33  ;;  %1096 = vmatpush.msra.mxu1 %v6269_v20  ;;  %v6439_v20 = vsub.f32 %v615_v2, %v6416_v6  ;;  %v6441_v33 = vand.u32 4294901760, %v609_v59  ;;  %v6519_v2 = vand.u32 4294901760, %v591_v16 }
  0xc2   : > { %963 = vmatmul.f32.vlgmr.msrb.gmra.mxu1 %v6348_v11  ;;  %983 = vmatpush.msra.mxu2 %v6272_v21  ;;  %v1166_v21 = vsub.f32 %v6398_v19, %v1165_v31 }
  0xc3   : > { %1026 = vmatpush.msra.mxu3 %v6302_v34  ;;  %1067 = vmatpush.msra.mxu0 %v946_v37  ;;  %v1161_v37 = vand.u32 4294901760, %v1160_v13  ;;  %v6463_v63 = vsub.f32 %v609_v59, %v6441_v33  ;;  %v6528_v59 = vand.u32 4294901760, %v588_v46  ;;  %v585_v13 = vld [vmem:[#allocation4 + $0x18] sm:$0xff] }
  0xc4   : > { %1098 = vmatpush.msra.mxu1 %v6282_v26  ;;  %986 = vmatpush.msra.mxu2 %v6285_v27  ;;  %v1172_v26 = vsub.f32 %v6412_v25, %v1171_v61  ;;  %v1183_v27 = vand.u32 4294901760, %v6439_v20 }
  0xc5   : > { %1028 = vmatpush.msra.mxu3 %v6319_v40  ;;  %1071 = vmatpush.msra.mxu0 %v952_v44  ;;  %v1178_v44 = vsub.f32 %v6422_v58, %v1177_v62  ;;  %v1195_v5 = vand.u32 4294901760, %v6463_v63 }
  0xc6   : > { %1100 = vmatpush.msra.mxu1 %v6291_v29  ;;  %840 = vmatmul.f32.vlgmr.msrb.gmra.mxu2 %v6348_v11  ;;  %v1167_v29 = vand.u32 4294901760, %v1166_v21  ;;  %v1173_v4 = vand.u32 4294901760, %v1172_v26  ;;  %v1347_v21 = vsel %vm633_vm1, %v6344_v1, 0  ;;  %v6540_v26 = vsub.f32 %v591_v16, %v6519_v2 }
  0xc7   : > { %1156 = vmatpush.msrb.mxu3 %v1155_v14  ;;  %989 = vmatpush.msra.mxu2 %v6294_v30  ;;  %v600_v30 = vld [vmem:[#allocation4 + $0x90] sm:$0xff]  ;;  %v1179_v8 = vand.u32 4294901760, %v1178_v44  ;;  %v1196_v18 = vsub.f32 %v6463_v63, %v1195_v5  ;;  %v1410_v1 = vand.u32 4294901760, %v6526_v56 }
  0xc8   : > { %1032 = vmatmul.f32.vlgmr.msra.gmra.mxu3 %v6363_v38  ;;  %1075 = vmatpush.msra.mxu0 %v958_v48  ;;  %v1184_v48 = vsub.f32 %v6439_v20, %v1183_v27 }
  0xc9   : > { %1102 = vmatpush.msra.mxu1 %v6302_v34  ;;  %1162 = vmatpush.msrb.mxu3 %v1161_v37  ;;  %v6481_v34 = vand.u32 4294901760, %v603_v0  ;;  %v1404_v37 = vand.u32 4294901760, %v6517_v10 }
  0xca   : > { %1214 = vmatpush.msrb.mxu0 %v6366_v39  ;;  %992 = vmatpush.msra.mxu2 %v6305_v35  ;;  %v1190_v35 = vsub.f32 %v6453_v57, %v1189_v3  ;;  %v1185_v17 = vand.u32 4294901760, %v1184_v48 }
  0xcb   : > { %1077 = vmatmul.f32.vlgmr.msra.gmra.mxu0 %v6348_v11  ;;  %1104 = vmatpush.msra.mxu1 %v6319_v40  ;;  %v6489_v40 = vand.u32 4294901760, %v600_v30 }
  0xcc   : > { %1168 = vmatpush.msrb.mxu3 %v1167_v29  ;;  %1217 = vmatpush.msrb.mxu0 %v6384_v50  ;;  %v1191_v12 = vand.u32 4294901760, %v1190_v35  ;;  %v582_v29 = vld [vmem:[#allocation4] sm:$0xff]  ;;  %v1416_v35 = vand.u32 4294901760, %v6540_v26 }
  0xcd   : > { %1251 = vmatpush.msrb.mxu1 %v6350_v28  ;;  %995 = vmatpush.msra.mxu2 %v6322_v41  ;;  %v6498_v41 = vsub.f32 %v603_v0, %v6481_v34  ;;  %v6506_v23 = vsub.f32 %v600_v30, %v6489_v40  ;;  %v6547_v0 = vand.u32 4294901760, %v585_v13  ;;  %v6555_v30 = vand.u32 4294901760, %v1347_v21 }
  0xce   : > { %1106 = vmatmul.f32.vlgmr.msra.gmra.mxu1 %v6348_v11  ;;  %1174 = vmatpush.msrb.mxu3 %v1173_v4  ;;  %v6553_v4 = vsub.f32 %v588_v46, %v6528_v59 }
  0xcf   : > { %1220 = vmatpush.msrb.mxu0 %v6398_v19  ;;  %1253 = vmatpush.msrb.mxu1 %v6359_v36  ;;  %v1392_v43 = vand.u32 4294901760, %v6498_v41  ;;  %v1398_v7 = vand.u32 4294901760, %v6506_v23 }
  0xd0   : > { %998 = vmatpush.msra.mxu2 %v6333_v45  ;;  %1180 = vmatpush.msrb.mxu3 %v1179_v8  ;;  %v1197_v45 = vand.u32 4294901760, %v1196_v18  ;;  %v6559_v8 = vand.u32 4294901760, %v582_v29  ;;  %v6579_v18 = vsub.f32 %v1347_v21, %v6555_v30 }
  0xd1   : > { %1223 = vmatpush.msrb.mxu0 %v6412_v25  ;;  %1255 = vmatpush.msrb.mxu1 %v6375_v47  ;;  %v1393_v14 = vsub.f32 %v6498_v41, %v1392_v43  ;;  %v1399_v44 = vsub.f32 %v6506_v23, %v1398_v7  ;;  %v595_v25 = vld [vmem:[#allocation4 + $0x68] sm:$0xff] }
  0xd2   : > { %1119 = vmatpush.msrb.mxu2 %v6350_v28  ;;  %1186 = vmatpush.msrb.mxu3 %v1185_v17  ;;  %v1422_v17 = vand.u32 4294901760, %v6553_v4  ;;  %v6583_v24 = vsub.f32 %v582_v29, %v6559_v8  ;;  %v6652_v29 = vand.u32 4294901760, %v595_v25 }
  0xd3   : > { %1001 = vmatmul.f32.vlgmr.msra.gmra.mxu2 %v6353_v32  ;;  %1226 = vmatpush.msrb.mxu0 %v6422_v58  ;;  %v1394_v48 = vand.u32 4294901760, %v1393_v14  ;;  %v1400_v9 = vand.u32 4294901760, %v1399_v44  ;;  %v592_v58 = vld [vmem:[#allocation4 + $0x50] sm:$0xff]  ;;  %v589_v44 = vld [vmem:[#allocation4 + $0x38] sm:$0xff] }
  0xd4   : > { %1121 = vmatpush.msrb.mxu2 %v6359_v36  ;;  %1257 = vmatpush.msrb.mxu1 %v6390_v53  ;;  %v1434_v46 = vand.u32 4294901760, %v6583_v24 }
  0xd5   : > { %1192 = vmatpush.msrb.mxu3 %v1191_v12  ;;  %1229 = vmatpush.msrb.mxu0 %v6439_v20 }
  0xd6   : > { %1123 = vmatpush.msrb.mxu2 %v6375_v47  ;;  %1259 = vmatpush.msrb.mxu1 %v6400_v54 }
  0xd7   : > { %1198 = vmatpush.msrb.mxu3 %v1197_v45  ;;  %1232 = vmatpush.msrb.mxu0 %v6453_v57  ;;  %v1423_v45 = vsub.f32 %v6553_v4, %v1422_v17 }
  0xd8   : > { %1125 = vmatpush.msrb.mxu2 %v6390_v53  ;;  %1261 = vmatpush.msrb.mxu1 %v6416_v6 }
  0xd9   : > { %1200 = vmatmul.f32.vlgmr.msrb.gmra.mxu3 %v6348_v11  ;;  %1235 = vmatpush.msrb.mxu0 %v6463_v63 }
  0xda   : > { %1127 = vmatpush.msrb.mxu2 %v6400_v54  ;;  %1327 = vmatpush.msra.mxu3 %v6350_v28  ;;  %v1405_v28 = vsub.f32 %v6517_v10, %v1404_v37 }
  0xdb   : > { %1263 = vmatpush.msrb.mxu1 %v6430_v60  ;;  %1238 = vmatmul.f32.vlgmr.msrb.gmra.mxu0 %v6353_v32  ;;  %v6570_v32 = vsub.f32 %v585_v13, %v6547_v0 }
  0xdc   : > { %1329 = vmatpush.msra.mxu3 %v6359_v36  ;;  %1358 = vmatpush.msra.mxu0 %v6481_v34  ;;  %v1411_v36 = vsub.f32 %v6526_v56, %v1410_v1 }
  0xdd   : > { %1129 = vmatpush.msrb.mxu2 %v6416_v6  ;;  %1265 = vmatpush.msrb.mxu1 %v6441_v33  ;;  %v1428_v12 = vand.u32 4294901760, %v6570_v32 }
  0xde   : > { %1269 = vmatmul.f32.vlgmr.msrb.gmra.mxu1 %v6363_v38  ;;  %1331 = vmatpush.msra.mxu3 %v6375_v47  ;;  %v1406_v38 = vand.u32 4294901760, %v1405_v28  ;;  %v1417_v47 = vsub.f32 %v6540_v26, %v1416_v35  ;;  %v1412_v16 = vand.u32 4294901760, %v1411_v36 }
  0xdf   : > { %1360 = vmatpush.msra.mxu0 %v6489_v40  ;;  %1395 = vmatpush.msra.mxu1 %v1394_v48 }
  0xe0   : > { %1131 = vmatpush.msrb.mxu2 %v6430_v60  ;;  %1333 = vmatpush.msra.mxu3 %v6390_v53  ;;  %v6600_v53 = vand.u32 4294901760, %v6579_v18  ;;  %v1418_v13 = vand.u32 4294901760, %v1417_v47 }
  0xe1   : > { %1362 = vmatpush.msra.mxu0 %v6501_v22  ;;  %1401 = vmatpush.msra.mxu1 %v1400_v9 }
  0xe2   : > { %1133 = vmatpush.msrb.mxu2 %v6441_v33  ;;  %1335 = vmatpush.msra.mxu3 %v6400_v54  ;;  %v1424_v54 = vand.u32 4294901760, %v1423_v45  ;;  %v1376_v39 = vsub.f32 %v6579_v18, %v6600_v53 }
  0xe3   : > { %1139 = vmatmul.f32.vlgmr.msrb.gmra.mxu2 %v6387_v51  ;;  %1364 = vmatpush.msra.mxu0 %v6510_v42  ;;  %v1429_v51 = vsub.f32 %v6570_v32, %v1428_v12 }
  0xe4   : > { %1284 = vmatpush.msra.mxu2 %v1153_v52  ;;  %1407 = vmatpush.msra.mxu1 %v1406_v38  ;;  %v1435_v52 = vsub.f32 %v6583_v24, %v1434_v46  ;;  %v6629_v14 = vand.u32 4294901760, %v1376_v39  ;;  %v596_v39 = vld [vmem:[#allocation4 + $0x70] sm:$0xff] }
  0xe5   : > { %1337 = vmatpush.msra.mxu3 %v6416_v6  ;;  %1366 = vmatpush.msra.mxu0 %v6519_v2  ;;  %v604_v6 = vld [vmem:[#allocation4 + $0xb0] sm:$0xff]  ;;  %v1430_v50 = vand.u32 4294901760, %v1429_v51 }
  0xe6   : > { %1288 = vmatpush.msra.mxu2 %v1159_v55  ;;  %1413 = vmatpush.msra.mxu1 %v1412_v16  ;;  %v601_v55 = vld [vmem:[#allocation4 + $0x98] sm:$0xff]  ;;  %v1436_v19 = vand.u32 4294901760, %v1435_v52 }
  0xe7   : > { %1339 = vmatpush.msra.mxu3 %v6430_v60  ;;  %1368 = vmatpush.msra.mxu0 %v6528_v59  ;;  %v6625_v60 = vand.u32 4294901760, %v604_v6 }
  0xe8   : > { %1292 = vmatpush.msra.mxu2 %v1165_v31  ;;  %1419 = vmatpush.msra.mxu1 %v1418_v13  ;;  %v598_v31 = vld [vmem:[#allocation4 + $0x80] sm:$0xff] }
  0xe9   : > { %1341 = vmatpush.msra.mxu3 %v6441_v33  ;;  %1370 = vmatpush.msra.mxu0 %v6547_v0  ;;  %v6634_v33 = vand.u32 4294901760, %v601_v55  ;;  %v6643_v21 = vand.u32 4294901760, %v598_v31 }
  0xea   : > { %1296 = vmatpush.msra.mxu2 %v1171_v61  ;;  %1425 = vmatpush.msra.mxu1 %v1424_v54  ;;  %v6641_v61 = vsub.f32 %v604_v6, %v6625_v60 }
  0xeb   : > { %1343 = vmatmul.f32.vlgmr.msra.gmra.mxu3 %v6348_v11  ;;  %1372 = vmatpush.msra.mxu0 %v6559_v8 }
  0xec   : > { %1490 = vmatpush.msrb.mxu3 %v6481_v34  ;;  %1300 = vmatpush.msra.mxu2 %v1177_v62  ;;  %v6650_v62 = vsub.f32 %v601_v55, %v6634_v33  ;;  %v1629_v20 = vand.u32 4294901760, %v6641_v61  ;;  %v6776_v55 = vand.u32 4294901760, %v596_v39 }
  0xed   : > { %1431 = vmatpush.msra.mxu1 %v1430_v50  ;;  %1378 = vmatmul.f32.vlgmr.msra.gmra.mxu0 %v6629_v14  ;;  %v593_v50 = vld [vmem:[#allocation4 + $0x58] sm:$0xff] }
  0xee   : > { %1492 = vmatpush.msrb.mxu3 %v6489_v40  ;;  %1523 = vmatpush.msrb.mxu0 %v1392_v43  ;;  %v6664_v43 = vand.u32 4294901760, %v592_v58  ;;  %v1635_v57 = vand.u32 4294901760, %v6650_v62  ;;  %v1630_v63 = vsub.f32 %v6641_v61, %v1629_v20 }
  0xef   : > { %1304 = vmatpush.msra.mxu2 %v1183_v27  ;;  %1437 = vmatpush.msra.mxu1 %v1436_v19  ;;  %v6662_v27 = vsub.f32 %v598_v31, %v6643_v21  ;;  %v590_v31 = vld [vmem:[#allocation4 + $0x40] sm:$0xff] }
  0xf0   : > { %1439 = vmatmul.f32.vlgmr.msra.gmra.mxu1 %v6555_v30  ;;  %1494 = vmatpush.msrb.mxu3 %v6501_v22 }
  0xf1   : > { %1527 = vmatpush.msrb.mxu0 %v1398_v7  ;;  %1566 = vmatpush.msrb.mxu1 %v6481_v34  ;;  %v586_v34 = vld [vmem:[#allocation4 + $0x20] sm:$0xff]  ;;  %v6679_v7 = vand.u32 4294901760, %v589_v44 }
  0xf2   : > { %1308 = vmatpush.msra.mxu2 %v1189_v3  ;;  %1496 = vmatpush.msrb.mxu3 %v6510_v42  ;;  %v6674_v3 = vsub.f32 %v595_v25, %v6652_v29 }
  0xf3   : > { %1531 = vmatpush.msrb.mxu0 %v1404_v37  ;;  %1568 = vmatpush.msrb.mxu1 %v6489_v40  ;;  %v6688_v40 = vsub.f32 %v592_v58, %v6664_v43  ;;  %v583_v37 = vld [vmem:[#allocation4 + $0x8] sm:$0xff]  ;;  %v6785_v58 = vand.u32 4294901760, %v593_v50 }
  0xf4   : > { %1312 = vmatpush.msra.mxu2 %v1195_v5  ;;  %1498 = vmatpush.msrb.mxu3 %v6519_v2  ;;  %v1641_v5 = vand.u32 4294901760, %v6662_v27  ;;  %v6707_v48 = vand.u32 4294901760, %v583_v37 }
  0xf5   : > { %1314 = vmatmul.f32.vlgmr.msra.gmra.mxu2 %v6348_v11  ;;  %1535 = vmatpush.msrb.mxu0 %v1410_v1  ;;  %v6693_v11 = vand.u32 4294901760, %v586_v34  ;;  %v6705_v1 = vsub.f32 %v589_v44, %v6679_v7  ;;  %v1653_v28 = vand.u32 4294901760, %v6688_v40 }
  0xf6   : > { %1453 = vmatpush.msrb.mxu2 %v6498_v41  ;;  %1570 = vmatpush.msrb.mxu1 %v6501_v22  ;;  %v1636_v41 = vsub.f32 %v6650_v62, %v1635_v57  ;;  %v1647_v22 = vand.u32 4294901760, %v6674_v3  ;;  %v6731_v36 = vsub.f32 %v583_v37, %v6707_v48  ;;  %v587_v37 = vld [vmem:[#allocation4 + $0x28] sm:$0xff] }
  0xf7   : > { %1500 = vmatpush.msrb.mxu3 %v6528_v59  ;;  %1539 = vmatpush.msrb.mxu0 %v1416_v35  ;;  %v6719_v35 = vsub.f32 %v586_v34, %v6693_v11  ;;  %v1659_v9 = vand.u32 4294901760, %v6705_v1  ;;  %v6792_v34 = vsub.f32 %v596_v39, %v6776_v55 }
  0xf8   : > { %1456 = vmatpush.msrb.mxu2 %v6506_v23  ;;  %1572 = vmatpush.msrb.mxu1 %v6510_v42  ;;  %v1631_v23 = vand.u32 4294901760, %v1630_v63  ;;  %v1642_v42 = vsub.f32 %v6662_v27, %v1641_v5  ;;  %v1671_v16 = vand.u32 4294901760, %v6731_v36  ;;  %v6794_v63 = vand.u32 4294901760, %v590_v31 }
  0xf9   : > { %1502 = vmatpush.msrb.mxu3 %v6547_v0  ;;  %1543 = vmatpush.msrb.mxu0 %v1422_v17  ;;  %v605_v17 = vld [vmem:[#allocation4 + $0xb8] sm:$0xff]  ;;  %v1665_v38 = vand.u32 4294901760, %v6719_v35 }
  0xfa   : > { %1459 = vmatpush.msrb.mxu2 %v6517_v10  ;;  %1574 = vmatpush.msrb.mxu1 %v6519_v2  ;;  %v1637_v10 = vand.u32 4294901760, %v1636_v41  ;;  %v1648_v2 = vsub.f32 %v6674_v3, %v1647_v22  ;;  %v1672_v51 = vsub.f32 %v6731_v36, %v1671_v16 }
  0xfb   : > { %1504 = vmatpush.msrb.mxu3 %v6559_v8  ;;  %1547 = vmatpush.msrb.mxu0 %v1428_v12  ;;  %v602_v12 = vld [vmem:[#allocation4 + $0xa0] sm:$0xff] }
  0xfc   : > { %1462 = vmatpush.msrb.mxu2 %v6526_v56  ;;  %1576 = vmatpush.msrb.mxu1 %v6528_v59  ;;  %v1643_v56 = vand.u32 4294901760, %v1642_v42  ;;  %v1654_v59 = vsub.f32 %v6688_v40, %v1653_v28  ;;  %v1649_v47 = vand.u32 4294901760, %v1648_v2  ;;  %v6804_v42 = vsub.f32 %v593_v50, %v6785_v58 }
  0xfd   : > { %1508 = vmatmul.f32.vlgmr.msrb.gmra.mxu3 %v6600_v53  ;;  %1551 = vmatpush.msrb.mxu0 %v1434_v46  ;;  %v599_v46 = vld [vmem:[#allocation4 + $0x88] sm:$0xff] }
  0xfe   : > { %1632 = vmatpush.msra.mxu3 %v1631_v23  ;;  %1465 = vmatpush.msrb.mxu2 %v6540_v26  ;;  %v1660_v26 = vsub.f32 %v6705_v1, %v1659_v9  ;;  %v1655_v45 = vand.u32 4294901760, %v1654_v59  ;;  %v6767_v52 = vand.u32 4294901760, %v599_v46  ;;  %v1884_v59 = vand.u32 4294901760, %v6792_v34 }
  0xff   : > { %1578 = vmatpush.msrb.mxu1 %v6547_v0  ;;  %1553 = vmatmul.f32.vlgmr.msrb.gmra.mxu0 %v6555_v30  ;;  %v6747_v0 = vand.u32 4294901760, %v605_v17 }
 0x100   : > { %1638 = vmatpush.msra.mxu3 %v1637_v10  ;;  %1690 = vmatpush.msra.mxu0 %v6641_v61  ;;  %v1661_v13 = vand.u32 4294901760, %v1660_v26  ;;  %v6783_v25 = vsub.f32 %v599_v46, %v6767_v52  ;;  %v584_v10 = vld [vmem:[#allocation4 + $0x10] sm:$0xff]  ;;  %v1890_v26 = vand.u32 4294901760, %v6804_v42 }
 0x101   : > { %1468 = vmatpush.msrb.mxu2 %v6553_v4  ;;  %1580 = vmatpush.msrb.mxu1 %v6559_v8  ;;  %v1666_v4 = vsub.f32 %v6719_v35, %v1665_v38  ;;  %v6755_v8 = vand.u32 4294901760, %v602_v12  ;;  %v6764_v54 = vsub.f32 %v605_v17, %v6747_v0  ;;  %v6817_v17 = vsub.f32 %v590_v31, %v6794_v63 }
 0x102   : > { %1582 = vmatmul.f32.vlgmr.msrb.gmra.mxu1 %v6555_v30  ;;  %1644 = vmatpush.msra.mxu3 %v1643_v56  ;;  %v1878_v23 = vand.u32 4294901760, %v6783_v25  ;;  %v6811_v56 = vand.u32 4294901760, %v587_v37 }
 0x103   : > { %1693 = vmatpush.msra.mxu0 %v6650_v62  ;;  %1727 = vmatpush.msra.mxu1 %v6625_v60  ;;  %v6772_v6 = vsub.f32 %v602_v12, %v6755_v8  ;;  %v1866_v19 = vand.u32 4294901760, %v6764_v54  ;;  %v6821_v12 = vand.u32 4294901760, %v584_v10  ;;  %v1896_v46 = vand.u32 4294901760, %v6817_v17 }
 0x104   : > { %1471 = vmatpush.msrb.mxu2 %v6570_v32  ;;  %1650 = vmatpush.msra.mxu3 %v1649_v47  ;;  %v1667_v32 = vand.u32 4294901760, %v1666_v4  ;;  %v6832_v4 = vsub.f32 %v587_v37, %v6811_v56  ;;  %v2067_v37 = vld [vmem:[#allocation4 + $0x1b0] sm:$0xff] }
 0x105   : > { %1696 = vmatpush.msra.mxu0 %v6662_v27  ;;  %1729 = vmatpush.msra.mxu1 %v6634_v33  ;;  %v1872_v44 = vand.u32 4294901760, %v6772_v6  ;;  %v1867_v41 = vsub.f32 %v6764_v54, %v1866_v19  ;;  %v1897_v50 = vsub.f32 %v6817_v17, %v1896_v46  ;;  %v2076_v27 = vld [vmem:[#allocation4 + $0x1f8] sm:$0xff] }
 0x106   : > { %1474 = vmatpush.msrb.mxu2 %v6583_v24  ;;  %1656 = vmatpush.msra.mxu3 %v1655_v45  ;;  %v1673_v24 = vand.u32 4294901760, %v1672_v51  ;;  %v1902_v39 = vand.u32 4294901760, %v6832_v4 }
 0x107   : > { %1477 = vmatmul.f32.vlgmr.msrb.gmra.mxu2 %v6579_v18  ;;  %1699 = vmatpush.msra.mxu0 %v6674_v3  ;;  %v1873_v2 = vsub.f32 %v6772_v6, %v1872_v44  ;;  %v1868_v47 = vand.u32 4294901760, %v1867_v41  ;;  %v1898_v31 = vand.u32 4294901760, %v1897_v50  ;;  %v2073_v3 = vld [vmem:[#allocation4 + $0x1e0] sm:$0xff] }
 0x108   : > { %1595 = vmatpush.msra.mxu2 %v6625_v60  ;;  %1731 = vmatpush.msra.mxu1 %v6643_v21  ;;  %v2061_v41 = vld [vmem:[#allocation4 + $0x180] sm:$0xff] }
 0x109   : > { %1662 = vmatpush.msra.mxu3 %v1661_v13  ;;  %1702 = vmatpush.msra.mxu0 %v6688_v40  ;;  %v1874_v45 = vand.u32 4294901760, %v1873_v2  ;;  %v6842_v13 = vsub.f32 %v584_v10, %v6821_v12  ;;  %v2070_v40 = vld [vmem:[#allocation4 + $0x1c8] sm:$0xff]  ;;  %v6959_v2 = vand.u32 4294901760, %v2061_v41 }
 0x10a   : > { %1597 = vmatpush.msra.mxu2 %v6634_v33  ;;  %1733 = vmatpush.msra.mxu1 %v6652_v29 }
 0x10b   : > { %1668 = vmatpush.msra.mxu3 %v1667_v32  ;;  %1705 = vmatpush.msra.mxu0 %v6705_v1 }
 0x10c   : > { %1599 = vmatpush.msra.mxu2 %v6643_v21  ;;  %1735 = vmatpush.msra.mxu1 %v6664_v43 }
 0x10d   : > { %1674 = vmatpush.msra.mxu3 %v1673_v24  ;;  %1708 = vmatpush.msra.mxu0 %v6719_v35 }
 0x10e   : > { %1601 = vmatpush.msra.mxu2 %v6652_v29  ;;  %1737 = vmatpush.msra.mxu1 %v6679_v7 }
 0x10f   : > { %1676 = vmatmul.f32.vlgmr.msra.gmra.mxu3 %v6555_v30  ;;  %1711 = vmatpush.msra.mxu0 %v6731_v36 }
 0x110   : > { %1803 = vmatpush.msrb.mxu3 %v6625_v60  ;;  %1603 = vmatpush.msra.mxu2 %v6664_v43  ;;  %v1879_v60 = vsub.f32 %v6783_v25, %v1878_v23 }
 0x111   : > { %1739 = vmatpush.msra.mxu1 %v6693_v11  ;;  %1714 = vmatmul.f32.vlgmr.msra.gmra.mxu0 %v6579_v18 }
 0x112   : > { %1805 = vmatpush.msrb.mxu3 %v6634_v33  ;;  %1832 = vmatpush.msrb.mxu0 %v6747_v0  ;;  %v1885_v33 = vsub.f32 %v6792_v34, %v1884_v59  ;;  %v1880_v51 = vand.u32 4294901760, %v1879_v60 }
 0x113   : > { %1605 = vmatpush.msra.mxu2 %v6679_v7  ;;  %1741 = vmatpush.msra.mxu1 %v6707_v48 }
 0x114   : > { %1745 = vmatmul.f32.vlgmr.msra.gmra.mxu1 %v6600_v53  ;;  %1807 = vmatpush.msrb.mxu3 %v6643_v21  ;;  %v1891_v21 = vsub.f32 %v6804_v42, %v1890_v26  ;;  %v1886_v32 = vand.u32 4294901760, %v1885_v33 }
 0x115   : > { %1834 = vmatpush.msrb.mxu0 %v6755_v8  ;;  %1869 = vmatpush.msrb.mxu1 %v1868_v47 }
 0x116   : > { %1607 = vmatpush.msra.mxu2 %v6693_v11  ;;  %1809 = vmatpush.msrb.mxu3 %v6652_v29  ;;  %v1908_v29 = vand.u32 4294901760, %v6842_v13  ;;  %v1892_v24 = vand.u32 4294901760, %v1891_v21 }
 0x117   : > { %1836 = vmatpush.msrb.mxu0 %v6767_v52  ;;  %1875 = vmatpush.msrb.mxu1 %v1874_v45  ;;  %v2083_v45 = vld [vmem:[#allocation4 + $0x230] sm:$0xff] }
 0x118   : > { %1609 = vmatpush.msra.mxu2 %v6707_v48  ;;  %1811 = vmatpush.msrb.mxu3 %v6664_v43  ;;  %v1903_v43 = vsub.f32 %v6832_v4, %v1902_v39  ;;  %v1909_v61 = vsub.f32 %v6842_v13, %v1908_v29 }
 0x119   : > { %1615 = vmatmul.f32.vlgmr.msra.gmra.mxu2 %v6629_v14  ;;  %1838 = vmatpush.msrb.mxu0 %v6776_v55 }
 0x11a   : > { %1760 = vmatpush.msrb.mxu2 %v1629_v20  ;;  %1881 = vmatpush.msrb.mxu1 %v1880_v51  ;;  %v2082_v20 = vld [vmem:[#allocation4 + $0x228] sm:$0xff]  ;;  %v1904_v62 = vand.u32 4294901760, %v1903_v43 }
 0x11b   : > { %1813 = vmatpush.msrb.mxu3 %v6679_v7  ;;  %1840 = vmatpush.msrb.mxu0 %v6785_v58  ;;  %v6879_v7 = vand.u32 4294901760, %v2082_v20 }
 0x11c   : > { %1764 = vmatpush.msrb.mxu2 %v1635_v57  ;;  %1887 = vmatpush.msrb.mxu1 %v1886_v32  ;;  %v2079_v57 = vld [vmem:[#allocation4 + $0x210] sm:$0xff]  ;;  %v2086_v32 = vsel %vm633_vm1, %v6356_v15, 0  ;;  %vm3728_vm1 = vcmask 1015652  }
 0x11d   : > { %1815 = vmatpush.msrb.mxu3 %v6693_v11  ;;  %1842 = vmatpush.msrb.mxu0 %v6794_v63  ;;  %v1910_v11 = vand.u32 4294901760, %v1909_v61  ;;  %v2071_v61 = vld [vmem:[#allocation4 + $0x1d0] sm:$0xff] }
 0x11e   : > { %1768 = vmatpush.msrb.mxu2 %v1641_v5  ;;  %1893 = vmatpush.msrb.mxu1 %v1892_v24  ;;  %v6886_v5 = vand.u32 4294901760, %v2079_v57  ;;  %v2074_v24 = vld [vmem:[#allocation4 + $0x1e8] sm:$0xff] }
 0x11f   : > { %1817 = vmatpush.msrb.mxu3 %v6707_v48  ;;  %1844 = vmatpush.msrb.mxu0 %v6811_v56  ;;  %v6895_v48 = vand.u32 4294901760, %v2076_v27 }
 0x120   : > { %1772 = vmatpush.msrb.mxu2 %v1647_v22  ;;  %1899 = vmatpush.msrb.mxu1 %v1898_v31  ;;  %v6893_v22 = vsub.f32 %v2082_v20, %v6879_v7  ;;  %v7032_v20 = vand.u32 4294901760, %v2074_v24 }
 0x121   : > { %1819 = vmatmul.f32.vlgmr.msrb.gmra.mxu3 %v6555_v30  ;;  %1846 = vmatpush.msrb.mxu0 %v6821_v12 }
 0x122   : > { %1964 = vmatpush.msra.mxu3 %v6747_v0  ;;  %1776 = vmatpush.msrb.mxu2 %v1653_v28  ;;  %v6904_v28 = vand.u32 4294901760, %v2073_v3  ;;  %v2131_v1 = vand.u32 4294901760, %v6893_v22 }
 0x123   : > { %1905 = vmatpush.msrb.mxu1 %v1904_v62  ;;  %1852 = vmatmul.f32.vlgmr.msrb.gmra.mxu0 %v6629_v14  ;;  %v6902_v14 = vsub.f32 %v2079_v57, %v6886_v5 }
 0x124   : > { %1966 = vmatpush.msra.mxu3 %v6755_v8  ;;  %1997 = vmatpush.msra.mxu0 %v1866_v19  ;;  %v6916_v19 = vand.u32 4294901760, %v2070_v40  ;;  %v2132_v36 = vsub.f32 %v6893_v22, %v2131_v1 }
 0x125   : > { %1780 = vmatpush.msrb.mxu2 %v1659_v9  ;;  %1911 = vmatpush.msrb.mxu1 %v1910_v11  ;;  %v6914_v9 = vsub.f32 %v2076_v27, %v6895_v48  ;;  %v2137_v35 = vand.u32 4294901760, %v6902_v14  ;;  %v7041_v11 = vand.u32 4294901760, %v2071_v61 }
 0x126   : > { %1913 = vmatmul.f32.vlgmr.msrb.gmra.mxu1 %v6555_v30  ;;  %1968 = vmatpush.msra.mxu3 %v6767_v52 }
 0x127   : > { %2001 = vmatpush.msra.mxu0 %v1872_v44  ;;  %2040 = vmatpush.msra.mxu1 %v6747_v0  ;;  %v2064_v0 = vld [vmem:[#allocation4 + $0x198] sm:$0xff]  ;;  %v6931_v44 = vand.u32 4294901760, %v2067_v37 }
 0x128   : > { %1784 = vmatpush.msrb.mxu2 %v1665_v38  ;;  %1970 = vmatpush.msra.mxu3 %v6776_v55  ;;  %v6926_v38 = vsub.f32 %v2073_v3, %v6904_v28 }
 0x129   : > { %2005 = vmatpush.msra.mxu0 %v1878_v23  ;;  %2042 = vmatpush.msra.mxu1 %v6755_v8  ;;  %v6940_v8 = vsub.f32 %v2070_v40, %v6916_v19  ;;  %v6945_v23 = vand.u32 4294901760, %v2064_v0  ;;  %v6957_v10 = vsub.f32 %v2067_v37, %v6931_v44  ;;  %v7051_v40 = vsub.f32 %v2074_v24, %v7032_v20 }
 0x12a   : > { %1788 = vmatpush.msrb.mxu2 %v1671_v16  ;;  %1972 = vmatpush.msra.mxu3 %v6785_v58  ;;  %v2143_v16 = vand.u32 4294901760, %v6914_v9 }
 0x12b   : > { %1790 = vmatmul.f32.vlgmr.msrb.gmra.mxu2 %v6555_v30  ;;  %2009 = vmatpush.msra.mxu0 %v1884_v59  ;;  %v2155_v59 = vand.u32 4294901760, %v6940_v8  ;;  %v6971_v47 = vsub.f32 %v2064_v0, %v6945_v23  ;;  %v2161_v60 = vand.u32 4294901760, %v6957_v10  ;;  %v2065_v0 = vld [vmem:[#allocation4 + $0x1a0] sm:$0xff] }
 0x12c   : > { %1927 = vmatpush.msra.mxu2 %v6764_v54  ;;  %2044 = vmatpush.msra.mxu1 %v6767_v52  ;;  %v2138_v54 = vsub.f32 %v6902_v14, %v2137_v35  ;;  %v2149_v52 = vand.u32 4294901760, %v6926_v38 }
 0x12d   : > { %1974 = vmatpush.msra.mxu3 %v6794_v63  ;;  %2013 = vmatpush.msra.mxu0 %v1890_v26  ;;  %v6983_v26 = vsub.f32 %v2061_v41, %v6959_v2 }
 0x12e   : > { %1930 = vmatpush.msra.mxu2 %v6772_v6  ;;  %2046 = vmatpush.msra.mxu1 %v6776_v55  ;;  %v2133_v6 = vand.u32 4294901760, %v2132_v36  ;;  %v2144_v55 = vsub.f32 %v6914_v9, %v2143_v16 }
 0x12f   : > { %1976 = vmatpush.msra.mxu3 %v6811_v56  ;;  %2017 = vmatpush.msra.mxu0 %v1896_v46  ;;  %v2080_v46 = vld [vmem:[#allocation4 + $0x218] sm:$0xff]  ;;  %v2173_v51 = vand.u32 4294901760, %v6983_v26 }
 0x130   : > { %1933 = vmatpush.msra.mxu2 %v6783_v25  ;;  %2048 = vmatpush.msra.mxu1 %v6785_v58  ;;  %v2139_v25 = vand.u32 4294901760, %v2138_v54  ;;  %v2150_v58 = vsub.f32 %v6926_v38, %v2149_v52  ;;  %v7063_v54 = vsub.f32 %v2071_v61, %v7041_v11 }
 0x131   : > { %1978 = vmatpush.msra.mxu3 %v6821_v12  ;;  %2021 = vmatpush.msra.mxu0 %v1902_v39  ;;  %v2077_v39 = vld [vmem:[#allocation4 + $0x200] sm:$0xff]  ;;  %v2174_v50 = vsub.f32 %v6983_v26, %v2173_v51 }
 0x132   : > { %1936 = vmatpush.msra.mxu2 %v6792_v34  ;;  %2050 = vmatpush.msra.mxu1 %v6794_v63  ;;  %v2145_v34 = vand.u32 4294901760, %v2144_v55  ;;  %v2156_v63 = vsub.f32 %v6940_v8, %v2155_v59  ;;  %v2151_v33 = vand.u32 4294901760, %v2150_v58  ;;  %v7021_v15 = vand.u32 4294901760, %v2077_v39 }
 0x133   : > { %1982 = vmatmul.f32.vlgmr.msra.gmra.mxu3 %v6600_v53  ;;  %2025 = vmatpush.msra.mxu0 %v1908_v29  ;;  %v2167_v53 = vand.u32 4294901760, %v6971_v47  ;;  %v7073_v58 = vand.u32 4294901760, %v2065_v0 }
 0x134   : > { %2134 = vmatpush.msrb.mxu3 %v2133_v6  ;;  %1939 = vmatpush.msra.mxu2 %v6804_v42  ;;  %v2162_v42 = vsub.f32 %v6957_v10, %v2161_v60  ;;  %v2157_v21 = vand.u32 4294901760, %v2156_v63  ;;  %v7039_v57 = vsub.f32 %v2077_v39, %v7021_v15  ;;  %v2062_v6 = vld [vmem:[#allocation4 + $0x188] sm:$0xff]  ;;  %v2386_v63 = vand.u32 4294901760, %v7051_v40 }
 0x135   : > { %2052 = vmatpush.msra.mxu1 %v6811_v56  ;;  %2027 = vmatmul.f32.vlgmr.msra.gmra.mxu0 %v6555_v30  ;;  %v6999_v56 = vand.u32 4294901760, %v2083_v45  ;;  %v7097_v39 = vpop.f32.mrf.mxu1 }
 0x136   : > { %2140 = vmatpush.msrb.mxu3 %v2139_v25  ;;  %2192 = vmatpush.msrb.mxu0 %v6893_v22  ;;  %v2380_v41 = vand.u32 4294901760, %v7039_v57 }
 0x137   : > { %1942 = vmatpush.msra.mxu2 %v6817_v17  ;;  %2054 = vmatpush.msra.mxu1 %v6821_v12  ;;  %v2168_v17 = vsub.f32 %v6971_v47, %v2167_v53  ;;  %v7007_v12 = vand.u32 4294901760, %v2080_v46  ;;  %v7018_v29 = vsub.f32 %v2083_v45, %v6999_v56 }
 0x138   : > { %2056 = vmatmul.f32.vlgmr.msra.gmra.mxu1 %v6555_v30  ;;  %2146 = vmatpush.msrb.mxu3 %v2145_v34  ;;  %v2163_v30 = vand.u32 4294901760, %v2162_v42  ;;  %v7077_v34 = vpop.f32.mrf.mxu0  ;;  %v2392_v42 = vand.u32 4294901760, %v7063_v54 }
 0x139   : > { %2195 = vmatpush.msrb.mxu0 %v6902_v14  ;;  %2229 = vmatpush.msrb.mxu1 %v6879_v7  ;;  %v2169_v43 = vand.u32 4294901760, %v2168_v17  ;;  %v7028_v31 = vsub.f32 %v2080_v46, %v7007_v12  ;;  %v2368_v62 = vand.u32 4294901760, %v7018_v29  ;;  %v7085_v46 = vand.u32 4294901760, %v2062_v6 }
 0x13a   : > { %1945 = vmatpush.msra.mxu2 %v6832_v4  ;;  %2152 = vmatpush.msrb.mxu3 %v2151_v33  ;;  %v7023_v4 = vand.u32 4294901760, %v2086_v32  ;;  %v2393_v61 = vsub.f32 %v7063_v54, %v2392_v42 }
 0x13b   : > { %2198 = vmatpush.msrb.mxu0 %v6914_v9  ;;  %2231 = vmatpush.msrb.mxu1 %v6886_v5  ;;  %v2374_v3 = vand.u32 4294901760, %v7028_v31  ;;  %v2369_v36 = vsub.f32 %v7018_v29, %v2368_v62 }
 0x13c   : > { %1948 = vmatpush.msra.mxu2 %v6842_v13  ;;  %2158 = vmatpush.msrb.mxu3 %v2157_v21  ;;  %v2175_v13 = vand.u32 4294901760, %v2174_v50  ;;  %v7044_v27 = vsub.f32 %v2086_v32, %v7023_v4  ;;  %v2387_v32 = vsub.f32 %v7051_v40, %v2386_v63 }
 0x13d   : > { %1951 = vmatmul.f32.vlgmr.msra.gmra.mxu2 %v6579_v18  ;;  %2201 = vmatpush.msrb.mxu0 %v6926_v38  ;;  %v2068_v18 = vld [vmem:[#allocation4 + $0x1b8] sm:$0xff]  ;;  %v2375_v25 = vsub.f32 %v7028_v31, %v2374_v3  ;;  %v2370_v33 = vand.u32 4294901760, %v2369_v36  ;;  %v2075_v38 = vld [vmem:[#allocation4 + $0x1f0] sm:$0xff] }
 0x13e   : > { %2097 = vmatpush.msrb.mxu2 %v6879_v7  ;;  %2233 = vmatpush.msrb.mxu1 %v6895_v48  ;;  %v7053_v37 = vand.u32 4294901760, %v2068_v18  ;;  %v7068_v55 = vand.u32 4294901760, %v7044_v27 }
 0x13f   : > { %2164 = vmatpush.msrb.mxu3 %v2163_v30  ;;  %2204 = vmatpush.msrb.mxu0 %v6940_v8  ;;  %v2376_v21 = vand.u32 4294901760, %v2375_v25  ;;  %v7107_v30 = vpop.f32.mrf.mxu3  ;;  %v666_v24 = vpop.f32.mrf.mxu2 }
 0x140   : > { %2099 = vmatpush.msrb.mxu2 %v6886_v5  ;;  %2235 = vmatpush.msrb.mxu1 %v6904_v28  ;;  %v7081_v45 = vsub.f32 %v2068_v18, %v7053_v37  ;;  %v2115_v17 = vsub.f32 %v7044_v27, %v7068_v55  ;;  %v7133_v25 = vpop.f32.mrf.mxu0  ;;  %v7144_v22 = vpop.f32.mrf.mxu1  ;;  %v728_v8 = vadd.f32 %v7107_v30, %v666_v24 }
 0x141   : > { %2170 = vmatpush.msrb.mxu3 %v2169_v43  ;;  %2207 = vmatpush.msrb.mxu0 %v6957_v10  ;;  %v7112_v43 = vsub.f32 %v2062_v6, %v7085_v46  ;;  %v2394_v6 = vand.u32 4294901760, %v2393_v61 }
 0x142   : > { %2101 = vmatpush.msrb.mxu2 %v6895_v48  ;;  %2237 = vmatpush.msrb.mxu1 %v6916_v19  ;;  %v2398_v50 = vand.u32 4294901760, %v7081_v45 }
 0x143   : > { %2176 = vmatpush.msrb.mxu3 %v2175_v13  ;;  %2210 = vmatpush.msrb.mxu0 %v6971_v47  ;;  %v7120_v13 = vand.u32 4294901760, %v2115_v17  ;;  %v2410_v36 = vand.u32 4294901760, %v7112_v43 }
 0x144   : > { %2103 = vmatpush.msrb.mxu2 %v6904_v28  ;;  %2239 = vmatpush.msrb.mxu1 %v6931_v44 }
 0x145   : > { %2178 = vmatmul.f32.vlgmr.msrb.gmra.mxu3 %v7023_v4  ;;  %2213 = vmatpush.msrb.mxu0 %v6983_v26 }
 0x146   : > { %2305 = vmatpush.msra.mxu3 %v6879_v7  ;;  %2105 = vmatpush.msrb.mxu2 %v6916_v19  ;;  %v2381_v7 = vsub.f32 %v7039_v57, %v2380_v41 }
 0x147   : > { %2241 = vmatpush.msrb.mxu1 %v6945_v23  ;;  %2216 = vmatmul.f32.vlgmr.msrb.gmra.mxu0 %v7044_v27 }
 0x148   : > { %2307 = vmatpush.msra.mxu3 %v6886_v5  ;;  %2334 = vmatpush.msra.mxu0 %v6999_v56  ;;  %v7100_v5 = vsub.f32 %v2065_v0, %v7073_v58  ;;  %v2388_v0 = vand.u32 4294901760, %v2387_v32 }
 0x149   : > { %2107 = vmatpush.msrb.mxu2 %v6931_v44  ;;  %2243 = vmatpush.msrb.mxu1 %v6959_v2  ;;  %v7153_v14 = vpop.f32.mrf.mxu2 }
 0x14a   : > { %2247 = vmatmul.f32.vlgmr.msrb.gmra.mxu1 %v7068_v55  ;;  %2309 = vmatpush.msra.mxu3 %v6895_v48  ;;  %v2382_v48 = vand.u32 4294901760, %v2381_v7  ;;  %v2404_v18 = vand.u32 4294901760, %v7100_v5  ;;  %v7151_v7 = vpop.f32.mrf.mxu3 }
 0x14b   : > { %2336 = vmatpush.msra.mxu0 %v7007_v12  ;;  %2371 = vmatpush.msra.mxu1 %v2370_v33  ;;  %v7192_v10 = vpop.f32.mrf.mxu1 }
 0x14c   : > { %2109 = vmatpush.msrb.mxu2 %v6945_v23  ;;  %2311 = vmatpush.msra.mxu3 %v6904_v28  ;;  %v2399_v28 = vsub.f32 %v7081_v45, %v2398_v50 }
 0x14d   : > { %2338 = vmatpush.msra.mxu0 %v7021_v15  ;;  %2377 = vmatpush.msra.mxu1 %v2376_v21 }
 0x14e   : > { %2111 = vmatpush.msrb.mxu2 %v6959_v2  ;;  %2313 = vmatpush.msra.mxu3 %v6916_v19  ;;  %v2405_v19 = vsub.f32 %v7100_v5, %v2404_v18  ;;  %v2400_v33 = vand.u32 4294901760, %v2399_v28  ;;  %v2066_v28 = vld [vmem:[#allocation4 + $0x1a8] sm:$0xff] }
 0x14f   : > { %2117 = vmatmul.f32.vlgmr.msrb.gmra.mxu2 %v7120_v13  ;;  %2340 = vmatpush.msra.mxu0 %v7032_v20 }
 0x150   : > { %2262 = vmatpush.msra.mxu2 %v2131_v1  ;;  %2383 = vmatpush.msra.mxu1 %v2382_v48  ;;  %v2411_v1 = vsub.f32 %v7112_v43, %v2410_v36  ;;  %v7187_v48 = vand.u32 4294901760, %v2075_v38 }
 0x151   : > { %2315 = vmatpush.msra.mxu3 %v6931_v44  ;;  %2342 = vmatpush.msra.mxu0 %v7041_v11  ;;  %v2084_v44 = vld [vmem:[#allocation4 + $0x238] sm:$0xff] }
 0x152   : > { %2266 = vmatpush.msra.mxu2 %v2137_v35  ;;  %2389 = vmatpush.msra.mxu1 %v2388_v0  ;;  %v2406_v35 = vand.u32 4294901760, %v2405_v19  ;;  %v7159_v21 = vand.u32 4294901760, %v2084_v44  ;;  %v2412_v9 = vand.u32 4294901760, %v2411_v1 }
 0x153   : > { %2317 = vmatpush.msra.mxu3 %v6945_v23  ;;  %2344 = vmatpush.msra.mxu0 %v7053_v37  ;;  %v2081_v23 = vld [vmem:[#allocation4 + $0x220] sm:$0xff] }
 0x154   : > { %2270 = vmatpush.msra.mxu2 %v2143_v16  ;;  %2395 = vmatpush.msra.mxu1 %v2394_v6  ;;  %v2078_v16 = vld [vmem:[#allocation4 + $0x208] sm:$0xff]  ;;  %v7175_v17 = vsub.f32 %v2084_v44, %v7159_v21  ;;  %v2063_v6 = vld [vmem:[#allocation4 + $0x190] sm:$0xff] }
 0x155   : > { %2319 = vmatpush.msra.mxu3 %v6959_v2  ;;  %2346 = vmatpush.msra.mxu0 %v7073_v58  ;;  %v7166_v2 = vand.u32 4294901760, %v2081_v23  ;;  %v7177_v32 = vand.u32 4294901760, %v2078_v16 }
 0x156   : > { %2274 = vmatpush.msra.mxu2 %v2149_v52  ;;  %2401 = vmatpush.msra.mxu1 %v2400_v33  ;;  %v7172_v52 = vpop.f32.mrf.mxu0  ;;  %v2605_v30 = vand.u32 4294901760, %v7175_v17  ;;  %v7203_v61 = vpop.f32.mrf.mxu2 }
 0x157   : > { %2321 = vmatmul.f32.vlgmr.msra.gmra.mxu3 %v7023_v4  ;;  %2348 = vmatpush.msra.mxu0 %v7085_v46  ;;  %v7201_v24 = vsub.f32 %v2078_v16, %v7177_v32 }
 0x158   : > { %2466 = vmatpush.msrb.mxu3 %v6999_v56  ;;  %2278 = vmatpush.msra.mxu2 %v2155_v59  ;;  %v2072_v59 = vld [vmem:[#allocation4 + $0x1d8] sm:$0xff]  ;;  %v2606_v26 = vsub.f32 %v7175_v17, %v2605_v30 }
 0x159   : > { %2407 = vmatpush.msra.mxu1 %v2406_v35  ;;  %2354 = vmatmul.f32.vlgmr.msra.gmra.mxu0 %v7120_v13  ;;  %v7205_v0 = vand.u32 4294901760, %v2072_v59 }
 0x15a   : > { %2468 = vmatpush.msrb.mxu3 %v7007_v12  ;;  %2499 = vmatpush.msrb.mxu0 %v2368_v62  ;;  %v7185_v62 = vsub.f32 %v2081_v23, %v7166_v2 }
 0x15b   : > { %2282 = vmatpush.msra.mxu2 %v2161_v60  ;;  %2413 = vmatpush.msra.mxu1 %v2412_v9  ;;  %v7197_v60 = vpop.f32.mrf.mxu3 }
 0x15c   : > { %2415 = vmatmul.f32.vlgmr.msra.gmra.mxu1 %v7023_v4  ;;  %2470 = vmatpush.msrb.mxu3 %v7021_v15  ;;  %v2611_v47 = vand.u32 4294901760, %v7185_v62 }
 0x15d   : > { %2503 = vmatpush.msrb.mxu0 %v2374_v3  ;;  %2542 = vmatpush.msrb.mxu1 %v6999_v56  ;;  %v2069_v3 = vld [vmem:[#allocation4 + $0x1c0] sm:$0xff]  ;;  %v766_v56 = vadd.f32 %v7077_v34, %v728_v8  ;;  %v2824_v8 = vld [vmem:[#allocation4 + $0x2e8] sm:$0xff] }
 0x15e   : > { %2286 = vmatpush.msra.mxu2 %v2167_v53  ;;  %2472 = vmatpush.msrb.mxu3 %v7032_v20  ;;  %v7216_v53 = vsub.f32 %v2075_v38, %v7187_v48  ;;  %v7221_v34 = vand.u32 4294901760, %v2069_v3 }
 0x15f   : > { %2507 = vmatpush.msrb.mxu0 %v2380_v41  ;;  %2544 = vmatpush.msrb.mxu1 %v7007_v12  ;;  %v1239_v12 = vpop.f32.mrf.mxu0  ;;  %v7230_v41 = vsub.f32 %v2072_v59, %v7205_v0 }
 0x160   : > { %2290 = vmatpush.msra.mxu2 %v2173_v51  ;;  %2474 = vmatpush.msrb.mxu3 %v7041_v11  ;;  %v2617_v51 = vand.u32 4294901760, %v7201_v24  ;;  %v2623_v19 = vand.u32 4294901760, %v7216_v53 }
 0x161   : > { %2292 = vmatmul.f32.vlgmr.msra.gmra.mxu2 %v7023_v4  ;;  %2511 = vmatpush.msrb.mxu0 %v2386_v63  ;;  %v7236_v63 = vand.u32 4294901760, %v2066_v28  ;;  %v2629_v44 = vand.u32 4294901760, %v7230_v41 }
 0x162   : > { %2429 = vmatpush.msrb.mxu2 %v7018_v29  ;;  %2546 = vmatpush.msrb.mxu1 %v7021_v15  ;;  %v797_v29 = vadd.f32 %v7097_v39, %v766_v56  ;;  %v2612_v15 = vsub.f32 %v7185_v62, %v2611_v47  ;;  %v7249_v39 = vsub.f32 %v2069_v3, %v7221_v34  ;;  %v2821_v56 = vld [vmem:[#allocation4 + $0x2d0] sm:$0xff] }
 0x163   : > { %2476 = vmatpush.msrb.mxu3 %v7053_v37  ;;  %2515 = vmatpush.msrb.mxu0 %v2392_v42  ;;  %v1270_v42 = vpop.f32.mrf.mxu1  ;;  %v2618_v1 = vsub.f32 %v7201_v24, %v2617_v51  ;;  %v2624_v23 = vsub.f32 %v7216_v53, %v2623_v19  ;;  %v2630_v38 = vsub.f32 %v7230_v41, %v2629_v44 }
 0x164   : > { %2432 = vmatpush.msrb.mxu2 %v7028_v31  ;;  %2548 = vmatpush.msrb.mxu1 %v7032_v20  ;;  %v842_v33 = vadd.f32 %v7153_v14, %v797_v29  ;;  %v7251_v31 = vand.u32 4294901760, %v2063_v6  ;;  %v2607_v20 = vand.u32 4294901760, %v2606_v26  ;;  %v1201_v14 = vpop.f32.mrf.mxu3  ;;  %v7292_v26 = vand.u32 4294901760, %v2824_v8 }
 0x165   : > { %2478 = vmatpush.msrb.mxu3 %v7073_v58  ;;  %2519 = vmatpush.msrb.mxu0 %v2398_v50  ;;  %v7263_v50 = vsub.f32 %v2066_v28, %v7236_v63 }
 0x166   : > { %2435 = vmatpush.msrb.mxu2 %v7039_v57  ;;  %2550 = vmatpush.msrb.mxu1 %v7041_v11  ;;  %v1140_v35 = vpop.f32.mrf.mxu2  ;;  %v2613_v11 = vand.u32 4294901760, %v2612_v15  ;;  %v7275_v9 = vsub.f32 %v2063_v6, %v7251_v31  ;;  %v2631_v6 = vand.u32 4294901760, %v2630_v38  ;;  %v2818_v15 = vld [vmem:[#allocation4 + $0x2b8] sm:$0xff] }
 0x167   : > { %2480 = vmatpush.msrb.mxu3 %v7085_v46  ;;  %2523 = vmatpush.msrb.mxu0 %v2404_v18  ;;  %v1202_v57 = vadd.f32 %v1201_v14, %v1140_v35  ;;  %v2635_v18 = vand.u32 4294901760, %v7249_v39  ;;  %v7314_v14 = vand.u32 4294901760, %v2818_v15 }
 0x168   : > { %2438 = vmatpush.msrb.mxu2 %v7051_v40  ;;  %2552 = vmatpush.msrb.mxu1 %v7053_v37  ;;  %v871_v40 = vadd.f32 %v7151_v7, %v842_v33  ;;  %v2619_v37 = vand.u32 4294901760, %v2618_v1  ;;  %v2625_v7 = vand.u32 4294901760, %v2624_v23  ;;  %v2815_v1 = vld [vmem:[#allocation4 + $0x2a0] sm:$0xff] }
 0x169   : > { %2484 = vmatmul.f32.vlgmr.msrb.gmra.mxu3 %v7068_v55  ;;  %2527 = vmatpush.msrb.mxu0 %v2410_v36  ;;  %v1240_v16 = vadd.f32 %v1239_v12, %v1202_v57  ;;  %v2641_v36 = vand.u32 4294901760, %v7263_v50  ;;  %v2636_v28 = vsub.f32 %v7249_v39, %v2635_v18  ;;  %v2812_v57 = vld [vmem:[#allocation4 + $0x288] sm:$0xff] }
 0x16a   : > { %2608 = vmatpush.msra.mxu3 %v2607_v20  ;;  %2441 = vmatpush.msrb.mxu2 %v7063_v54  ;;  %v1379_v59 = vpop.f32.mrf.mxu0  ;;  %v7311_v20 = vsub.f32 %v2824_v8, %v7292_v26 }
 0x16b   : > { %2554 = vmatpush.msrb.mxu1 %v7073_v58  ;;  %2529 = vmatmul.f32.vlgmr.msrb.gmra.mxu0 %v7023_v4  ;;  %v1380_v3 = vadd.f32 %v1379_v59, %v871_v40  ;;  %v1271_v54 = vadd.f32 %v1270_v42, %v1240_v16  ;;  %v9072_v58 = vand.u32 4294901760, %v7275_v9  ;;  %v2637_v33 = vand.u32 4294901760, %v2636_v28  ;;  %v2809_v16 = vld [vmem:[#allocation4 + $0x270] sm:$0xff] }
 0x16c   : > { %2614 = vmatpush.msra.mxu3 %v2613_v11  ;;  %2666 = vmatpush.msra.mxu0 %v7175_v17  ;;  %v7323_v11 = vand.u32 4294901760, %v2815_v1  ;;  %v2873_v23 = vand.u32 4294901760, %v7311_v20  ;;  %v7330_v40 = vsub.f32 %v2818_v15, %v7314_v14  ;;  %v7341_v59 = vand.u32 4294901760, %v2809_v16 }
 0x16d   : > { %2444 = vmatpush.msrb.mxu2 %v7081_v45  ;;  %2556 = vmatpush.msrb.mxu1 %v7085_v46  ;;  %v1440_v12 = vpop.f32.mrf.mxu1  ;;  %v2642_v45 = vsub.f32 %v7263_v50, %v2641_v36  ;;  %v7302_v46 = vand.u32 4294901760, %v2821_v56  ;;  %v2648_v42 = vsub.f32 %v7275_v9, %v9072_v58 }
 0x16e   : > { %2558 = vmatmul.f32.vlgmr.msrb.gmra.mxu1 %v7023_v4  ;;  %2620 = vmatpush.msra.mxu3 %v2619_v37  ;;  %v7295_v29 = vadd.f32 %v1440_v12, %v1380_v3  ;;  %v7332_v37 = vand.u32 4294901760, %v2812_v57  ;;  %v7339_v8 = vsub.f32 %v2815_v1, %v7323_v11  ;;  %v2806_v3 = vld [vmem:[#allocation4 + $0x258] sm:$0xff]  ;;  %v2885_v12 = vand.u32 4294901760, %v7330_v40 }
 0x16f   : > { %2669 = vmatpush.msra.mxu0 %v7185_v62  ;;  %2703 = vmatpush.msra.mxu1 %v7159_v21  ;;  %v7319_v35 = vsub.f32 %v2821_v56, %v7302_v46  ;;  %v2874_v56 = vsub.f32 %v7311_v20, %v2873_v23  ;;  %v7367_v1 = vand.u32 4294901760, %v6378_v49 }
 0x170   : > { %2447 = vmatpush.msrb.mxu2 %v7100_v5  ;;  %2626 = vmatpush.msra.mxu3 %v2625_v7  ;;  %v2643_v5 = vand.u32 4294901760, %v2642_v45  ;;  %v2803_v45 = vld [vmem:[#allocation4 + $0x240] sm:$0xff] }
 0x171   : > { %2672 = vmatpush.msra.mxu0 %v7201_v24  ;;  %2705 = vmatpush.msra.mxu1 %v7166_v2  ;;  %v2879_v38 = vand.u32 4294901760, %v7319_v35  ;;  %v965_v24 = vadd.f32 %v7144_v22, %v7133_v25 }
 0x172   : > { %2450 = vmatpush.msrb.mxu2 %v7112_v43  ;;  %2632 = vmatpush.msra.mxu3 %v2631_v6  ;;  %v2649_v43 = vand.u32 4294901760, %v2648_v42  ;;  %v7351_v6 = vsub.f32 %v2812_v57, %v7332_v37  ;;  %v7364_v42 = vsub.f32 %v2809_v16, %v7341_v59  ;;  %v1344_v57 = vpop.f32.mrf.mxu3 }
 0x173   : > { %2453 = vmatmul.f32.vlgmr.msrb.gmra.mxu2 %v7044_v27  ;;  %2675 = vmatpush.msra.mxu0 %v7216_v53  ;;  %v2880_v15 = vsub.f32 %v7319_v35, %v2879_v38  ;;  %v1003_v25 = vadd.f32 %v7203_v61, %v965_v24  ;;  %v2813_v61 = vld [vmem:[#allocation4 + $0x290] sm:$0xff] }
 0x174   : > { %2571 = vmatpush.msra.mxu2 %v7159_v21  ;;  %2707 = vmatpush.msra.mxu1 %v7177_v32  ;;  %v2897_v16 = vand.u32 4294901760, %v7351_v6  ;;  %v2903_v58 = vand.u32 4294901760, %v7364_v42 }
 0x175   : > { %2638 = vmatpush.msra.mxu3 %v2637_v33  ;;  %2678 = vmatpush.msra.mxu0 %v7230_v41  ;;  %v7358_v33 = vand.u32 4294901760, %v2806_v3 }
 0x176   : > { %2573 = vmatpush.msra.mxu2 %v7166_v2  ;;  %2709 = vmatpush.msra.mxu1 %v7187_v48 }
 0x177   : > { %2644 = vmatpush.msra.mxu3 %v2643_v5  ;;  %2681 = vmatpush.msra.mxu0 %v7249_v39  ;;  %v2875_v5 = vand.u32 4294901760, %v2874_v56  ;;  %v7384_v56 = vsub.f32 %v2806_v3, %v7358_v33 }
 0x178   : > { %2575 = vmatpush.msra.mxu2 %v7177_v32  ;;  %2711 = vmatpush.msra.mxu1 %v7205_v0  ;;  %v1315_v7 = vpop.f32.mrf.mxu2 }
 0x179   : > { %2650 = vmatpush.msra.mxu3 %v2649_v43  ;;  %2684 = vmatpush.msra.mxu0 %v7263_v50  ;;  %v1316_v28 = vadd.f32 %v1315_v7, %v1271_v54  ;;  %v2891_v54 = vand.u32 4294901760, %v7339_v8  ;;  %v7371_v43 = vand.u32 4294901760, %v2803_v45 }
 0x17a   : > { %2577 = vmatpush.msra.mxu2 %v7187_v48  ;;  %2713 = vmatpush.msra.mxu1 %v7221_v34 }
 0x17b   : > { %2652 = vmatmul.f32.vlgmr.msra.gmra.mxu3 %v7023_v4  ;;  %2687 = vmatpush.msra.mxu0 %v7275_v9  ;;  %v7379_v7 = vadd.f32 %v1344_v57, %v1316_v28  ;;  %v7394_v28 = vsub.f32 %v6378_v49, %v7367_v1  ;;  %v7398_v3 = vsub.f32 %v2803_v45, %v7371_v43  ;;  %v2909_v49 = vand.u32 4294901760, %v7384_v56 }
 0x17c   : > { %2779 = vmatpush.msrb.mxu3 %v7159_v21  ;;  %2579 = vmatpush.msra.mxu2 %v7205_v0  ;;  %v2886_v21 = vsub.f32 %v7330_v40, %v2885_v12  ;;  %v1554_v53 = vpop.f32.mrf.mxu0 }
 0x17d   : > { %2715 = vmatpush.msra.mxu1 %v7236_v63  ;;  %2690 = vmatmul.f32.vlgmr.msra.gmra.mxu0 %v7044_v27  ;;  %v2881_v27 = vand.u32 4294901760, %v2880_v15  ;;  %v2904_v15 = vsub.f32 %v7364_v42, %v2903_v58 }
 0x17e   : > { %2781 = vmatpush.msrb.mxu3 %v7166_v2  ;;  %2839 = vmatpush.msrb.mxu0 %v7292_v26  ;;  %v2892_v2 = vsub.f32 %v7339_v8, %v2891_v54 }
 0x17f   : > { %2581 = vmatpush.msra.mxu2 %v7221_v34  ;;  %2717 = vmatpush.msra.mxu1 %v7251_v31  ;;  %v1583_v39 = vpop.f32.mrf.mxu1 }
 0x180   : > { %2721 = vmatmul.f32.vlgmr.msra.gmra.mxu1 %v7068_v55  ;;  %2783 = vmatpush.msrb.mxu3 %v7177_v32  ;;  %v2887_v55 = vand.u32 4294901760, %v2886_v21  ;;  %v2898_v32 = vsub.f32 %v7351_v6, %v2897_v16  ;;  %v2893_v45 = vand.u32 4294901760, %v2892_v2  ;;  %v2825_v21 = vld [vmem:[#allocation4 + $0x2f0] sm:$0xff]  ;;  %v1509_v2 = vpop.f32.mrf.mxu3 }
 0x181   : > { %2841 = vmatpush.msrb.mxu0 %v7302_v46  ;;  %2876 = vmatpush.msrb.mxu1 %v2875_v5  ;;  %v2915_v5 = vand.u32 4294901760, %v7398_v3 }
 0x182   : > { %2583 = vmatpush.msra.mxu2 %v7236_v63  ;;  %2785 = vmatpush.msrb.mxu3 %v7187_v48  ;;  %v7415_v48 = vand.u32 4294901760, %v7394_v28  ;;  %v2899_v57 = vand.u32 4294901760, %v2898_v32  ;;  %v2819_v32 = vld [vmem:[#allocation4 + $0x2c0] sm:$0xff] }
 0x183   : > { %2843 = vmatpush.msrb.mxu0 %v7314_v14  ;;  %2882 = vmatpush.msrb.mxu1 %v2881_v27  ;;  %v7465_v41 = vand.u32 4294901760, %v2819_v32 }
 0x184   : > { %2585 = vmatpush.msra.mxu2 %v7251_v31  ;;  %2787 = vmatpush.msrb.mxu3 %v7205_v0  ;;  %v2905_v0 = vand.u32 4294901760, %v2904_v15  ;;  %v2857_v17 = vsub.f32 %v7394_v28, %v7415_v48 }
 0x185   : > { %2591 = vmatmul.f32.vlgmr.msra.gmra.mxu2 %v7120_v13  ;;  %2845 = vmatpush.msrb.mxu0 %v7323_v11  ;;  %v2910_v13 = vsub.f32 %v7384_v56, %v2909_v49 }
 0x186   : > { %2736 = vmatpush.msrb.mxu2 %v2605_v30  ;;  %2888 = vmatpush.msrb.mxu1 %v2887_v55  ;;  %v2916_v30 = vsub.f32 %v7398_v3, %v2915_v5 }
 0x187   : > { %2789 = vmatpush.msrb.mxu3 %v7221_v34  ;;  %2847 = vmatpush.msrb.mxu0 %v7332_v37  ;;  %v7438_v34 = vand.u32 4294901760, %v2825_v21 }
 0x188   : > { %2740 = vmatpush.msrb.mxu2 %v2611_v47  ;;  %2894 = vmatpush.msrb.mxu1 %v2893_v45  ;;  %v2911_v47 = vand.u32 4294901760, %v2910_v13  ;;  %v2816_v45 = vld [vmem:[#allocation4 + $0x2a8] sm:$0xff]  ;;  %v7492_v13 = vand.u32 4294901760, %v2813_v61 }
 0x189   : > { %2791 = vmatpush.msrb.mxu3 %v7236_v63  ;;  %2849 = vmatpush.msrb.mxu0 %v7341_v59  ;;  %v2822_v63 = vld [vmem:[#allocation4 + $0x2d8] sm:$0xff]  ;;  %v7458_v22 = vsub.f32 %v2825_v21, %v7438_v34  ;;  %v7474_v15 = vand.u32 4294901760, %v2816_v45 }
 0x18a   : > { %2744 = vmatpush.msrb.mxu2 %v2617_v51  ;;  %2900 = vmatpush.msrb.mxu1 %v2899_v57  ;;  %v1478_v62 = vpop.f32.mrf.mxu2  ;;  %v7447_v51 = vand.u32 4294901760, %v2857_v17  ;;  %v7490_v57 = vsub.f32 %v2819_v32, %v7465_v41 }
 0x18b   : > { %2793 = vmatpush.msrb.mxu3 %v7251_v31  ;;  %2851 = vmatpush.msrb.mxu0 %v7358_v33  ;;  %v1479_v27 = vadd.f32 %v1478_v62, %v7295_v29  ;;  %v2917_v31 = vand.u32 4294901760, %v2916_v30  ;;  %v7540_v62 = vld [vmem:[%s7479_s14 + $0x1a] sm:$0xff] }
 0x18c   : > { %2748 = vmatpush.msrb.mxu2 %v2623_v19  ;;  %2906 = vmatpush.msrb.mxu1 %v2905_v0  ;;  %v7452_v19 = vand.u32 4294901760, %v2822_v63  ;;  %v2807_v0 = vld [vmem:[#allocation4 + $0x260] sm:$0xff]  ;;  %v3122_v21 = vand.u32 4294901760, %v7490_v57 }
 0x18d   : > { %2795 = vmatmul.f32.vlgmr.msrb.gmra.mxu3 %v7023_v4  ;;  %2853 = vmatpush.msrb.mxu0 %v7371_v43  ;;  %v1510_v55 = vadd.f32 %v1509_v2, %v1479_v27  ;;  %v7531_v30 = vand.u32 4294901760, %v2807_v0 }
 0x18e   : > { %2971 = vmatpush.msra.mxu3 %v7292_v26  ;;  %2752 = vmatpush.msrb.mxu2 %v2629_v44  ;;  %v7472_v44 = vsub.f32 %v2822_v63, %v7452_v19  ;;  %v7519_v17 = vpop.f32.mrf.mxu0  ;;  %v3123_v27 = vsub.f32 %v7490_v57, %v3122_v21 }
 0x18f   : > { %2912 = vmatpush.msrb.mxu1 %v2911_v47  ;;  %2859 = vmatmul.f32.vlgmr.msrb.gmra.mxu0 %v7447_v51  ;;  %v7460_v29 = vadd.f32 %v1554_v53, %v1510_v55 }
 0x190   : > { %2973 = vmatpush.msra.mxu3 %v7302_v46  ;;  %3004 = vmatpush.msra.mxu0 %v2873_v23  ;;  %v1034_v23 = vadd.f32 %v7197_v60, %v1003_v25  ;;  %v2810_v60 = vld [vmem:[#allocation4 + $0x278] sm:$0xff]  ;;  %v3116_v50 = vand.u32 4294901760, %v7472_v44 }
 0x191   : > { %2756 = vmatpush.msrb.mxu2 %v2635_v18  ;;  %2918 = vmatpush.msrb.mxu1 %v2917_v31  ;;  %v3110_v18 = vand.u32 4294901760, %v7458_v22  ;;  %v7577_v25 = vadd.f32 %v1583_v39, %v7460_v29 }
 0x192   : > { %2920 = vmatmul.f32.vlgmr.msrb.gmra.mxu1 %v7367_v1  ;;  %2975 = vmatpush.msra.mxu3 %v7314_v14  ;;  %v1677_v53 = vpop.f32.mrf.mxu3 }
 0x193   : > { %3008 = vmatpush.msra.mxu0 %v2879_v38  ;;  %3047 = vmatpush.msra.mxu1 %v7292_v26  ;;  %v9084_v26 = vand.u32 4294901760, %v7275_v9  ;;  %v7505_v38 = vld [vmem:[%s7479_s14 + $0x2] sm:$0xff]  ;;  %v3111_v9 = vsub.f32 %v7458_v22, %v3110_v18 }
 0x194   : > { %2760 = vmatpush.msrb.mxu2 %v2641_v36  ;;  %2977 = vmatpush.msra.mxu3 %v7323_v11  ;;  %v7502_v36 = vsub.f32 %v2816_v45, %v7474_v15 }
 0x195   : > { %3012 = vmatpush.msra.mxu0 %v2885_v12  ;;  %3049 = vmatpush.msra.mxu1 %v7302_v46  ;;  %v7513_v46 = vand.u32 4294901760, %v2810_v60  ;;  %v1079_v12 = vadd.f32 %v7172_v52, %v1034_v23  ;;  %v3645_v52 = vrot.slane %v7505_v38, 1  ;;  %v3112_v47 = vand.u32 4294901760, %v3111_v9 }
 0x196   : > { %2764 = vmatpush.msrb.mxu2 %v9084_v26  ;;  %2979 = vmatpush.msra.mxu3 %v7332_v37  ;;  %v3656_v9 = vrot.slane %v7505_v38, 2 }
 0x197   : > { %2766 = vmatmul.f32.vlgmr.msrb.gmra.mxu2 %v7023_v4  ;;  %3016 = vmatpush.msra.mxu0 %v2891_v54  ;;  %v7522_v4 = vsub.f32 %v2813_v61, %v7492_v13  ;;  %v7528_v54 = vld [vmem:[%s7479_s14 + $0x32] sm:$0xff]  ;;  %v1108_v63 = vadd.f32 %v7192_v10, %v1079_v12  ;;  %v7562_v10 = vld [vmem:[%s7479_s14 + $0x4a] sm:$0xff]  ;;  %v3657_v12 = vrot.slane %v7540_v62, 1 }
 0x198   : > { %2934 = vmatpush.msra.mxu2 %v7311_v20  ;;  %3051 = vmatpush.msra.mxu1 %v7314_v14  ;;  %v3117_v20 = vsub.f32 %v7472_v44, %v3116_v50  ;;  %v3128_v14 = vand.u32 4294901760, %v7502_v36  ;;  %v3647_v2 = vrot.slane %v7528_v54, 7  ;;  %v3649_v23 = vrot.slane %v7562_v10, 6 }
 0x199   : > { %2981 = vmatpush.msra.mxu3 %v7341_v59  ;;  %3020 = vmatpush.msra.mxu0 %v2897_v16  ;;  %v2804_v16 = vld [vmem:[#allocation4 + $0x248] sm:$0xff] }
 0x19a   : > { %2937 = vmatpush.msra.mxu2 %v7319_v35  ;;  %3053 = vmatpush.msra.mxu1 %v7323_v11  ;;  %v7545_v35 = vpop.f32.mrf.mxu1  ;;  %v7548_v11 = vsub.f32 %v2810_v60, %v7513_v46  ;;  %v7569_v31 = vand.u32 4294901760, %v2804_v16  ;;  %v3118_v32 = vand.u32 4294901760, %v3117_v20 }
 0x19b   : > { %2983 = vmatpush.msra.mxu3 %v7358_v33  ;;  %3024 = vmatpush.msra.mxu0 %v2903_v58  ;;  %v9082_v58 = vand.u32 4294901760, %v7522_v4 }
 0x19c   : > { %2940 = vmatpush.msra.mxu2 %v7330_v40  ;;  %3055 = vmatpush.msra.mxu1 %v7332_v37  ;;  %v1616_v24 = vpop.f32.mrf.mxu2  ;;  %v3646_v40 = vsel %vm3585_vm2, %v7540_v62, %v3645_v52  ;;  %v7567_v37 = vsub.f32 %v2807_v0, %v7531_v30  ;;  %v9078_v45 = vand.u32 4294901760, %v7548_v11  ;;  %v7593_v39 = vsub.f32 %v2804_v16, %v7569_v31  ;;  %v2826_v0 = vld [vmem:[#allocation4 + $0x2f8] sm:$0xff]  ;;  %v2823_v52 = vld [vmem:[#allocation4 + $0x2e0] sm:$0xff] }
 0x19d   : > { %2985 = vmatpush.msra.mxu3 %v7371_v43  ;;  %3028 = vmatpush.msra.mxu0 %v2909_v49  ;;  %v1617_v55 = vadd.f32 %v1616_v24, %v1108_v63  ;;  %v3129_v49 = vsub.f32 %v7502_v36, %v3128_v14  ;;  %v7614_v63 = vand.u32 4294901760, %v2826_v0 }
 0x19e   : > { %2943 = vmatpush.msra.mxu2 %v7339_v8  ;;  %3057 = vmatpush.msra.mxu1 %v7341_v59  ;;  %v3124_v8 = vand.u32 4294901760, %v3123_v27  ;;  %v3648_v59 = vsel %vm3588_vm3, %v3647_v2, %v3646_v40  ;;  %v9076_v29 = vand.u32 4294901760, %v7567_v37  ;;  %v7617_v27 = vand.u32 4294901760, %v2823_v52 }
 0x19f   : > { %2989 = vmatmul.f32.vlgmr.msra.gmra.mxu3 %v7415_v48  ;;  %3032 = vmatpush.msra.mxu0 %v2915_v5  ;;  %v1678_v61 = vadd.f32 %v1677_v53, %v1617_v55  ;;  %v3135_v5 = vsub.f32 %v7522_v4, %v9082_v58  ;;  %v3130_v26 = vand.u32 4294901760, %v3129_v49  ;;  %v3658_v40 = vsel %vm3585_vm2, %v3657_v12, %v3656_v9  ;;  %v2820_v55 = vld [vmem:[#allocation4 + $0x2c8] sm:$0xff] }
 0x1a0   : > { %3113 = vmatpush.msrb.mxu3 %v3112_v47  ;;  %2946 = vmatpush.msra.mxu2 %v7351_v6  ;;  %v1853_v60 = vpop.f32.mrf.mxu0  ;;  %v9075_v47 = vand.u32 4294901760, %v7593_v39  ;;  %v3660_v49 = vrot.slane %v7562_v10, 7  ;;  %v7632_v53 = vsub.f32 %v2826_v0, %v7614_v63  ;;  %v3668_v9 = vrot.slane %v7540_v62, 2 }
 0x1a1   : > { %3059 = vmatpush.msra.mxu1 %v7358_v33  ;;  %3034 = vmatmul.f32.vlgmr.msra.gmra.mxu0 %v7367_v1  ;;  %v1854_v6 = vadd.f32 %v1853_v60, %v7379_v7  ;;  %v3141_v33 = vsub.f32 %v7548_v11, %v9078_v45  ;;  %v3650_v7 = vsel %vm3591_vm4, %v3649_v23, %v3648_v59  ;;  %v2814_v59 = vld [vmem:[#allocation4 + $0x298] sm:$0xff]  ;;  %v3544_v23 = vld [vmem:[%s9064_s3] sm:$0xf]  ;;  %v3598_v12 = vrot.slane %v7505_v38, 5 }
 0x1a2   : > { %3119 = vmatpush.msrb.mxu3 %v3118_v32  ;;  %3171 = vmatpush.msrb.mxu0 %v7458_v22  ;;  %v1716_v2 = vadd.f32 %v7519_v17, %v1678_v61  ;;  %v3153_v17 = vsub.f32 %v7593_v39, %v9075_v47  ;;  %v2817_v61 = vld [vmem:[#allocation4 + $0x2b0] sm:$0xff]  ;;  %v7699_v47 = vld [vmem:[%s7479_s14 + $0xa] sm:$0xff] }
 0x1a3   : > { %2949 = vmatpush.msra.mxu2 %v7364_v42  ;;  %3061 = vmatpush.msra.mxu1 %v7371_v43  ;;  %v1914_v20 = vpop.f32.mrf.mxu1  ;;  %v3136_v42 = vand.u32 4294901760, %v3135_v5  ;;  %v3147_v43 = vsub.f32 %v7567_v37, %v9076_v29  ;;  %v3142_v24 = vand.u32 4294901760, %v3141_v33  ;;  %v3667_v33 = vrot.slane %v7505_v38, 3  ;;  %v7702_v29 = vld [vmem:[%s7479_s14 + $0x22] sm:$0xff] }
 0x1a4   : > { %3063 = vmatmul.f32.vlgmr.msra.gmra.mxu1 %v7367_v1  ;;  %3125 = vmatpush.msrb.mxu3 %v3124_v8  ;;  %v7606_v16 = vadd.f32 %v1914_v20, %v1854_v6  ;;  %v7642_v8 = vand.u32 4294901760, %v2820_v55  ;;  %v3154_v60 = vand.u32 4294901760, %v3153_v17  ;;  %v9080_v6 = vand.u32 4294901760, %v7632_v53 }
 0x1a5   : > { %3174 = vmatpush.msrb.mxu0 %v7472_v44  ;;  %3208 = vmatpush.msrb.mxu1 %v7438_v34  ;;  %v3148_v32 = vand.u32 4294901760, %v3147_v43 }
 0x1a6   : > { %2952 = vmatpush.msra.mxu2 %v7384_v56  ;;  %3131 = vmatpush.msrb.mxu3 %v3130_v26  ;;  %v1747_v56 = vadd.f32 %v7545_v35, %v1716_v2  ;;  %v7639_v35 = vsub.f32 %v2823_v52, %v7617_v27  ;;  %v7652_v26 = vand.u32 4294901760, %v2817_v61  ;;  %v2811_v52 = vld [vmem:[#allocation4 + $0x280] sm:$0xff]  ;;  %v7664_v43 = vsub.f32 %v2820_v55, %v7642_v8  ;;  %v2808_v55 = vld [vmem:[#allocation4 + $0x268] sm:$0xff] }
 0x1a7   : > { %3177 = vmatpush.msrb.mxu0 %v7490_v57  ;;  %3210 = vmatpush.msrb.mxu1 %v7452_v19  ;;  %v7666_v2 = vand.u32 4294901760, %v2814_v59  ;;  %v3623_v57 = vrot.slane %v7540_v62, 6 }
 0x1a8   : > { %3651 = vrot.lane.b32.xlu0 %v3650_v7, %s6024_s15  ;;  %2955 = vmatpush.msra.mxu2 %v7398_v3  ;;  %v3659_v3 = vsel %vm3588_vm3, %v7528_v54, %v3658_v40  ;;  %v9077_v0 = vand.u32 4294901760, %v7639_v35  ;;  %v9073_v7 = vmov 0   ;;  %v1820_v40 = vpop.f32.mrf.mxu3  ;;  %v7674_v17 = vsub.f32 %v2817_v61, %v7652_v26 }
 0x1a9   : > { %2958 = vmatmul.f32.vlgmr.msra.gmra.mxu2 %v7394_v28  ;;  %3137 = vmatpush.msrb.mxu3 %v3136_v42  ;;  %v3661_v5 = vsel %vm3591_vm4, %v3660_v49, %v3659_v3  ;;  %v3599_v42 = vrot.slane %v7540_v62, 4  ;;  %v7676_v49 = vand.u32 4294901760, %v2811_v52  ;;  %v3601_v61 = vrot.slane %v7528_v54, 3 }
 0x1aa   : > { %3076 = vmatpush.msrb.mxu2 %v7438_v34  ;;  %3180 = vmatpush.msrb.mxu0 %v7502_v36  ;;  %v3625_v36 = vrot.slane %v7528_v54, 5 }
 0x1ab   : > { %3212 = vmatpush.msrb.mxu1 %v7465_v41  ;;  %3143 = vmatpush.msrb.mxu3 %v3142_v24 }
 0x1ac   : > { %3078 = vmatpush.msrb.mxu2 %v7452_v19  ;;  %3183 = vmatpush.msrb.mxu0 %v7522_v4 }
 0x1ad   : > { %3214 = vmatpush.msrb.mxu1 %v7474_v15  ;;  %3149 = vmatpush.msrb.mxu3 %v3148_v32  ;;  %v3348_v32 = vsub.f32 %v7632_v53, %v9080_v6 }
 0x1ae   : > { %3080 = vmatpush.msrb.mxu2 %v7465_v41  ;;  %3186 = vmatpush.msrb.mxu0 %v7548_v11  ;;  %v1791_v20 = vpop.f32.mrf.mxu2 }
 0x1af   : > { %3216 = vmatpush.msrb.mxu1 %v7492_v13  ;;  %5976 = vset.pattern.permute.xlu1 %v9073_v7  ;;  %v1792_v24 = vadd.f32 %v1791_v20, %v1747_v56  ;;  %v3354_v56 = vsub.f32 %v7639_v35, %v9077_v0  ;;  %v3600_v20 = vsel %vm3585_vm2, %v3599_v42, %v3598_v12  ;;  %v7696_v7 = vand.u32 4294901760, %v2808_v55 }
 0x1b0   : > { %3547 = vperm.xlu1 %5976, %v3544_v23   ;;  %3082 = vmatpush.msrb.mxu2 %v7474_v15  ;;  %v3670_v23 = vrot.slane %v7528_v54, 1  ;;  %v3602_v0 = vsel %vm3588_vm3, %v3601_v61, %v3600_v20 }
 0x1b1   : > { %3155 = vmatpush.msrb.mxu3 %v3154_v60  ;;  %3189 = vmatpush.msrb.mxu0 %v7567_v37  ;;  %v7678_v3 = vadd.f32 %v1820_v40, %v1792_v24  ;;  %v3669_v60 = vsel %vm3585_vm2, %v3668_v9, %v3667_v33  ;;  %v9079_v24 = vand.u32 4294901760, %v7664_v43  ;;  %v2805_v40 = vld [vmem:[#allocation4 + $0x250] sm:$0xff]  ;;  %v3349_v33 = vand.u32 4294901760, %v3348_v32 }
 0x1b2   : > { %3218 = vmatpush.msrb.mxu1 %v7513_v46  ;;  %3662 = vrot.lane.b32.xlu0 %v3661_v5, %s6026_s19  ;;  %v7692_v5 = vsub.f32 %v2814_v59, %v7666_v2  ;;  %v3603_v59 = vrot.slane %v7562_v10, 2  ;;  %v9081_v9 = vand.u32 4294901760, %v7674_v17  ;;  %v3355_v12 = vand.u32 4294901760, %v3354_v56  ;;  %v7724_v32 = vld [vmem:[%s7479_s14 + $0x3a] sm:$0xff]  ;;  %s6050_s19 = smov 103  }
 0x1b3   : > { %3157 = vmatmul.f32.vlgmr.msrb.gmra.mxu3 %v7367_v1  ;;  %3084 = vmatpush.msrb.mxu2 %v7492_v13  ;;  %v3671_v42 = vsel %vm3588_vm3, %v3670_v23, %v3669_v60  ;;  %v7715_v45 = vand.u32 4294901760, %v2805_v40  ;;  %v3694_v56 = vrot.slane %v7699_v47, 5  ;;  %v3695_v23 = vrot.slane %v7702_v29, 4 }
 0x1b4   : > { %3284 = vmatpush.msra.mxu3 %v7438_v34  ;;  %3192 = vmatpush.msrb.mxu0 %v7593_v39  ;;  %v7709_v34 = vsub.f32 %v2811_v52, %v7676_v49  ;;  %v3360_v52 = vsub.f32 %v7664_v43, %v9079_v24  ;;  %v7731_v61 = vsub.f32 %v2808_v55, %v7696_v7  ;;  %v3697_v55 = vrot.slane %v7724_v32, 3 }
 0x1b5   : > { %3220 = vmatpush.msrb.mxu1 %v7531_v30  ;;  %3195 = vmatmul.f32.vlgmr.msrb.gmra.mxu0 %v7394_v28  ;;  %v3672_v60 = vsel %vm3591_vm4, %v7562_v10, %v3671_v42  ;;  %v3604_v20 = vsel %vm3591_vm4, %v3603_v59, %v3602_v0  ;;  %v3366_v24 = vsub.f32 %v7674_v17, %v9081_v9  ;;  %v3707_v42 = vrot.slane %v7702_v29, 5 }
 0x1b6   : > { %3286 = vmatpush.msra.mxu3 %v7452_v19  ;;  %3313 = vmatpush.msra.mxu0 %v7614_v63  ;;  %v9083_v19 = vand.u32 4294901760, %v7692_v5  ;;  %v3377_v6 = vand.u32 4294901760, %v7709_v34  ;;  %v7750_v0 = vsub.f32 %v2805_v40, %v7715_v45  ;;  %v3361_v59 = vand.u32 4294901760, %v3360_v52 }
 0x1b7   : > { %3086 = vmatpush.msrb.mxu2 %v7513_v46  ;;  %3222 = vmatpush.msrb.mxu1 %v7569_v31  ;;  %v3383_v58 = vand.u32 4294901760, %v7731_v61  ;;  %v3367_v40 = vand.u32 4294901760, %v3366_v24 }
 0x1b8   : > { %3226 = vmatmul.f32.vlgmr.msrb.gmra.mxu1 %v7415_v48  ;;  %3288 = vmatpush.msra.mxu3 %v7465_v41  ;;  %v7744_v41 = vld [vmem:[%s7479_s14 + $0x52] sm:$0xff]  ;;  %v3372_v9 = vsub.f32 %v7692_v5, %v9083_v19  ;;  %v3709_v19 = vrot.slane %v7724_v32, 4  ;;  %s6040_s14 = smov 106  }
 0x1b9   : > { %3315 = vmatpush.msra.mxu0 %v7617_v27  ;;  %3350 = vmatpush.msra.mxu1 %v3349_v33  ;;  %v3706_v33 = vrot.slane %v7699_v47, 6  ;;  %v3699_v52 = vrot.slane %v7744_v41, 2  ;;  %v3711_v22 = vrot.slane %v7744_v41, 3 }
 0x1ba   : > { %3088 = vmatpush.msrb.mxu2 %v7531_v30  ;;  %3290 = vmatpush.msra.mxu3 %v7474_v15  ;;  %v3696_v15 = vsel %vm3585_vm2, %v3695_v23, %v3694_v56  ;;  %v3373_v24 = vand.u32 4294901760, %v3372_v9 }
 0x1bb   : > { %3317 = vmatpush.msra.mxu0 %v7642_v8  ;;  %3356 = vmatpush.msra.mxu1 %v3355_v12  ;;  %v3378_v12 = vsub.f32 %v7709_v34, %v3377_v6  ;;  %v3698_v56 = vsel %vm3588_vm3, %v3697_v55, %v3696_v15  ;;  %v3708_v23 = vsel %vm3585_vm2, %v3707_v42, %v3706_v33  ;;  %v3610_v33 = vrot.slane %v7505_v38, 6  ;;  %v2028_v15 = vpop.f32.mrf.mxu0 }
 0x1bc   : > { %3673 = vrot.lane.b32.xlu1 %v3672_v60, %s6027_s20  ;;  %3090 = vmatpush.msrb.mxu2 %v7569_v31  ;;  %v3389_v60 = vand.u32 4294901760, %v7750_v0  ;;  %v3700_v55 = vsel %vm3591_vm4, %v3699_v52, %v3698_v56  ;;  %v3710_v9 = vsel %vm3588_vm3, %v3709_v19, %v3708_v23  ;;  %v3611_v42 = vrot.slane %v7540_v62, 5  ;;  %s6042_s20 = smov 91  }
 0x1bd   : > { %3605 = vrot.lane.b32.xlu0 %v3604_v20, %s6028_s21  ;;  %3096 = vmatmul.f32.vlgmr.msrb.gmra.mxu2 %v7447_v51  ;;  %v3379_v20 = vand.u32 4294901760, %v3378_v12  ;;  %v3712_v19 = vsel %vm3591_vm4, %v3711_v22, %v3710_v9  ;;  %v9086_v9 = vand.u32 4294901760, %v7632_v53  ;;  %s6043_s21 = smov 92  }
 0x1be   : > { %3241 = vmatpush.msra.mxu2 %v3110_v18  ;;  %3292 = vmatpush.msra.mxu3 %v7492_v13  ;;  %v3384_v18 = vsub.f32 %v7731_v61, %v3383_v58 }
 0x1bf   : > { %3319 = vmatpush.msra.mxu0 %v7652_v26  ;;  %3362 = vmatpush.msra.mxu1 %v3361_v59  ;;  %v3613_v59 = vrot.slane %v7528_v54, 4 }
 0x1c0   : > { %3245 = vmatpush.msra.mxu2 %v3116_v50  ;;  %3294 = vmatpush.msra.mxu3 %v7513_v46  ;;  %v1952_v13 = vpop.f32.mrf.mxu2  ;;  %v3390_v50 = vsub.f32 %v7750_v0, %v3389_v60  ;;  %v1983_v46 = vpop.f32.mrf.mxu3  ;;  %v3385_v12 = vand.u32 4294901760, %v3384_v18 }
 0x1c1   : > { %3321 = vmatpush.msra.mxu0 %v7666_v2  ;;  %3368 = vmatpush.msra.mxu1 %v3367_v40  ;;  %v1953_v44 = vadd.f32 %v1952_v13, %v7606_v16  ;;  %v3622_v16 = vrot.slane %v7505_v38, 7  ;;  %v3612_v40 = vsel %vm3585_vm2, %v3611_v42, %v3610_v33  ;;  %v9085_v13 = vand.u32 4294901760, %v7522_v4 }
 0x1c2   : > { %3249 = vmatpush.msra.mxu2 %v3122_v21  ;;  %3296 = vmatpush.msra.mxu3 %v7531_v30  ;;  %v3615_v30 = vrot.slane %v7562_v10, 3  ;;  %v3614_v56 = vsel %vm3588_vm3, %v3613_v59, %v3612_v40  ;;  %v3583_v59 = vrot.slane %v7505_v38, 4  ;;  %v9093_v40 = vand.u32 4294901760, %v7692_v5 }
 0x1c3   : > { %3323 = vmatpush.msra.mxu0 %v7676_v49  ;;  %3374 = vmatpush.msra.mxu1 %v3373_v24  ;;  %v1984_v21 = vadd.f32 %v1983_v46, %v1953_v44  ;;  %v3391_v24 = vand.u32 4294901760, %v3390_v50  ;;  %v3624_v22 = vsel %vm3585_vm2, %v3623_v57, %v3622_v16  ;;  %v9087_v50 = vand.u32 4294901760, %v7548_v11 }
 0x1c4   : > { %3253 = vmatpush.msra.mxu2 %v3128_v14  ;;  %3298 = vmatpush.msra.mxu3 %v7569_v31  ;;  %v3634_v14 = vrot.slane %v7540_v62, 7  ;;  %v2057_v31 = vpop.f32.mrf.mxu1  ;;  %v7807_v23 = vsel %vm3591_vm4, %v3615_v30, %v3614_v56  ;;  %v3626_v44 = vsel %vm3588_vm3, %v3625_v36, %v3624_v22  ;;  %v9088_v46 = vand.u32 4294901760, %v7639_v35 }
 0x1c5   : > { %3325 = vmatpush.msra.mxu0 %v7696_v7  ;;  %3380 = vmatpush.msra.mxu1 %v3379_v20  ;;  %v2029_v52 = vadd.f32 %v2028_v15, %v1984_v21  ;;  %v3627_v20 = vrot.slane %v7562_v10, 4  ;;  %v3584_v11 = vrot.slane %v7540_v62, 3  ;;  %v9089_v16 = vand.u32 4294901760, %v7567_v37 }
 0x1c6   : > { %3701 = vrot.lane.b32.xlu1 %v3700_v55, %s6029_s23  ;;  %3300 = vmatmul.f32.vlgmr.msra.gmra.mxu3 %v7367_v1  ;;  %v3636_v55 = vrot.slane %v7528_v54, 6  ;;  %v3635_v4 = vsel %vm3585_vm2, %v3634_v14, %v7505_v38  ;;  %v9090_v57 = vand.u32 4294901760, %v7664_v43  ;;  %v3587_v62 = vrot.slane %v7528_v54, 2  ;;  %s6044_s23 = smov 109  }
 0x1c7   : > { %3445 = vmatpush.msrb.mxu3 %v7614_v63  ;;  %3713 = vrot.lane.b32.xlu0 %v3712_v19, %s6030_s24  ;;  %v7811_v18 = vadd.f32 %v2057_v31, %v2029_v52  ;;  %v3628_v33 = vsel %vm3591_vm4, %v3627_v20, %v3626_v44  ;;  %v3730_v37 = vrot.slane %v7702_v29, 7  ;;  %v3586_v21 = vsel %vm3585_vm2, %v3584_v11, %v3583_v59  ;;  %s6045_s24 = smov 110  }
 0x1c8   : > { %3257 = vmatpush.msra.mxu2 %v9085_v13  ;;  %3327 = vmatpush.msra.mxu0 %v7715_v45  ;;  %v3637_v42 = vsel %vm3588_vm3, %v3636_v55, %v3635_v4  ;;  %v9092_v30 = vand.u32 4294901760, %v7674_v17  ;;  %v3590_v54 = vrot.slane %v7562_v10, 1  ;;  %v3732_v19 = vrot.slane %v7724_v32, 6  ;;  %v2179_v55 = vpop.f32.mrf.mxu3 }
 0x1c9   : > { %3386 = vmatpush.msra.mxu1 %v3385_v12  ;;  %3333 = vmatmul.f32.vlgmr.msra.gmra.mxu0 %v7447_v51  ;;  %v3638_v51 = vrot.slane %v7562_v10, 5  ;;  %v3589_v15 = vsel %vm3588_vm3, %v3587_v62, %v3586_v21  ;;  %v3683_v10 = vrot.slane %v7702_v29, 3  ;;  %v3758_v56 = vrot.slane %v7744_v41, 7 }
 0x1ca   : > { %3447 = vmatpush.msrb.mxu3 %v7617_v27  ;;  %3478 = vmatpush.msrb.mxu0 %v9086_v9  ;;  %v3592_v52 = vsel %vm3591_vm4, %v3590_v54, %v3589_v15  ;;  %v3765_v14 = vrot.slane %v7699_v47, 3  ;;  %v3687_v31 = vrot.slane %v7744_v41, 1  ;;  %v3743_v13 = vrot.slane %v7699_v47, 1 }
 0x1cb   : > { %3261 = vmatpush.msra.mxu2 %v9087_v50  ;;  %3392 = vmatpush.msra.mxu1 %v3391_v24  ;;  %v3639_v38 = vsel %vm3591_vm4, %v3638_v51, %v3637_v42  ;;  %v3745_v44 = vrot.slane %v7724_v32, 7  ;;  %v6039_v50 = vmov 0.0   ;;  %v2217_v51 = vpop.f32.mrf.mxu0 }
 0x1cc   : > { %3394 = vmatmul.f32.vlgmr.msra.gmra.mxu1 %v7367_v1  ;;  %3449 = vmatpush.msrb.mxu3 %v7642_v8  ;;  %v3744_v4 = vsel %vm3585_vm2, %v7702_v29, %v3743_v13  ;;  %3564 = vst [vmem:[#allocation2 + $0x8] sm:$0xff] %v6039_v50 }
 0x1cd   : > { %3482 = vmatpush.msrb.mxu0 %v9088_v46  ;;  %3521 = vmatpush.msrb.mxu1 %v7614_v63  ;;  %v9091_v63 = vand.u32 4294901760, %v7593_v39  ;;  %v3755_v39 = vrot.slane %v7702_v29, 1  ;;  %3563 = vst [vmem:[#allocation2] sm:$0xff] %v6039_v50  ;;  %v3746_v46 = vsel %vm3588_vm3, %v3745_v44, %v3744_v4 }
 0x1ce   : > { %3265 = vmatpush.msra.mxu2 %v9089_v16  ;;  %3451 = vmatpush.msrb.mxu3 %v7652_v26  ;;  %3566 = vst.msk [vmem:[#allocation2 + $0x10] sm:$0xff] %vm3565_vm13, %v6039_v50 }
 0x1cf   : > { %3486 = vmatpush.msrb.mxu0 %v9090_v57  ;;  %3523 = vmatpush.msrb.mxu1 %v7617_v27  ;;  %v3754_v27 = vrot.slane %v7699_v47, 2 }
 0x1d0   : > { %3269 = vmatpush.msra.mxu2 %v9091_v63  ;;  %3629 = vrot.lane.b32.xlu1 %v3628_v33, %s6031_s25 }
 0x1d1   : > { %3271 = vmatmul.f32.vlgmr.msra.gmra.mxu2 %v7367_v1  ;;  %3453 = vmatpush.msrb.mxu3 %v7666_v2  ;;  %v3756_v12 = vsel %vm3585_vm2, %v3755_v39, %v3754_v27 }
 0x1d2   : > { %3408 = vmatpush.msrb.mxu2 %v7632_v53  ;;  %3490 = vmatpush.msrb.mxu0 %v9092_v30  ;;  %v3731_v53 = vsel %vm3585_vm2, %v3730_v37, %v7699_v47  ;;  %v3757_v36 = vsel %vm3588_vm3, %v7724_v32, %v3756_v12  ;;  %v2118_v9 = vpop.f32.mrf.mxu2 }
 0x1d3   : > { %3525 = vmatpush.msrb.mxu1 %v7642_v8  ;;  %3640 = vrot.lane.b32.xlu0 %v3639_v38, %s6032_s26  ;;  %v3682_v8 = vrot.slane %v7699_v47, 4  ;;  %v3759_v24 = vsel %vm3591_vm4, %v3758_v56, %v3757_v36 }
 0x1d4   : > { %3411 = vmatpush.msrb.mxu2 %v7639_v35  ;;  %3455 = vmatpush.msrb.mxu3 %v7676_v49  ;;  %v3734_v35 = vrot.slane %v7744_v41, 5 }
 0x1d5   : > { %3494 = vmatpush.msrb.mxu0 %v9093_v40  ;;  %3527 = vmatpush.msrb.mxu1 %v7652_v26  ;;  %v3733_v26 = vsel %vm3588_vm3, %v3732_v19, %v3731_v53 }
 0x1d6   : > { %3414 = vmatpush.msrb.mxu2 %v7664_v43  ;;  %3457 = vmatpush.msrb.mxu3 %v7696_v7  ;;  %v3685_v43 = vrot.slane %v7724_v32, 2  ;;  %v7933_v59 = vpop.f32.mrf.mxu0 }
 0x1d7   : > { %3498 = vmatpush.msrb.mxu0 %v3377_v6  ;;  %3529 = vmatpush.msrb.mxu1 %v7666_v2  ;;  %v3766_v6 = vrot.slane %v7702_v29, 2  ;;  %v3684_v2 = vsel %vm3585_vm2, %v3683_v10, %v3682_v8  ;;  %v2180_v8 = vadd.f32 %v2179_v55, %v2118_v9 }
 0x1d8   : > { %3417 = vmatpush.msrb.mxu2 %v7674_v17  ;;  %3459 = vmatpush.msrb.mxu3 %v7715_v45  ;;  %v3735_v17 = vsel %vm3591_vm4, %v3734_v35, %v3733_v26 }
 0x1d9   : > { %3502 = vmatpush.msrb.mxu0 %v3383_v58  ;;  %3531 = vmatpush.msrb.mxu1 %v7676_v49  ;;  %v3768_v58 = vrot.slane %v7724_v32, 1  ;;  %v3686_v49 = vsel %vm3588_vm3, %v3685_v43, %v3684_v2  ;;  %v2218_v35 = vadd.f32 %v2217_v51, %v2180_v8 }
 0x1da   : > { %3593 = vrot.lane.b32.xlu2 %v3592_v52, %s6033_s27  ;;  %3463 = vmatmul.f32.vlgmr.msrb.gmra.mxu3 %v7415_v48  ;;  %v3767_v48 = vsel %vm3585_vm2, %v3766_v6, %v3765_v14  ;;  %v2322_v42 = vpop.f32.mrf.mxu3  ;;  %s6046_s27 = smov 127  }
 0x1db   : > { %3420 = vmatpush.msrb.mxu2 %v7692_v5  ;;  %3506 = vmatpush.msrb.mxu0 %v3389_v60  ;;  %v3769_v5 = vsel %vm3588_vm3, %v3768_v58, %v3767_v48  ;;  %v9094_v60 = vmov 0  }
 0x1dc   : > { %3533 = vmatpush.msrb.mxu1 %v7696_v7  ;;  %3508 = vmatmul.f32.vlgmr.msrb.gmra.mxu0 %v7367_v1  ;;  %v3688_v7 = vsel %vm3591_vm4, %v3687_v31, %v3686_v49 }
 0x1dd   : > { %3423 = vmatpush.msrb.mxu2 %v7709_v34  ;;  %3736 = vrot.lane.b32.xlu1 %v3735_v17, %s6034_s28  ;;  %v3719_v34 = vrot.slane %v7702_v29, 6  ;;  %s6055_s28 = smov 85  }
 0x1de   : > { %3535 = vmatpush.msrb.mxu1 %v7715_v45  ;;  %3760 = vrot.lane.b32.xlu0 %v3759_v24, %s6035_s29  ;;  %v3770_v45 = vsel %vm3591_vm4, %v7744_v41, %v3769_v5  ;;  %s6056_s29 = smov 87  }
 0x1df   : > { %3537 = vmatmul.f32.vlgmr.msrb.gmra.mxu1 %v7367_v1  ;;  %3426 = vmatpush.msrb.mxu2 %v7731_v61  ;;  %v3718_v1 = vrot.slane %v7699_v47, 7  ;;  %v3721_v61 = vrot.slane %v7724_v32, 5  ;;  %v2248_v47 = vpop.f32.mrf.mxu1 }
 0x1e0   : > { %5977 = vset.pattern.permute.xlu2 %v9094_v60  ;;  %5978 = vset.pattern.permute.xlu0 %v9094_v60  ;;  %v2249_v56 = vadd.f32 %v2248_v47, %v2218_v35 }
 0x1e1   : > { %3429 = vmatpush.msrb.mxu2 %v7750_v0  ;;  %v3720_v22 = vsel %vm3585_vm2, %v3719_v34, %v3718_v1  ;;  %v3723_v0 = vrot.slane %v7744_v41, 4  ;;  %vm3739_vm2 = vcmask 1048564  }
 0x1e2   : > { %3689 = vrot.lane.b32.xlu2 %v3688_v7, %s6036_s30  ;;  %3432 = vmatmul.f32.vlgmr.msrb.gmra.mxu2 %v7394_v28  ;;  %v3722_v28 = vsel %vm3588_vm3, %v3721_v61, %v3720_v22  ;;  %v7953_v7 = vld [vmem:[%s9066_s5] sm:$0x7]  ;;  %vm3741_vm3 = vcmask 113668   ;;  %s6057_s30 = smov 97  }
 0x1e3   : > { %v3724_v20 = vsel %vm3591_vm4, %v3723_v0, %v3722_v28  ;;  %v3554_v34 = vperm.slane %v7953_v7, 0 }
 0x1e4   : > { %v2293_v32 = vpop.f32.mrf.mxu2 }
 0x1e5   : > { %3771 = vrot.lane.b32.xlu1 %v3770_v45, %s6037_s11  ;;  %v2294_v43 = vadd.f32 %v2293_v32, %v2249_v56  ;;  %s6059_s11 = smov 81  }
 0x1e7   : > { %v7935_v29 = vpop.f32.mrf.mxu1  ;;  %v2323_v31 = vadd.f32 %v2322_v42, %v2294_v43 }
 0x1e8   : > { %v7941_v57 = vpop.f32.mrf.mxu0  ;;  %v2417_v55 = vadd.f32 %v7935_v29, %v7933_v59 }
 0x1e9   : > { %v2799_v5 = vadd.f32 %v2323_v31, %v7577_v25 }
 0x1ea   : > { %3617 = vrot.lane.b32.xlu2 %v7807_v23, %s6038_s12  ;;  %v3747_v23 = vrot.slane %v7744_v41, 6  ;;  %s6047_s12 = smov 19  }
 0x1ec   : > { %v3748_v33 = vsel %vm3591_vm4, %v3747_v23, %v3746_v46  ;;  %v7937_v11 = vpop.f32.mrf.mxu3  ;;  %vm3752_vm4 = vcmask 261252  }
 0x1ef   : > { %v7943_v41 = vpop.f32.mrf.mxu1 }
 0x1f2   : > { %3725 = vrot.lane.b32.xlu2 %v3724_v20, %s6040_s14  ;;  %s9038_s14 = scalar_lea.vmem %s9071_s10, %s5907_s22 }
 0x1f6   : > { %v7939_v16 = vpop.f32.mrf.mxu2 }
 0x1f7   : > { %v2455_v44 = vadd.f32 %v7939_v16, %v2417_v55 }
 0x1f9   : > { %v2486_v23 = vadd.f32 %v7937_v11, %v2455_v44 }
 0x1fa   : > { %3749 = vrot.lane.b32.xlu2 %v3748_v33, %s6041_s16  ;;  %v2691_v37 = vpop.f32.mrf.mxu0  ;;  %s6048_s16 = smov 105  }
 0x1fb   : > { %v2531_v32 = vadd.f32 %v7941_v57, %v2486_v23 }
 0x1fd   : > { %v2722_v27 = vpop.f32.mrf.mxu1  ;;  %v2560_v16 = vadd.f32 %v7943_v41, %v2531_v32 }
 0x1fe   : > { %v2653_v63 = vpop.f32.mrf.mxu3 }
 0x208   : > { %v2592_v38 = vpop.f32.mrf.mxu2 }
 0x209   : > { %v2654_v62 = vadd.f32 %v2653_v63, %v2592_v38 }
 0x20b   : > { %v2692_v21 = vadd.f32 %v2691_v37, %v2654_v62 }
 0x20c   : > { %v2860_v52 = vpop.f32.mrf.mxu0 }
 0x20d   : > { %v2723_v39 = vadd.f32 %v2722_v27, %v2692_v21  ;;  %v2800_v27 = vadd.f32 %v2560_v16, %v7678_v3 }
 0x20f   : > { %v2921_v26 = vpop.f32.mrf.mxu1 }
 0x210   : > { %v2796_v15 = vpop.f32.mrf.mxu3  ;;  %v2922_v36 = vadd.f32 %v2921_v26, %v2860_v52 }
 0x21a   : > { %v3652_v30 = vpop.permute.xlu0 %3651  ;;  %v2767_v54 = vpop.f32.mrf.mxu2 }
 0x21b   : > { %3655 = vst.msk [vmem:[#allocation2 + $0x8] sm:$0xf0] %vm3654_vm5, %v3652_v30  ;;  %v2768_v19 = vadd.f32 %v2767_v54, %v2723_v39  ;;  %vm3763_vm5 = vcmask 408852   ;;  %v3555_v54 = vperm.slane %v7953_v7, 1 }
 0x21d   : > { %v2797_v53 = vadd.f32 %v2796_v15, %v2768_v19 }
 0x21e   : > { %v3035_v24 = vpop.f32.mrf.mxu0 }
 0x21f   : > { %v7946_v40 = vadd.f32 %v2797_v53, %v7811_v18 }
 0x221   : > { %v3064_v48 = vpop.f32.mrf.mxu1 }
 0x222   : > { %v7948_v10 = vpop.permute.xlu1 %3547  ;;  %v2990_v2 = vpop.f32.mrf.mxu3 }
 0x224   : > { %v3663_v12 = vpop.permute.xlu0 %3662 }
 0x225   : > { %3666 = vst.msk [vmem:[#allocation2 + $0x8] sm:$0xf0] %vm3665_vm6, %v3663_v12  ;;  %vm3774_vm6 = vcmask 556452  }
 0x22c   : > { %v2959_v14 = vpop.f32.mrf.mxu2 }
 0x22d   : > { %v2960_v6 = vadd.f32 %v2959_v14, %v2922_v36 }
 0x22e   : > { %v3674_v17 = vpop.permute.xlu1 %3673 }
 0x22f   : > { %3677 = vst.msk [vmem:[#allocation2 + $0x8] sm:$0xf0] %vm3676_vm7, %v3674_v17  ;;  %v2991_v18 = vadd.f32 %v2990_v2, %v2960_v6  ;;  %v3606_v58 = vpop.permute.xlu0 %3605  ;;  %v3556_v17 = vperm.slane %v7953_v7, 2  ;;  %vm3569_vm7 = vcmask 863232  }
 0x231   : > { %v3036_v49 = vadd.f32 %v3035_v24, %v2991_v18 }
 0x232   : > { %v3196_v33 = vpop.f32.mrf.mxu0 }
 0x233   : > { %v3065_v60 = vadd.f32 %v3064_v48, %v3036_v49 }
 0x234   : > { %v3594_v45 = vpop.permute.xlu2 %3593 }
 0x235   : > { %3597 = vst.msk [vmem:[#allocation2] sm:$0xf0] %vm3596_vm8, %v3594_v45  ;;  %v3541_v1 = vadd.f32 %v3065_v60, %v2799_v5  ;;  %v3227_v11 = vpop.f32.mrf.mxu1  ;;  %vm3781_vm8 = vcmask 556032  }
 0x236   : > { %3609 = vst.msk [vmem:[#allocation2] sm:$0xf0] %vm3608_vm9, %v3606_v58  ;;  %v3158_v51 = vpop.f32.mrf.mxu3  ;;  %vm3921_vm9 = vcmask 744448  }
 0x237   : > { %v3550_v61 = vadd.f32 %v7948_v10, %v3541_v1 }
 0x238   : > { %v3702_v0 = vpop.permute.xlu1 %3701 }
 0x239   : > { %v3560_v22 = vmul.f32 %v3554_v34, %v3550_v61  ;;  %v3714_v28 = vpop.permute.xlu0 %3713 }
 0x23b   : > { %3567 = vst [vmem:[#allocation2] sm:$0xf] %v3560_v22 }
 0x23c   : > { %v3690_v13 = vpop.permute.xlu2 %3689 }
 0x23d   : > { %3693 = vst.msk [vmem:[#allocation2 + $0x8] sm:$0xf0] %vm3692_vm10, %v3690_v13  ;;  %vm3858_vm10 = vcmask 891904  }
 0x23e   : > { %3705 = vst.msk [vmem:[#allocation2 + $0x8] sm:$0xf0] %vm3704_vm11, %v3702_v0  ;;  %vm3942_vm11 = vcmask 736256  }
 0x23f   : > { %3717 = vst.msk [vmem:[#allocation2 + $0x8] sm:$0xf0] %vm3716_vm12, %v3714_v28  ;;  %vm3900_vm12 = vcmask 752640  }
 0x240   : > { %v3097_v4 = vpop.f32.mrf.mxu2 }
 0x241   : > { %v3159_v47 = vadd.f32 %v3158_v51, %v3097_v4 }
 0x242   : > { %v3630_v25 = vpop.permute.xlu1 %3629 }
 0x243   : > { %v3197_v59 = vadd.f32 %v3196_v33, %v3159_v47 }
 0x244   : > { %v3618_v20 = vpop.permute.xlu2 %3617 }
 0x245   : > { %3621 = vst.msk [vmem:[#allocation2] sm:$0xf0] %vm3620_vm14, %v3618_v20  ;;  %v3641_v9 = vpop.permute.xlu0 %3640  ;;  %v3228_v57 = vadd.f32 %v3227_v11, %v3197_v59  ;;  %vm3795_vm14 = vcmask 1039360  }
 0x246   : > { %3633 = vst.msk [vmem:[#allocation2] sm:$0xf0] %vm3632_vm15, %v3630_v25  ;;  %v3334_v15 = vpop.f32.mrf.mxu0  ;;  %vm3879_vm15 = vcmask 883712  }
 0x247   : > { %3644 = vst.msk [vmem:[#allocation2] sm:$0xf0] %vm3643_vm0, %v3641_v9  ;;  %v3951_v9 = vld [vmem:[%s9067_s6] sm:$0xf]  ;;  %vm3837_vm0 = vcmask 900096  }
 0x249   : > { %v3301_v21 = vpop.f32.mrf.mxu3  ;;  %v3395_v53 = vpop.f32.mrf.mxu1 }
 0x24a   : > { %v3396_v8 = vadd.f32 %v3395_v53, %v3334_v15 }
 0x24c   : > { %v3726_v46 = vpop.permute.xlu2 %3725 }
 0x24d   : > { %3729 = vst.msk [vmem:[#allocation2 + $0x8] sm:$0xf0] %vm3728_vm1, %v3726_v46  ;;  %vm3816_vm1 = vcmask 1031168  }
 0x24e   : > { %v7966_v42 = vld [vmem:[#allocation2] sm:$0xff] }
 0x24f   : > { %3936 = vrot.lane.b32.xlu2 %v7966_v42, %s6031_s25  ;;  %3915 = vrot.lane.b32.xlu1 %v7966_v42, %s6042_s20  ;;  %4756 = vst [vmem:[#allocation2] sm:$0xff] %v6039_v50  ;;  %v3737_v29 = vpop.permute.xlu1 %3736 }
 0x250   : > { %3894 = vrot.lane.b32.xlu0 %v7966_v42, %s6043_s21  ;;  %3740 = vst.msk [vmem:[#allocation2 + $0x8] sm:$0xf0] %vm3739_vm2, %v3737_v29  ;;  %v3761_v63 = vpop.permute.xlu0 %3760  ;;  %vm4774_vm2 = vcmask 1043608  }
 0x251   : > { %3742 = vst.msk [vmem:[#allocation2 + $0x10] sm:$0xf0] %vm3741_vm3, %v3737_v29  ;;  %vm4768_vm3 = vcmask 154624  }
 0x254   : > { %v3272_v38 = vpop.f32.mrf.mxu2  ;;  %v3750_v62 = vpop.permute.xlu2 %3749 }
 0x255   : > { %v3273_v37 = vadd.f32 %v3272_v38, %v3228_v57  ;;  %3753 = vst.msk [vmem:[#allocation2 + $0x10] sm:$0xf0] %vm3752_vm4, %v3750_v62  ;;  %vm4777_vm4 = vcmask 707584  }
 0x256   : > { %3764 = vst.msk [vmem:[#allocation2 + $0x10] sm:$0xf0] %vm3763_vm5, %v3761_v63  ;;  %vm5768_vm5 = vcmask 1043456  }
 0x257   : > { %v3302_v39 = vadd.f32 %v3301_v21, %v3273_v37  ;;  %3873 = vrot.lane.b32.xlu2 %v7966_v42, %s6032_s26  ;;  %3852 = vrot.lane.b32.xlu1 %v7966_v42, %s6044_s23  ;;  %v3772_v41 = vpop.permute.xlu1 %3771 }
 0x258   : > { %3831 = vrot.lane.b32.xlu0 %v7966_v42, %s6045_s24  ;;  %3775 = vst.msk [vmem:[#allocation2 + $0x10] sm:$0xf0] %vm3774_vm6, %v3772_v41  ;;  %vm5739_vm6 = vcmask 125952  }
 0x259   : > { %v3542_v30 = vadd.f32 %v3302_v39, %v2800_v27  ;;  %v3509_v43 = vpop.f32.mrf.mxu0 }
 0x25b   : > { %v3551_v19 = vadd.f32 %v7948_v10, %v3542_v30 }
 0x25c   : > { %v3538_v14 = vpop.f32.mrf.mxu1 }
 0x25d   : > { %v3561_v3 = vmul.f32 %v3555_v54, %v3551_v19  ;;  %v3464_v26 = vpop.f32.mrf.mxu3 }
 0x25f   : > { %3568 = vst [vmem:[#allocation2 + $0x8] sm:$0xf] %v3561_v3  ;;  %3810 = vrot.lane.b32.xlu2 %v7966_v42, %s6024_s15  ;;  %3789 = vrot.lane.b32.xlu1 %v7966_v42, %s6046_s27 }
 0x265   : > { %v3433_v12 = vpop.f32.mrf.mxu2 }
 0x266   : > { %v7990_v35 = vld [vmem:[#allocation2 + $0x8] sm:$0xff]  ;;  %v3434_v52 = vadd.f32 %v3433_v12, %v3396_v8 }
 0x267   : > { %3938 = vrot.lane.b32.xlu0 %v7990_v35, %s6031_s25  ;;  %3917 = vrot.lane.b32.xlu2 %v7990_v35, %s6042_s20  ;;  %4757 = vst [vmem:[#allocation2 + $0x8] sm:$0xff] %v6039_v50 }
 0x268   : > { %v3465_v56 = vadd.f32 %v3464_v26, %v3434_v52  ;;  %3896 = vrot.lane.b32.xlu1 %v7990_v35, %s6043_s21 }
 0x26a   : > { %v3510_v36 = vadd.f32 %v3509_v43, %v3465_v56  ;;  %v8135_v43 = vand.u32 4294901760, %v7966_v42 }
 0x26c   : > { %v3539_v6 = vadd.f32 %v3538_v14, %v3510_v36 }
 0x26e   : > { %v3543_v2 = vadd.f32 %v3539_v6, %v7946_v40 }
 0x26f   : > { %3875 = vrot.lane.b32.xlu0 %v7990_v35, %s6032_s26  ;;  %3854 = vrot.lane.b32.xlu2 %v7990_v35, %s6044_s23 }
 0x270   : > { %v3552_v31 = vadd.f32 %v7948_v10, %v3543_v2  ;;  %3833 = vrot.lane.b32.xlu1 %v7990_v35, %s6045_s24 }
 0x272   : > { %v3562_v18 = vmul.f32 %v3556_v17, %v3552_v31 }
 0x274   : > { %3570 = vst.msk [vmem:[#allocation2 + $0x10] sm:$0xf] %vm3569_vm7, %v3562_v18  ;;  %vm5744_vm7 = vcmask 257152  }
 0x277   : > { %3812 = vrot.lane.b32.xlu0 %v7990_v35, %s6024_s15  ;;  %3791 = vrot.lane.b32.xlu2 %v7990_v35, %s6046_s27 }
 0x27b   : > { %v3778_v40 = vld [vmem:[#allocation2 + $0x10] sm:$0xff] }
 0x27c   : > { %3782 = vst.msk [vmem:[#allocation3 + $0x10] sm:$0xff] %vm3781_vm8, %v3778_v40  ;;  %3919 = vrot.lane.b32.xlu1 %v3778_v40, %s6042_s20 }
 0x27d   : > { %4758 = vst.msk [vmem:[#allocation2 + $0x10] sm:$0xff] %vm3565_vm13, %v6039_v50  ;;  %vm3985_vm13 = vcmask 588800  }
 0x27e   : > { %v3987_v33 = vsel %vm3985_vm13, %v3951_v9, 0 }
 0x27f   : > { %3940 = vrot.lane.b32.xlu0 %v3778_v40, %s6031_s25  ;;  %3898 = vrot.lane.b32.xlu2 %v3778_v40, %s6043_s21  ;;  %v8082_v11 = vand.u32 4294901760, %v3987_v33 }
 0x281   : > { %v8119_v3 = vsub.f32 %v3987_v33, %v8082_v11 }
 0x283   : > { %v8141_v14 = vand.u32 4294901760, %v8119_v3 }
 0x284   : > { %3856 = vrot.lane.b32.xlu1 %v3778_v40, %s6044_s23 }
 0x287   : > { %3877 = vrot.lane.b32.xlu0 %v3778_v40, %s6032_s26  ;;  %3835 = vrot.lane.b32.xlu2 %v3778_v40, %s6045_s24 }
 0x28c   : > { %3793 = vrot.lane.b32.xlu1 %v3778_v40, %s6046_s27 }
 0x28f   : > { %3814 = vrot.lane.b32.xlu0 %v3778_v40, %s6024_s15 }
 0x294   : > { %4744 = vrot.lane.b32.xlu1 %v3555_v54, %s6044_s23 }
 0x297   : > { %4742 = vrot.lane.b32.xlu0 %v3554_v34, %s6044_s23 }
 0x2a9   : > { %v3937_v50 = vpop.permute.xlu2 %3936 }
 0x2b1   : > { %v3874_v10 = vpop.permute.xlu2 %3873 }
 0x2b9   : > { %v8029_v24 = vpop.permute.xlu2 %3810 }
 0x2c1   : > { %v3916_v58 = vpop.permute.xlu1 %3915  ;;  %v8031_v49 = vpop.permute.xlu2 %3917 }
 0x2c2   : > { %v3895_v48 = vpop.permute.xlu0 %3894  ;;  %v3922_v61 = vsel %vm3921_vm9, %v3916_v58, %v8031_v49 }
 0x2c3   : > { %v8039_v34 = vand.u32 4294901760, %v3922_v61 }
 0x2c5   : > { %v8046_v13 = vsub.f32 %v3922_v61, %v8039_v34 }
 0x2c7   : > { %v4038_v46 = vand.u32 4294901760, %v8046_v13 }
 0x2c9   : > { %v3853_v5 = vpop.permute.xlu1 %3852  ;;  %v8033_v60 = vpop.permute.xlu2 %3854  ;;  %v4039_v38 = vsub.f32 %v8046_v13, %v4038_v46 }
 0x2ca   : > { %v3832_v45 = vpop.permute.xlu0 %3831  ;;  %v3859_v25 = vsel %vm3858_vm10, %v3853_v5, %v8033_v60 }
 0x2cb   : > { %v8070_v47 = vand.u32 4294901760, %v3859_v25  ;;  %v4040_v15 = vand.u32 4294901760, %v4039_v38 }
 0x2cd   : > { %v8097_v62 = vsub.f32 %v3859_v25, %v8070_v47 }
 0x2cf   : > { %v4056_v12 = vand.u32 4294901760, %v8097_v62 }
 0x2d1   : > { %v8035_v1 = vpop.permute.xlu2 %3791  ;;  %v3790_v22 = vpop.permute.xlu1 %3789  ;;  %v4057_v31 = vsub.f32 %v8097_v62, %v4056_v12 }
 0x2d2   : > { %v3796_v37 = vsel %vm3795_vm14, %v3790_v22, %v8035_v1 }
 0x2d3   : > { %v8125_v8 = vand.u32 4294901760, %v3796_v37 }
 0x2d5   : > { %v8153_v18 = vsub.f32 %v3796_v37, %v8125_v8 }
 0x2d7   : > { %v4074_v22 = vand.u32 4294901760, %v8153_v18 }
 0x2d9   : > { %v8041_v0 = vpop.permute.xlu0 %3938  ;;  %v8043_v28 = vpop.permute.xlu2 %3898  ;;  %v4075_v38 = vsub.f32 %v8153_v18, %v4074_v22 }
 0x2da   : > { %v3943_v20 = vsel %vm3942_vm11, %v3937_v50, %v8041_v0  ;;  %3908 = vst.msk [vmem:[#allocation3 + $0xa0] sm:$0xff] %vm3781_vm8, %v8043_v28  ;;  %v8054_v55 = vpop.permute.xlu1 %3896 }
 0x2db   : > { %v3901_v44 = vsel %vm3900_vm12, %v3895_v48, %v8054_v55  ;;  %v8061_v4 = vand.u32 4294901760, %v3943_v20  ;;  %v8167_v48 = vsub.f32 %v7966_v42, %v8135_v43  ;;  %v3902_v5 = vsel %vm3900_vm12, %v8054_v55, %v8043_v28 }
 0x2dc   : > { %v8063_v51 = vand.u32 4294901760, %v3901_v44 }
 0x2dd   : > { %3997 = vmatpush.msra.mxu2 %v8061_v4  ;;  %4137 = vmatpush.msra.mxu1 %v8061_v4  ;;  %v8068_v23 = vsub.f32 %v3943_v20, %v8061_v4  ;;  %v4080_v55 = vand.u32 4294901760, %v8167_v48 }
 0x2de   : > { %v8075_v32 = vsub.f32 %v3901_v44, %v8063_v51  ;;  %v8191_v44 = vand.u32 4294901760, %v3902_v5 }
 0x2df   : > { %3999 = vmatpush.msra.mxu2 %v8039_v34  ;;  %4098 = vmatpush.msra.mxu0 %v8068_v23  ;;  %v4032_v59 = vand.u32 4294901760, %v8068_v23 }
 0x2e0   : > { %4139 = vmatpush.msra.mxu1 %v8039_v34  ;;  %v4044_v29 = vand.u32 4294901760, %v8075_v32 }
 0x2e1   : > { %v8084_v16 = vpop.permute.xlu0 %3875  ;;  %v8086_v57 = vpop.permute.xlu2 %3835  ;;  %4001 = vmatpush.msra.mxu2 %v8063_v51  ;;  %4101 = vmatpush.msra.mxu0 %v8046_v13  ;;  %v4033_v63 = vsub.f32 %v8068_v23, %v4032_v59 }
 0x2e2   : > { %v3880_v21 = vsel %vm3879_vm15, %v3874_v10, %v8084_v16  ;;  %3845 = vst.msk [vmem:[#allocation3 + $0x58] sm:$0xff] %vm3781_vm8, %v8086_v57  ;;  %v8105_v27 = vpop.permute.xlu1 %3833  ;;  %4141 = vmatpush.msra.mxu1 %v8063_v51  ;;  %v4045_v54 = vsub.f32 %v8075_v32, %v4044_v29 }
 0x2e3   : > { %v3838_v39 = vsel %vm3837_vm0, %v3832_v45, %v8105_v27  ;;  %4104 = vmatpush.msra.mxu0 %v8075_v32  ;;  %v8111_v41 = vand.u32 4294901760, %v3880_v21  ;;  %v4034_v30 = vand.u32 4294901760, %v4033_v63  ;;  %v4058_v45 = vand.u32 4294901760, %v4057_v31 }
 0x2e4   : > { %v8116_v19 = vand.u32 4294901760, %v3838_v39  ;;  %v4046_v26 = vand.u32 4294901760, %v4045_v54  ;;  %v4081_v54 = vsub.f32 %v8167_v48, %v4080_v55  ;;  %v3839_v23 = vsel %vm3837_vm0, %v8105_v27, %v8086_v57 }
 0x2e5   : > { %4003 = vmatpush.msra.mxu2 %v8111_v41  ;;  %4035 = vmatpush.msra.mxu3 %v4034_v30  ;;  %v8123_v53 = vsub.f32 %v3880_v21, %v8111_v41  ;;  %v8242_v27 = vand.u32 4294901760, %v3839_v23 }
 0x2e6   : > { %4143 = vmatpush.msra.mxu1 %v8111_v41  ;;  %v8130_v52 = vsub.f32 %v3838_v39, %v8116_v19  ;;  %v4082_v13 = vand.u32 4294901760, %v4081_v54 }
 0x2e7   : > { %4005 = vmatpush.msra.mxu2 %v8070_v47  ;;  %4041 = vmatpush.msra.mxu3 %v4040_v15  ;;  %v4050_v56 = vand.u32 4294901760, %v8123_v53  ;;  %v4076_v15 = vand.u32 4294901760, %v4075_v38 }
 0x2e8   : > { %4107 = vmatpush.msra.mxu0 %v8123_v53  ;;  %4145 = vmatpush.msra.mxu1 %v8070_v47  ;;  %v4062_v36 = vand.u32 4294901760, %v8130_v52 }
 0x2e9   : > { %v8143_v6 = vpop.permute.xlu0 %3812  ;;  %4007 = vmatpush.msra.mxu2 %v8116_v19  ;;  %4047 = vmatpush.msra.mxu3 %v4046_v26  ;;  %v4051_v2 = vsub.f32 %v8123_v53, %v4050_v56 }
 0x2ea   : > { %v3817_v40 = vsel %vm3816_vm1, %v8029_v24, %v8143_v6  ;;  %4110 = vmatpush.msra.mxu0 %v8097_v62  ;;  %4147 = vmatpush.msra.mxu1 %v8116_v19  ;;  %v4063_v58 = vsub.f32 %v8130_v52, %v4062_v36  ;;  %v4017_v24 = vsub.f32 %v8119_v3, %v8141_v14 }
 0x2eb   : > { %v8160_v50 = vand.u32 4294901760, %v3817_v40  ;;  %v4052_v10 = vand.u32 4294901760, %v4051_v2 }
 0x2ec   : > { %4113 = vmatpush.msra.mxu0 %v8130_v52  ;;  %v4064_v28 = vand.u32 4294901760, %v4063_v58  ;;  %v8193_v33 = vand.u32 4294901760, %v4017_v24 }
 0x2ed   : > { %4009 = vmatpush.msra.mxu2 %v8160_v50  ;;  %4053 = vmatpush.msra.mxu3 %v4052_v10  ;;  %v8177_v61 = vsub.f32 %v3817_v40, %v8160_v50 }
 0x2ee   : > { %v3920_v42 = vpop.permute.xlu1 %3919  ;;  %4149 = vmatpush.msra.mxu1 %v8160_v50 }
 0x2ef   : > { %v3923_v25 = vsel %vm3921_vm9, %v8031_v49, %v3920_v42  ;;  %3929 = vst.msk [vmem:[#allocation3 + $0xb8] sm:$0xff] %vm3781_vm8, %v3920_v42  ;;  %4011 = vmatpush.msra.mxu2 %v8125_v8  ;;  %4059 = vmatpush.msra.mxu3 %v4058_v45  ;;  %v4068_v20 = vand.u32 4294901760, %v8177_v61 }
 0x2f0   : > { %4116 = vmatpush.msra.mxu0 %v8177_v61  ;;  %4151 = vmatpush.msra.mxu1 %v8125_v8  ;;  %v8189_v9 = vand.u32 4294901760, %v3923_v25 }
 0x2f1   : > { %v3941_v49 = vpop.permute.xlu0 %3940  ;;  %4013 = vmatpush.msra.mxu2 %v8135_v43  ;;  %4065 = vmatpush.msra.mxu3 %v4064_v28  ;;  %v4069_v63 = vsub.f32 %v8177_v61, %v4068_v20 }
 0x2f2   : > { %v3944_v37 = vsel %vm3942_vm11, %v8041_v0, %v3941_v49  ;;  %3950 = vst.msk [vmem:[#allocation3 + $0xd0] sm:$0xff] %vm3781_vm8, %v3941_v49  ;;  %4119 = vmatpush.msra.mxu0 %v8153_v18  ;;  %4153 = vmatpush.msra.mxu1 %v8135_v43  ;;  %v8208_v21 = vsub.f32 %v3923_v25, %v8189_v9 }
 0x2f3   : > { %4171 = vmatpush.msrb.mxu2 %v4032_v59  ;;  %v4070_v39 = vand.u32 4294901760, %v4069_v63  ;;  %v8212_v30 = vand.u32 4294901760, %v3944_v37  ;;  %4157 = vmatmul.f32.vlgmr.msra.gmra.mxu1 %v8141_v14  ;;  %v8221_v0 = vsub.f32 %v3902_v5, %v8191_v44 }
 0x2f4   : > { %4122 = vmatpush.msra.mxu0 %v8167_v48  ;;  %4019 = vmatmul.f32.vlgmr.msra.gmra.mxu2 %v8193_v33  ;;  %v4288_v2 = vand.u32 4294901760, %v8208_v21 }
 0x2f5   : > { %4175 = vmatpush.msrb.mxu2 %v4038_v46  ;;  %4071 = vmatpush.msra.mxu3 %v4070_v39  ;;  %v8229_v59 = vsub.f32 %v3944_v37, %v8212_v30  ;;  %v4294_v40 = vand.u32 4294901760, %v8221_v0 }
 0x2f6   : > { %v3857_v26 = vpop.permute.xlu1 %3856  ;;  %4247 = vmatpush.msrb.mxu0 %v8212_v30  ;;  %v3975_v39 = vld [vmem:[#allocation3 + $0xb8] sm:$0xff] }
 0x2f7   : > { %v3860_v31 = vsel %vm3858_vm10, %v8033_v60, %v3857_v26  ;;  %3866 = vst.msk [vmem:[#allocation3 + $0x70] sm:$0xff] %vm3781_vm8, %v3857_v26  ;;  %4179 = vmatpush.msrb.mxu2 %v4044_v29  ;;  %4077 = vmatpush.msra.mxu3 %v4076_v15  ;;  %v4282_v46 = vand.u32 4294901760, %v8229_v59  ;;  %v4289_v29 = vsub.f32 %v8208_v21, %v4288_v2 }
 0x2f8   : > { %4249 = vmatpush.msrb.mxu0 %v8189_v9  ;;  %v8240_v57 = vand.u32 4294901760, %v3860_v31 }
 0x2f9   : > { %v3878_v10 = vpop.permute.xlu0 %3877  ;;  %4183 = vmatpush.msrb.mxu2 %v4050_v56  ;;  %4083 = vmatpush.msra.mxu3 %v4082_v13  ;;  %v4283_v60 = vsub.f32 %v8229_v59, %v4282_v46  ;;  %v4290_v24 = vand.u32 4294901760, %v4289_v29  ;;  %v3978_v37 = vld [vmem:[#allocation3 + $0xd0] sm:$0xff] }
 0x2fa   : > { %v3881_v32 = vsel %vm3879_vm15, %v8084_v16, %v3878_v10  ;;  %3887 = vst.msk [vmem:[#allocation3 + $0x88] sm:$0xff] %vm3781_vm8, %v3878_v10  ;;  %4251 = vmatpush.msrb.mxu0 %v8191_v44  ;;  %v8259_v53 = vsub.f32 %v3860_v31, %v8240_v57  ;;  %4085 = vmatmul.f32.vlgmr.msra.gmra.mxu3 %v8082_v11  ;;  %v8358_v54 = vand.u32 4294901760, %v3978_v37 }
 0x2fb   : > { %4217 = vmatpush.msrb.mxu3 %v8061_v4  ;;  %4187 = vmatpush.msrb.mxu2 %v4056_v12  ;;  %v8263_v56 = vand.u32 4294901760, %v3881_v32  ;;  %v4284_v58 = vand.u32 4294901760, %v4283_v60  ;;  %v4295_v4 = vsub.f32 %v8221_v0, %v4294_v40  ;;  %v8272_v16 = vsub.f32 %v3839_v23, %v8242_v27 }
 0x2fc   : > { %4125 = vmatmul.f32.vlgmr.msra.gmra.mxu0 %v8119_v3  ;;  %v4306_v12 = vand.u32 4294901760, %v8259_v53  ;;  %v8373_v26 = vsub.f32 %v3978_v37, %v8358_v54 }
 0x2fd   : > { %4219 = vmatpush.msrb.mxu3 %v8039_v34  ;;  %4191 = vmatpush.msrb.mxu2 %v4062_v36  ;;  %v8278_v62 = vsub.f32 %v3881_v32, %v8263_v56  ;;  %v4296_v36 = vand.u32 4294901760, %v4295_v4 }
 0x2fe   : > { %4253 = vmatpush.msrb.mxu0 %v8263_v56  ;;  %v3794_v34 = vpop.permute.xlu1 %3793  ;;  %4285 = vmatpush.msrb.mxu1 %v4284_v58 }
 0x2ff   : > { %4221 = vmatpush.msrb.mxu3 %v8063_v51  ;;  %v3797_v5 = vsel %vm3795_vm14, %v8035_v1, %v3794_v34  ;;  %3803 = vst.msk [vmem:[#allocation3 + $0x28] sm:$0xff] %vm3781_vm8, %v3794_v34  ;;  %4195 = vmatpush.msrb.mxu2 %v4068_v20  ;;  %v4300_v52 = vand.u32 4294901760, %v8278_v62  ;;  %v8293_v51 = vand.u32 4294901760, %v7990_v35  ;;  %v4312_v1 = vand.u32 4294901760, %v8272_v16 }
 0x300   : > { %4255 = vmatpush.msrb.mxu0 %v8240_v57  ;;  %4291 = vmatpush.msrb.mxu1 %v4290_v24  ;;  %v8290_v45 = vand.u32 4294901760, %v3797_v5 }
 0x301   : > { %4223 = vmatpush.msrb.mxu3 %v8111_v41  ;;  %v3815_v42 = vpop.permute.xlu0 %3814  ;;  %4199 = vmatpush.msrb.mxu2 %v4074_v22  ;;  %v4301_v61 = vsub.f32 %v8278_v62, %v4300_v52  ;;  %v4307_v41 = vsub.f32 %v8259_v53, %v4306_v12  ;;  %v3969_v15 = vld [vmem:[#allocation3 + $0x88] sm:$0xff] }
 0x302   : > { %4257 = vmatpush.msrb.mxu0 %v8242_v27  ;;  %v3818_v25 = vsel %vm3816_vm1, %v8143_v6, %v3815_v42  ;;  %3824 = vst.msk [vmem:[#allocation3 + $0x40] sm:$0xff] %vm3781_vm8, %v3815_v42  ;;  %4297 = vmatpush.msrb.mxu1 %v4296_v36  ;;  %v8310_v18 = vsub.f32 %v3797_v5, %v8290_v45  ;;  %v8380_v31 = vand.u32 4294901760, %v3969_v15 }
 0x303   : > { %4225 = vmatpush.msrb.mxu3 %v8070_v47  ;;  %4203 = vmatpush.msrb.mxu2 %v4080_v55  ;;  %v8314_v22 = vand.u32 4294901760, %v3818_v25  ;;  %v4302_v28 = vand.u32 4294901760, %v4301_v61  ;;  %v4313_v6 = vsub.f32 %v8272_v16, %v4312_v1  ;;  %v8323_v47 = vsub.f32 %v7990_v35, %v8293_v51 }
 0x304   : > { %v4308_v48 = vand.u32 4294901760, %v4307_v41  ;;  %4205 = vmatmul.f32.vlgmr.msrb.gmra.mxu2 %v8082_v11 }
 0x305   : > { %4348 = vmatpush.msra.mxu2 %v8229_v59  ;;  %4227 = vmatpush.msrb.mxu3 %v8116_v19  ;;  %v8327_v20 = vsub.f32 %v3818_v25, %v8314_v22  ;;  %v4324_v19 = vand.u32 4294901760, %v8310_v18  ;;  %v4314_v35 = vand.u32 4294901760, %v4313_v6  ;;  %v4330_v49 = vand.u32 4294901760, %v8323_v47  ;;  %v3972_v59 = vld [vmem:[#allocation3 + $0xa0] sm:$0xff] }
 0x306   : > { %4259 = vmatpush.msrb.mxu0 %v8314_v22  ;;  %4303 = vmatpush.msrb.mxu1 %v4302_v28 }
 0x307   : > { %4351 = vmatpush.msra.mxu2 %v8208_v21  ;;  %4229 = vmatpush.msrb.mxu3 %v8160_v50  ;;  %v4318_v55 = vand.u32 4294901760, %v8327_v20  ;;  %v4325_v63 = vsub.f32 %v8310_v18, %v4324_v19  ;;  %v4331_v38 = vsub.f32 %v8323_v47, %v4330_v49  ;;  %v8364_v21 = vand.u32 4294901760, %v3975_v39 }
 0x308   : > { %4261 = vmatpush.msrb.mxu0 %v8290_v45  ;;  %4309 = vmatpush.msrb.mxu1 %v4308_v48 }
 0x309   : > { %4354 = vmatpush.msra.mxu2 %v8221_v0  ;;  %4231 = vmatpush.msrb.mxu3 %v8125_v8  ;;  %v4319_v50 = vsub.f32 %v8327_v20, %v4318_v55  ;;  %v4332_v23 = vand.u32 4294901760, %v4331_v38  ;;  %v8370_v0 = vand.u32 4294901760, %v3972_v59  ;;  %v8383_v13 = vsub.f32 %v3975_v39, %v8364_v21  ;;  %v3960_v32 = vld [vmem:[#allocation3 + $0x40] sm:$0xff] }
 0x30a   : > { %4263 = vmatpush.msrb.mxu0 %v8293_v51  ;;  %4315 = vmatpush.msrb.mxu1 %v4314_v35  ;;  %v8419_v4 = vand.u32 4294901760, %v3960_v32 }
 0x30b   : > { %4357 = vmatpush.msra.mxu2 %v8278_v62  ;;  %4233 = vmatpush.msrb.mxu3 %v8135_v43  ;;  %v4320_v8 = vand.u32 4294901760, %v4319_v50  ;;  %v4326_v43 = vand.u32 4294901760, %v4325_v63  ;;  %v8394_v10 = vsub.f32 %v3972_v59, %v8370_v0  ;;  %v4538_v60 = vand.u32 4294901760, %v8383_v13 }
 0x30c   : > { %4421 = vmatpush.msra.mxu0 %v4282_v46  ;;  %4235 = vmatmul.f32.vlgmr.msrb.gmra.mxu3 %v8082_v11  ;;  %v8444_v36 = vsub.f32 %v3960_v32, %v8419_v4 }
 0x30d   : > { %4360 = vmatpush.msra.mxu2 %v8259_v53  ;;  %4387 = vmatpush.msra.mxu3 %v8212_v30  ;;  %v4544_v53 = vand.u32 4294901760, %v8394_v10 }
 0x30e   : > { %4425 = vmatpush.msra.mxu0 %v4288_v2  ;;  %4321 = vmatpush.msrb.mxu1 %v4320_v8  ;;  %v3966_v2 = vld [vmem:[#allocation3 + $0x70] sm:$0xff] }
 0x30f   : > { %4269 = vmatmul.f32.vlgmr.msrb.gmra.mxu0 %v8193_v33  ;;  %4363 = vmatpush.msra.mxu2 %v8272_v16  ;;  %v8390_v46 = vand.u32 4294901760, %v3966_v2  ;;  %v3957_v16 = vld [vmem:[#allocation3 + $0x28] sm:$0xff] }
 0x310   : > { %4389 = vmatpush.msra.mxu3 %v8189_v9  ;;  %4429 = vmatpush.msra.mxu0 %v4294_v40  ;;  %v3963_v40 = vld [vmem:[#allocation3 + $0x58] sm:$0xff]  ;;  %v8438_v5 = vand.u32 4294901760, %v3957_v16 }
 0x311   : > { %4327 = vmatpush.msrb.mxu1 %v4326_v43  ;;  %4366 = vmatpush.msra.mxu2 %v8327_v20  ;;  %v8405_v29 = vand.u32 4294901760, %v3963_v40  ;;  %v8415_v58 = vsub.f32 %v3966_v2, %v8390_v46 }
 0x312   : > { %4391 = vmatpush.msra.mxu3 %v8191_v44  ;;  %4433 = vmatpush.msra.mxu0 %v4300_v52 }
 0x313   : > { %4333 = vmatpush.msrb.mxu1 %v4332_v23  ;;  %4369 = vmatpush.msra.mxu2 %v8310_v18  ;;  %v8431_v34 = vsub.f32 %v3963_v40, %v8405_v29  ;;  %v4556_v52 = vand.u32 4294901760, %v8415_v58  ;;  %v4573_v18 = vsub.f32 %v3957_v16, %v8438_v5 }
 0x314   : > { %4393 = vmatpush.msra.mxu3 %v8263_v56  ;;  %4335 = vmatmul.f32.vlgmr.msrb.gmra.mxu1 %v8082_v11 }
 0x315   : > { %4437 = vmatpush.msra.mxu0 %v4306_v12  ;;  %4467 = vmatpush.msra.mxu1 %v8212_v30  ;;  %v4532_v30 = vand.u32 4294901760, %v8373_v26  ;;  %v3954_v12 = vld [vmem:[#allocation3 + $0x10] sm:$0xff]  ;;  %v4557_v25 = vsub.f32 %v8415_v58, %v4556_v52  ;;  %v4574_v48 = vand.u32 4294901760, %v4573_v18 }
 0x316   : > { %4372 = vmatpush.msra.mxu2 %v8323_v47  ;;  %4395 = vmatpush.msra.mxu3 %v8240_v57  ;;  %v8450_v61 = vand.u32 4294901760, %v3954_v12 }
 0x317   : > { %4375 = vmatmul.f32.vlgmr.msra.gmra.mxu2 %v8119_v3  ;;  %4441 = vmatpush.msra.mxu0 %v4312_v1 }
 0x318   : > { %4469 = vmatpush.msra.mxu1 %v8189_v9  ;;  %4497 = vmatpush.msrb.mxu2 %v8358_v54  ;;  %v8401_v9 = vsub.f32 %v3969_v15, %v8380_v31  ;;  %v4579_v6 = vsub.f32 %v3954_v12, %v8450_v61  ;;  %v4745_v15 = vpop.permute.xlu1 %4744 }
 0x319   : > { %4397 = vmatpush.msra.mxu3 %v8242_v27  ;;  %4445 = vmatpush.msra.mxu0 %v4318_v55  ;;  %v4575_v55 = vsub.f32 %v4573_v18, %v4574_v48 }
 0x31a   : > { %4471 = vmatpush.msra.mxu1 %v8191_v44  ;;  %4499 = vmatpush.msrb.mxu2 %v8364_v21  ;;  %v4533_v44 = vsub.f32 %v8373_v26, %v4532_v30  ;;  %v4550_v62 = vand.u32 4294901760, %v8401_v9 }
 0x31b   : > { %4399 = vmatpush.msra.mxu3 %v8314_v22  ;;  %4449 = vmatpush.msra.mxu0 %v4324_v19  ;;  %v4580_v19 = vand.u32 4294901760, %v4579_v6  ;;  %v4576_v50 = vand.u32 4294901760, %v4575_v55 }
 0x31c   : > { %4473 = vmatpush.msra.mxu1 %v8263_v56  ;;  %4501 = vmatpush.msrb.mxu2 %v8370_v0  ;;  %v4539_v56 = vsub.f32 %v8383_v13, %v4538_v60  ;;  %v4534_v24 = vand.u32 4294901760, %v4533_v44  ;;  %v4551_v42 = vsub.f32 %v8401_v9, %v4550_v62 }
 0x31d   : > { %4401 = vmatpush.msra.mxu3 %v8290_v45  ;;  %4453 = vmatpush.msra.mxu0 %v4330_v49  ;;  %v4581_v49 = vsub.f32 %v4579_v6, %v4580_v19 }
 0x31e   : > { %4475 = vmatpush.msra.mxu1 %v8240_v57  ;;  %4503 = vmatpush.msrb.mxu2 %v8380_v31  ;;  %v4545_v57 = vsub.f32 %v8394_v10, %v4544_v53  ;;  %v4540_v1 = vand.u32 4294901760, %v4539_v56  ;;  %v4552_v28 = vand.u32 4294901760, %v4551_v42 }
 0x31f   : > { %4403 = vmatpush.msra.mxu3 %v8293_v51  ;;  %4598 = vmatpush.msrb.mxu0 %v8373_v26  ;;  %v4582_v63 = vand.u32 4294901760, %v4581_v49 }
 0x320   : > { %4407 = vmatmul.f32.vlgmr.msra.gmra.mxu3 %v8141_v14  ;;  %4477 = vmatpush.msra.mxu1 %v8242_v27  ;;  %v4562_v27 = vand.u32 4294901760, %v8431_v34  ;;  %v4546_v41 = vand.u32 4294901760, %v4545_v57 }
 0x321   : > { %4505 = vmatpush.msrb.mxu2 %v8390_v46  ;;  %4535 = vmatpush.msrb.mxu3 %v4534_v24 }
 0x322   : > { %4601 = vmatpush.msrb.mxu0 %v8383_v13  ;;  %4479 = vmatpush.msra.mxu1 %v8314_v22  ;;  %v4568_v22 = vand.u32 4294901760, %v8444_v36  ;;  %v4563_v47 = vsub.f32 %v8431_v34, %v4562_v27 }
 0x323   : > { %4507 = vmatpush.msrb.mxu2 %v8405_v29  ;;  %4541 = vmatpush.msrb.mxu3 %v4540_v1 }
 0x324   : > { %4604 = vmatpush.msrb.mxu0 %v8394_v10  ;;  %4481 = vmatpush.msra.mxu1 %v8290_v45  ;;  %v4558_v45 = vand.u32 4294901760, %v4557_v25  ;;  %v4569_v20 = vsub.f32 %v8444_v36, %v4568_v22 }
 0x325   : > { %4509 = vmatpush.msrb.mxu2 %v8419_v4  ;;  %4547 = vmatpush.msrb.mxu3 %v4546_v41 }
 0x326   : > { %4607 = vmatpush.msrb.mxu0 %v8401_v9  ;;  %4483 = vmatpush.msra.mxu1 %v8293_v51  ;;  %v4564_v51 = vand.u32 4294901760, %v4563_v47  ;;  %v4570_v35 = vand.u32 4294901760, %v4569_v20 }
 0x327   : > { %4511 = vmatpush.msrb.mxu2 %v8438_v5  ;;  %4553 = vmatpush.msrb.mxu3 %v4552_v28 }
 0x328   : > { %4610 = vmatpush.msrb.mxu0 %v8415_v58  ;;  %4637 = vmatpush.msrb.mxu1 %v8358_v54 }
 0x329   : > { %4455 = vmatmul.f32.vlgmr.msra.gmra.mxu0 %v8082_v11  ;;  %4513 = vmatpush.msrb.mxu2 %v8450_v61 }
 0x32a   : > { %4559 = vmatpush.msrb.mxu3 %v4558_v45  ;;  %4519 = vmatmul.f32.vlgmr.msrb.gmra.mxu2 %v8193_v33  ;;  %v3979_v33 = vld [vmem:[%s9068_s7] sm:$0xf] }
 0x32b   : > { %4613 = vmatpush.msrb.mxu0 %v8431_v34  ;;  %4639 = vmatpush.msrb.mxu1 %v8364_v21 }
 0x32c   : > { %4671 = vmatpush.msra.mxu2 %v4532_v30  ;;  %4485 = vmatmul.f32.vlgmr.msra.gmra.mxu1 %v8082_v11 }
 0x32d   : > { %4565 = vmatpush.msrb.mxu3 %v4564_v51  ;;  %4616 = vmatpush.msrb.mxu0 %v8444_v36 }
 0x32e   : > { %4641 = vmatpush.msrb.mxu1 %v8370_v0  ;;  %4675 = vmatpush.msra.mxu2 %v4538_v60 }
 0x32f   : > { %4571 = vmatpush.msrb.mxu3 %v4570_v35  ;;  %4619 = vmatpush.msrb.mxu0 %v4573_v18 }
 0x330   : > { %4643 = vmatpush.msrb.mxu1 %v8380_v31  ;;  %4679 = vmatpush.msra.mxu2 %v4544_v53 }
 0x331   : > { %3982 = vperm.xlu2 %5977, %v3979_v33   ;;  %4577 = vmatpush.msrb.mxu3 %v4576_v50 }
 0x332   : > { %4622 = vmatpush.msrb.mxu0 %v4579_v6  ;;  %4645 = vmatpush.msrb.mxu1 %v8390_v46 }
 0x333   : > { %4683 = vmatpush.msra.mxu2 %v4550_v62  ;;  %4583 = vmatpush.msrb.mxu3 %v4582_v63 }
 0x334   : > { %4625 = vmatmul.f32.vlgmr.msrb.gmra.mxu0 %v8119_v3  ;;  %4585 = vmatmul.f32.vlgmr.msrb.gmra.mxu3 %v8082_v11 }
 0x335   : > { %4647 = vmatpush.msrb.mxu1 %v8405_v29  ;;  %4687 = vmatpush.msra.mxu2 %v4556_v52 }
 0x336   : > { %4717 = vmatpush.msra.mxu3 %v8358_v54 }
 0x337   : > { %4649 = vmatpush.msrb.mxu1 %v8419_v4  ;;  %4691 = vmatpush.msra.mxu2 %v4562_v27 }
 0x338   : > { %4719 = vmatpush.msra.mxu3 %v8364_v21  ;;  %v4743_v21 = vpop.permute.xlu0 %4742 }
 0x339   : > { %4651 = vmatpush.msrb.mxu1 %v8438_v5  ;;  %4746 = vrot.lane.b32.xlu2 %v3556_v17, %s6044_s23  ;;  %v4748_v26 = vsel %vm3858_vm10, %v4743_v21, %v4745_v15 }
 0x33a   : > { %4695 = vmatpush.msra.mxu2 %v4568_v22  ;;  %4721 = vmatpush.msra.mxu3 %v8370_v0 }
 0x33b   : > { %4653 = vmatpush.msrb.mxu1 %v8450_v61 }
 0x33c   : > { %4699 = vmatpush.msra.mxu2 %v4574_v48  ;;  %4723 = vmatpush.msra.mxu3 %v8380_v31 }
 0x33d   : > { %4657 = vmatmul.f32.vlgmr.msrb.gmra.mxu1 %v8141_v14 }
 0x33e   : > { %4703 = vmatpush.msra.mxu2 %v4580_v19  ;;  %4725 = vmatpush.msra.mxu3 %v8390_v46 }
 0x33f   : > { %4705 = vmatmul.f32.vlgmr.msra.gmra.mxu2 %v8082_v11 }
 0x340   : > { %4727 = vmatpush.msra.mxu3 %v8405_v29 }
 0x342   : > { %4729 = vmatpush.msra.mxu3 %v8419_v4 }
 0x344   : > { %4731 = vmatpush.msra.mxu3 %v8438_v5 }
 0x346   : > { %4733 = vmatpush.msra.mxu3 %v8450_v61 }
 0x347   : > { %4735 = vmatmul.f32.vlgmr.msra.gmra.mxu3 %v8082_v11 }
 0x370   : > { %v4158_v43 = vpop.f32.mrf.mxu1 }
 0x377   : > { %v4020_v7 = vpop.f32.mrf.mxu2 }
 0x379   : > { %v4126_v38 = vpop.f32.mrf.mxu0 }
 0x37d   : > { %v4086_v17 = vpop.f32.mrf.mxu3 }
 0x387   : > { %v4206_v39 = vpop.f32.mrf.mxu2 }
 0x38b   : > { %v3983_v3 = vpop.permute.xlu2 %3982 }
 0x38c   : > { %v4021_v8 = vadd.f32 %v4020_v7, %v3983_v3  ;;  %v4270_v11 = vpop.f32.mrf.mxu0 }
 0x38d   : > { %v4271_v46 = vadd.f32 %v4270_v11, %v3983_v3 }
 0x38e   : > { %v4087_v14 = vadd.f32 %v4086_v17, %v4021_v8 }
 0x38f   : > { %v4236_v23 = vpop.f32.mrf.mxu3 }
 0x390   : > { %v4127_v37 = vadd.f32 %v4126_v38, %v4087_v14 }
 0x391   : > { %v4336_v13 = vpop.f32.mrf.mxu1 }
 0x392   : > { %v4159_v54 = vadd.f32 %v4158_v43, %v4127_v37  ;;  %v4337_v40 = vadd.f32 %v4336_v13, %v4271_v46 }
 0x393   : > { %v4747_v53 = vpop.permute.xlu2 %4746 }
 0x394   : > { %v4207_v59 = vadd.f32 %v4206_v39, %v4159_v54  ;;  %v4749_v16 = vsel %vm3858_vm10, %v4745_v15, %v4747_v53 }
 0x396   : > { %v4237_v0 = vadd.f32 %v4236_v23, %v4207_v59 }
 0x398   : > { %v4739_v2 = vmax.f32 %v4237_v0, 0.0 }
 0x39a   : > { %v4753_v31 = vmul.f32 %v4748_v26, %v4739_v2  ;;  %v4376_v30 = vpop.f32.mrf.mxu2 }
 0x39b   : > { %v4377_v10 = vadd.f32 %v4376_v30, %v4337_v40 }
 0x39c   : > { %4762 = vrot.lane.b32.xlu0 %v4753_v31, %s6047_s12 }
 0x3a3   : > { %v4408_v60 = vpop.f32.mrf.mxu3 }
 0x3a4   : > { %v4409_v32 = vadd.f32 %v4408_v60, %v4377_v10 }
 0x3a6   : > { %v4456_v9 = vpop.f32.mrf.mxu0 }
 0x3a7   : > { %v4457_v29 = vadd.f32 %v4456_v9, %v4409_v32 }
 0x3a9   : > { %v4486_v44 = vpop.f32.mrf.mxu1 }
 0x3aa   : > { %v4487_v58 = vadd.f32 %v4486_v44, %v4457_v29 }
 0x3ac   : > { %v4740_v4 = vmax.f32 %v4487_v58, 0.0 }
 0x3ad   : > { %v4520_v62 = vpop.f32.mrf.mxu2 }
 0x3ae   : > { %v4754_v56 = vmul.f32 %v4749_v16, %v4740_v4  ;;  %v4521_v34 = vadd.f32 %v4520_v62, %v3983_v3 }
 0x3b0   : > { %4764 = vrot.lane.b32.xlu1 %v4754_v56, %s6047_s12 }
 0x3b1   : > { %v4626_v57 = vpop.f32.mrf.mxu0 }
 0x3b7   : > { %v4586_v12 = vpop.f32.mrf.mxu3 }
 0x3b8   : > { %v4587_v24 = vadd.f32 %v4586_v12, %v4521_v34 }
 0x3ba   : > { %v4627_v5 = vadd.f32 %v4626_v57, %v4587_v24  ;;  %v4658_v52 = vpop.f32.mrf.mxu1 }
 0x3bc   : > { %v4659_v1 = vadd.f32 %v4658_v52, %v4627_v5 }
 0x3c2   : > { %v4706_v36 = vpop.f32.mrf.mxu2 }
 0x3c3   : > { %v4707_v42 = vadd.f32 %v4706_v36, %v4659_v1  ;;  %v4945_v1 = vld [vmem:[%s9069_s8] sm:$0xf] }
 0x3ca   : > { %v4736_v61 = vpop.f32.mrf.mxu3 }
 0x3cb   : > { %v4737_v27 = vadd.f32 %v4736_v61, %v4707_v42 }
 0x3cd   : > { %v4741_v41 = vmax.f32 %v4737_v27, 0.0 }
 0x3cf   : > { %v4755_v25 = vmul.f32 %v4747_v53, %v4741_v41 }
 0x3d1   : > { %4766 = vrot.lane.b32.xlu2 %v4755_v25, %s6047_s12  ;;  %v4980_v25 = vsel %vm3985_vm13, %v4945_v1, 0  ;;  %s6060_s12 = smov 83   ;;  %vm5773_vm13 = vcmask 793600  }
 0x40e   : > { %v4763_v18 = vpop.permute.xlu0 %4762 }
 0x40f   : > { %4775 = vst.msk [vmem:[#allocation2] sm:$0xf] %vm4774_vm2, %v4763_v18 }
 0x416   : > { %v8520_v22 = vld [vmem:[#allocation2] sm:$0xff] }
 0x417   : > { %4931 = vrot.lane.b32.xlu0 %v8520_v22, %s6031_s25  ;;  %4911 = vrot.lane.b32.xlu2 %v8520_v22, %s6042_s20 }
 0x418   : > { %4891 = vrot.lane.b32.xlu1 %v8520_v22, %s6043_s21 }
 0x41f   : > { %4871 = vrot.lane.b32.xlu0 %v8520_v22, %s6032_s26  ;;  %4851 = vrot.lane.b32.xlu2 %v8520_v22, %s6044_s23 }
 0x422   : > { %v4765_v28 = vpop.permute.xlu1 %4764 }
 0x423   : > { %v4769_v6 = vsel %vm4768_vm3, %v4763_v18, %v4765_v28 }
 0x424   : > { %4776 = vst [vmem:[#allocation2 + $0x8] sm:$0xf] %v4769_v6 }
 0x427   : > { %4831 = vrot.lane.b32.xlu2 %v8520_v22, %s6045_s24 }
 0x42b   : > { %v4767_v47 = vpop.permute.xlu2 %4766  ;;  %v8534_v45 = vld [vmem:[#allocation2 + $0x8] sm:$0xff] }
 0x42c   : > { %v4770_v48 = vsel %vm4768_vm3, %v4765_v28, %v4767_v47  ;;  %4933 = vrot.lane.b32.xlu1 %v8534_v45, %s6031_s25  ;;  %4913 = vrot.lane.b32.xlu0 %v8534_v45, %s6042_s20 }
 0x42d   : > { %4778 = vst.msk [vmem:[#allocation2 + $0x10] sm:$0xf] %vm4777_vm4, %v4770_v48 }
 0x42f   : > { %4811 = vrot.lane.b32.xlu2 %v8520_v22, %s6024_s15 }
 0x434   : > { %v4781_v20 = vld [vmem:[#allocation2 + $0x10] sm:$0xff]  ;;  %4873 = vrot.lane.b32.xlu1 %v8534_v45, %s6032_s26  ;;  %4853 = vrot.lane.b32.xlu0 %v8534_v45, %s6044_s23 }
 0x435   : > { %4784 = vst.msk [vmem:[#allocation3 + $0x10] sm:$0xff] %vm3781_vm8, %v4781_v20 }
 0x437   : > { %4893 = vrot.lane.b32.xlu2 %v8534_v45, %s6043_s21 }
 0x43c   : > { %4935 = vrot.lane.b32.xlu1 %v4781_v20, %s6031_s25  ;;  %4833 = vrot.lane.b32.xlu0 %v8534_v45, %s6045_s24 }
 0x43f   : > { %4791 = vrot.lane.b32.xlu2 %v8520_v22, %s6046_s27 }
 0x444   : > { %4915 = vrot.lane.b32.xlu1 %v4781_v20, %s6042_s20  ;;  %4813 = vrot.lane.b32.xlu0 %v8534_v45, %s6024_s15 }
 0x447   : > { %4855 = vrot.lane.b32.xlu2 %v4781_v20, %s6044_s23 }
 0x44c   : > { %4895 = vrot.lane.b32.xlu1 %v4781_v20, %s6043_s21  ;;  %4793 = vrot.lane.b32.xlu0 %v8534_v45, %s6046_s27  ;;  %s6051_s21 = smov 107  }
 0x44f   : > { %4795 = vrot.lane.b32.xlu2 %v4781_v20, %s6046_s27  ;;  %s6054_s27 = smov 93  }
 0x454   : > { %4875 = vrot.lane.b32.xlu1 %v4781_v20, %s6032_s26  ;;  %4835 = vrot.lane.b32.xlu0 %v4781_v20, %s6045_s24  ;;  %s6052_s24 = smov 101  }
 0x45c   : > { %4815 = vrot.lane.b32.xlu1 %v4781_v20, %s6024_s15  ;;  %v8686_v20 = vand.u32 4294901760, %v4980_v25  ;;  %s6061_s15 = smov 79  }
 0x471   : > { %v4912_v19 = vpop.permute.xlu2 %4911 }
 0x479   : > { %v4852_v51 = vpop.permute.xlu2 %4851 }
 0x481   : > { %v8565_v55 = vpop.permute.xlu2 %4831 }
 0x489   : > { %v8567_v35 = vpop.permute.xlu2 %4811  ;;  %v4932_v33 = vpop.permute.xlu0 %4931 }
 0x48a   : > { %v4892_v49 = vpop.permute.xlu1 %4891 }
 0x491   : > { %v8569_v50 = vpop.permute.xlu2 %4893  ;;  %v4872_v7 = vpop.permute.xlu0 %4871 }
 0x492   : > { %v4897_v63 = vsel %vm3900_vm12, %v4892_v49, %v8569_v50  ;;  %v8696_v49 = vand.u32 4294901760, %v8520_v22 }
 0x493   : > { %v8575_v3 = vand.u32 4294901760, %v4897_v63 }
 0x495   : > { %v8587_v23 = vsub.f32 %v4897_v63, %v8575_v3 }
 0x497   : > { %v5037_v26 = vand.u32 4294901760, %v8587_v23 }
 0x499   : > { %v8573_v17 = vpop.permute.xlu2 %4791  ;;  %v5038_v29 = vsub.f32 %v8587_v23, %v5037_v26 }
 0x49b   : > { %v5039_v4 = vand.u32 4294901760, %v5038_v29 }
 0x49e   : > { %v4934_v8 = vpop.permute.xlu1 %4933  ;;  %v8577_v14 = vpop.permute.xlu0 %4913 }
 0x49f   : > { %v4937_v38 = vsel %vm3942_vm11, %v4932_v33, %v4934_v8  ;;  %v4917_v37 = vsel %vm3921_vm9, %v4912_v19, %v8577_v14 }
 0x4a0   : > { %v8582_v39 = vand.u32 4294901760, %v4937_v38  ;;  %v8584_v54 = vand.u32 4294901760, %v4917_v37 }
 0x4a1   : > { %v4856_v43 = vpop.permute.xlu2 %4855 }
 0x4a2   : > { %4864 = vst.msk [vmem:[#allocation3 + $0x70] sm:$0xff] %vm3781_vm8, %v4856_v43  ;;  %4990 = vmatpush.msra.mxu0 %v8582_v39  ;;  %5130 = vmatpush.msrb.mxu3 %v8582_v39  ;;  %v8593_v59 = vsub.f32 %v4937_v38, %v8582_v39  ;;  %v8596_v21 = vsub.f32 %v4917_v37, %v8584_v54 }
 0x4a3   : > { %v8714_v38 = vsub.f32 %v8520_v22, %v8696_v49 }
 0x4a4   : > { %4992 = vmatpush.msra.mxu0 %v8584_v54  ;;  %5091 = vmatpush.msrb.mxu2 %v8593_v59  ;;  %v5025_v15 = vand.u32 4294901760, %v8593_v59  ;;  %v5031_v0 = vand.u32 4294901760, %v8596_v21 }
 0x4a5   : > { %5132 = vmatpush.msrb.mxu3 %v8584_v54 }
 0x4a6   : > { %v8604_v2 = vpop.permute.xlu1 %4873  ;;  %v4854_v31 = vpop.permute.xlu0 %4853  ;;  %4994 = vmatpush.msra.mxu0 %v8575_v3  ;;  %5094 = vmatpush.msrb.mxu2 %v8596_v21  ;;  %v5026_v11 = vsub.f32 %v8593_v59, %v5025_v15  ;;  %v5032_v13 = vsub.f32 %v8596_v21, %v5031_v0 }
 0x4a7   : > { %v4877_v46 = vsel %vm3879_vm15, %v4872_v7, %v8604_v2  ;;  %v4857_v30 = vsel %vm3858_vm10, %v4852_v51, %v4854_v31  ;;  %v8618_v40 = vsel %vm3858_vm10, %v4854_v31, %v4856_v43  ;;  %5134 = vmatpush.msrb.mxu3 %v8575_v3  ;;  %v8707_v7 = vsub.f32 %v4980_v25, %v8686_v20 }
 0x4a8   : > { %5097 = vmatpush.msrb.mxu2 %v8587_v23  ;;  %v8624_v60 = vand.u32 4294901760, %v4877_v46  ;;  %v5027_v32 = vand.u32 4294901760, %v5026_v11  ;;  %v8626_v9 = vand.u32 4294901760, %v4857_v30  ;;  %v5033_v44 = vand.u32 4294901760, %v5032_v13 }
 0x4a9   : > { %v8621_v10 = vpop.permute.xlu2 %4795  ;;  %vm5759_vm10 = vcmask 650752  }
 0x4aa   : > { %4996 = vmatpush.msra.mxu0 %v8624_v60  ;;  %5028 = vmatpush.msra.mxu1 %v5027_v32  ;;  %v8633_v53 = vsub.f32 %v4877_v46, %v8624_v60  ;;  %v8636_v58 = vsub.f32 %v4857_v30, %v8626_v9  ;;  %4804 = vst.msk [vmem:[#allocation3 + $0x28] sm:$0xff] %vm3781_vm8, %v8621_v10  ;;  %v8730_v30 = vand.u32 4294901760, %v8707_v7 }
 0x4ab   : > { %5136 = vmatpush.msrb.mxu3 %v8624_v60 }
 0x4ac   : > { %4998 = vmatpush.msra.mxu0 %v8626_v9  ;;  %5034 = vmatpush.msra.mxu1 %v5033_v44  ;;  %v5043_v16 = vand.u32 4294901760, %v8633_v53  ;;  %v5049_v56 = vand.u32 4294901760, %v8636_v58 }
 0x4ad   : > { %5100 = vmatpush.msrb.mxu2 %v8633_v53  ;;  %5138 = vmatpush.msrb.mxu3 %v8626_v9 }
 0x4ae   : > { %v4936_v62 = vpop.permute.xlu1 %4935  ;;  %v8646_v12 = vpop.permute.xlu0 %4833  ;;  %5040 = vmatpush.msra.mxu1 %v5039_v4  ;;  %v5044_v34 = vsub.f32 %v8633_v53, %v5043_v16  ;;  %v5050_v24 = vsub.f32 %v8636_v58, %v5049_v56  ;;  %v5073_v4 = vand.u32 4294901760, %v8714_v38  ;;  %v8819_v53 = vand.u32 4294901760, %v8534_v45 }
 0x4af   : > { %v4938_v57 = vsel %vm3942_vm11, %v4934_v8, %v4936_v62  ;;  %4944 = vst.msk [vmem:[#allocation3 + $0xd0] sm:$0xff] %vm3781_vm8, %v4936_v62  ;;  %v4837_v5 = vsel %vm3837_vm0, %v8565_v55, %v8646_v12  ;;  %5103 = vmatpush.msrb.mxu2 %v8636_v58  ;;  %vm5764_vm11 = vcmask 781952  }
 0x4b0   : > { %v8660_v52 = vand.u32 4294901760, %v4837_v5  ;;  %v5045_v36 = vand.u32 4294901760, %v5044_v34  ;;  %v5051_v42 = vand.u32 4294901760, %v5050_v24  ;;  %v8672_v41 = vand.u32 4294901760, %v4938_v57 }
 0x4b2   : > { %5000 = vmatpush.msra.mxu0 %v8660_v52  ;;  %5046 = vmatpush.msra.mxu1 %v5045_v36  ;;  %v8667_v61 = vsub.f32 %v4837_v5, %v8660_v52  ;;  %v8691_v55 = vsub.f32 %v4938_v57, %v8672_v41  ;;  %v5010_v57 = vsub.f32 %v8707_v7, %v8730_v30 }
 0x4b3   : > { %5140 = vmatpush.msrb.mxu3 %v8660_v52 }
 0x4b4   : > { %5052 = vmatpush.msra.mxu1 %v5051_v42  ;;  %5106 = vmatpush.msrb.mxu2 %v8667_v61  ;;  %v5055_v27 = vand.u32 4294901760, %v8667_v61  ;;  %v5074_v42 = vsub.f32 %v8714_v38, %v5073_v4 }
 0x4b6   : > { %v4916_v18 = vpop.permute.xlu1 %4915  ;;  %v8675_v28 = vpop.permute.xlu0 %4813  ;;  %v5056_v6 = vsub.f32 %v8667_v61, %v5055_v27  ;;  %v5075_v21 = vand.u32 4294901760, %v5074_v42 }
 0x4b7   : > { %v4918_v47 = vsel %vm3921_vm9, %v8577_v14, %v4916_v18  ;;  %4924 = vst.msk [vmem:[#allocation3 + $0xb8] sm:$0xff] %vm3781_vm8, %v4916_v18  ;;  %v4817_v48 = vsel %vm3816_vm1, %v8567_v35, %v8675_v28  ;;  %v5275_v14 = vand.u32 4294901760, %v8691_v55  ;;  %vm5754_vm9 = vcmask 519552  }
 0x4b8   : > { %v8688_v19 = vand.u32 4294901760, %v4817_v48  ;;  %v5057_v51 = vand.u32 4294901760, %v5056_v6  ;;  %v8693_v33 = vand.u32 4294901760, %v4918_v47 }
 0x4b9   : > { %v5276_v44 = vsub.f32 %v8691_v55, %v5275_v14 }
 0x4ba   : > { %5002 = vmatpush.msra.mxu0 %v8688_v19  ;;  %5058 = vmatpush.msra.mxu1 %v5057_v51  ;;  %v8700_v63 = vsub.f32 %v4817_v48, %v8688_v19  ;;  %v8703_v35 = vsub.f32 %v4918_v47, %v8693_v33 }
 0x4bb   : > { %5142 = vmatpush.msrb.mxu3 %v8688_v19  ;;  %v5277_v5 = vand.u32 4294901760, %v5276_v44 }
 0x4bc   : > { %5109 = vmatpush.msrb.mxu2 %v8700_v63  ;;  %v5061_v8 = vand.u32 4294901760, %v8700_v63  ;;  %v5281_v11 = vand.u32 4294901760, %v8703_v35 }
 0x4be   : > { %v4896_v37 = vpop.permute.xlu1 %4895  ;;  %v4794_v43 = vpop.permute.xlu0 %4793  ;;  %v5062_v31 = vsub.f32 %v8700_v63, %v5061_v8  ;;  %v5282_v34 = vsub.f32 %v8703_v35, %v5281_v11 }
 0x4bf   : > { %v4898_v13 = vsel %vm3900_vm12, %v8569_v50, %v4896_v37  ;;  %4904 = vst.msk [vmem:[#allocation3 + $0xa0] sm:$0xff] %vm3781_vm8, %v4896_v37  ;;  %v4797_v46 = vsel %vm3795_vm14, %v8573_v17, %v4794_v43  ;;  %v8727_v22 = vsel %vm3795_vm14, %v4794_v43, %v8621_v10  ;;  %v8741_v17 = vand.u32 4294901760, %v8618_v40  ;;  %v4973_v10 = vld [vmem:[%s9070_s9] sm:$0xf] }
 0x4c0   : > { %v8732_v32 = vand.u32 4294901760, %v4797_v46  ;;  %v5063_v29 = vand.u32 4294901760, %v5062_v31  ;;  %v8737_v50 = vand.u32 4294901760, %v4898_v13  ;;  %4976 = vperm.xlu0 %5978, %v4973_v10   ;;  %v5283_v6 = vand.u32 4294901760, %v5282_v34 }
 0x4c1   : > { %v8778_v59 = vsub.f32 %v8618_v40, %v8741_v17  ;;  %v8788_v37 = vand.u32 4294901760, %v5010_v57  ;;  %v8810_v23 = vand.u32 4294901760, %v8727_v22  ;;  %vm5809_vm12 = vcmask 678912  }
 0x4c2   : > { %5004 = vmatpush.msra.mxu0 %v8732_v32  ;;  %5064 = vmatpush.msra.mxu1 %v5063_v29  ;;  %v8748_v62 = vsub.f32 %v4797_v46, %v8732_v32  ;;  %v8754_v24 = vsub.f32 %v4898_v13, %v8737_v50  ;;  %vm5776_vm14 = vcmask 913152  }
 0x4c3   : > { %5144 = vmatpush.msrb.mxu3 %v8732_v32 }
 0x4c4   : > { %5006 = vmatpush.msra.mxu0 %v8696_v49  ;;  %5112 = vmatpush.msrb.mxu2 %v8748_v62  ;;  %v5067_v36 = vand.u32 4294901760, %v8748_v62  ;;  %v5287_v1 = vand.u32 4294901760, %v8754_v24 }
 0x4c5   : > { %5146 = vmatpush.msrb.mxu3 %v8696_v49  ;;  %5012 = vmatmul.f32.vlgmr.msra.gmra.mxu0 %v8788_v37 }
 0x4c6   : > { %5164 = vmatpush.msrb.mxu0 %v5025_v15  ;;  %v4876_v25 = vpop.permute.xlu1 %4875  ;;  %v4836_v18 = vpop.permute.xlu0 %4835  ;;  %5115 = vmatpush.msrb.mxu2 %v8714_v38  ;;  %v5068_v47 = vsub.f32 %v8748_v62, %v5067_v36  ;;  %v5288_v48 = vsub.f32 %v8754_v24, %v5287_v1 }
 0x4c7   : > { %5278 = vmatpush.msra.mxu3 %v5277_v5  ;;  %v4878_v15 = vsel %vm3879_vm15, %v8604_v2, %v4876_v25  ;;  %4884 = vst.msk [vmem:[#allocation3 + $0x88] sm:$0xff] %vm3781_vm8, %v4876_v25  ;;  %v4838_v51 = vsel %vm3837_vm0, %v8646_v12, %v4836_v18  ;;  %5118 = vmatmul.f32.vlgmr.msrb.gmra.mxu2 %v8707_v7  ;;  %v5299_v2 = vand.u32 4294901760, %v8778_v59  ;;  %vm5781_vm15 = vcmask 1044352  }
 0x4c8   : > { %5168 = vmatpush.msrb.mxu0 %v5031_v0  ;;  %5240 = vmatpush.msra.mxu2 %v8672_v41  ;;  %v5069_v43 = vand.u32 4294901760, %v5068_v47  ;;  %v5289_v31 = vand.u32 4294901760, %v5288_v48  ;;  %v8790_v40 = vand.u32 4294901760, %v4878_v15  ;;  %v8792_v13 = vand.u32 4294901760, %v4838_v51  ;;  %4844 = vst.msk [vmem:[#allocation3 + $0x58] sm:$0xff] %vm3781_vm8, %v4836_v18  ;;  %v4951_v18 = vld [vmem:[#allocation3 + $0x28] sm:$0xff] }
 0x4c9   : > { %5284 = vmatpush.msra.mxu3 %v5283_v6  ;;  %v5300_v44 = vsub.f32 %v8778_v59, %v5299_v2 }
 0x4ca   : > { %5172 = vmatpush.msrb.mxu0 %v5037_v26  ;;  %5242 = vmatpush.msra.mxu2 %v8693_v33  ;;  %v8800_v0 = vsub.f32 %v4878_v15, %v8790_v40  ;;  %v8804_v12 = vsub.f32 %v4838_v51, %v8792_v13 }
 0x4cb   : > { %5070 = vmatpush.msra.mxu1 %v5069_v43  ;;  %5290 = vmatpush.msra.mxu3 %v5289_v31  ;;  %v5301_v61 = vand.u32 4294901760, %v5300_v44  ;;  %v8965_v43 = vand.u32 4294901760, %v4951_v18 }
 0x4cc   : > { %5176 = vmatpush.msrb.mxu0 %v5043_v16  ;;  %5244 = vmatpush.msra.mxu2 %v8737_v50  ;;  %v5293_v26 = vand.u32 4294901760, %v8800_v0  ;;  %v5305_v46 = vand.u32 4294901760, %v8804_v12 }
 0x4cd   : > { %5076 = vmatpush.msra.mxu1 %v5075_v21  ;;  %5150 = vmatmul.f32.vlgmr.msrb.gmra.mxu3 %v8730_v30 }
 0x4ce   : > { %5180 = vmatpush.msrb.mxu0 %v5049_v56  ;;  %v4816_v16 = vpop.permute.xlu1 %4815  ;;  %5246 = vmatpush.msra.mxu2 %v8790_v40  ;;  %v5294_v29 = vsub.f32 %v8800_v0, %v5293_v26 }
 0x4cf   : > { %5210 = vmatpush.msrb.mxu1 %v8582_v39  ;;  %v4818_v58 = vsel %vm3816_vm1, %v8675_v28, %v4816_v16  ;;  %4824 = vst.msk [vmem:[#allocation3 + $0x40] sm:$0xff] %vm3781_vm8, %v4816_v16  ;;  %v8837_v39 = vsub.f32 %v8727_v22, %v8810_v23  ;;  %v5306_v28 = vsub.f32 %v8804_v12, %v5305_v46  ;;  %vm5749_vm8 = vcmask 388352  }
 0x4d0   : > { %5184 = vmatpush.msrb.mxu0 %v5055_v27  ;;  %5248 = vmatpush.msra.mxu2 %v8741_v17  ;;  %v5295_v56 = vand.u32 4294901760, %v5294_v29  ;;  %v8840_v10 = vand.u32 4294901760, %v4818_v58 }
 0x4d1   : > { %5212 = vmatpush.msrb.mxu1 %v8584_v54  ;;  %v8851_v54 = vsub.f32 %v8534_v45, %v8819_v53  ;;  %v5317_v63 = vand.u32 4294901760, %v8837_v39 }
 0x4d2   : > { %5078 = vmatmul.f32.vlgmr.msra.gmra.mxu1 %v8686_v20  ;;  %5188 = vmatpush.msrb.mxu0 %v5061_v8  ;;  %v5310_v27 = vsub.f32 %v4818_v58, %v8840_v10 }
 0x4d3   : > { %5214 = vmatpush.msrb.mxu1 %v8575_v3  ;;  %5250 = vmatpush.msra.mxu2 %v8792_v13  ;;  %v5307_v3 = vand.u32 4294901760, %v5306_v28  ;;  %v5323_v45 = vand.u32 4294901760, %v8851_v54 }
 0x4d4   : > { %5296 = vmatpush.msra.mxu3 %v5295_v56  ;;  %5192 = vmatpush.msrb.mxu0 %v5067_v36  ;;  %v5311_v8 = vand.u32 4294901760, %v5310_v27 }
 0x4d5   : > { %5216 = vmatpush.msrb.mxu1 %v8624_v60  ;;  %5252 = vmatpush.msra.mxu2 %v8840_v10  ;;  %v5318_v60 = vsub.f32 %v8837_v39, %v5317_v63 }
 0x4d6   : > { %5302 = vmatpush.msra.mxu3 %v5301_v61  ;;  %5196 = vmatpush.msrb.mxu0 %v5073_v4  ;;  %v5312_v22 = vsub.f32 %v5310_v27, %v5311_v8  ;;  %v4954_v36 = vld [vmem:[#allocation3 + $0x40] sm:$0xff] }
 0x4d7   : > { %5218 = vmatpush.msrb.mxu1 %v8626_v9  ;;  %5254 = vmatpush.msra.mxu2 %v8810_v23  ;;  %v5324_v9 = vsub.f32 %v8851_v54, %v5323_v45  ;;  %v8952_v47 = vand.u32 4294901760, %v4954_v36 }
 0x4d8   : > { %5308 = vmatpush.msra.mxu3 %v5307_v3  ;;  %5341 = vmatpush.msra.mxu0 %v8691_v55  ;;  %v5313_v62 = vand.u32 4294901760, %v5312_v22 }
 0x4d9   : > { %5220 = vmatpush.msrb.mxu1 %v8660_v52  ;;  %5256 = vmatpush.msra.mxu2 %v8819_v53  ;;  %v5319_v52 = vand.u32 4294901760, %v5318_v60  ;;  %v5325_v55 = vand.u32 4294901760, %v5324_v9  ;;  %v8976_v21 = vsub.f32 %v4954_v36, %v8952_v47 }
 0x4da   : > { %5198 = vmatmul.f32.vlgmr.msrb.gmra.mxu0 %v8686_v20  ;;  %5262 = vmatmul.f32.vlgmr.msra.gmra.mxu2 %v8788_v37 }
 0x4db   : > { %5344 = vmatpush.msra.mxu0 %v8703_v35  ;;  %5414 = vmatpush.msrb.mxu2 %v5275_v14  ;;  %v4966_v14 = vld [vmem:[#allocation3 + $0xa0] sm:$0xff]  ;;  %v5561_v44 = vand.u32 4294901760, %v8976_v21 }
 0x4dc   : > { %5222 = vmatpush.msrb.mxu1 %v8688_v19  ;;  %5314 = vmatpush.msra.mxu3 %v5313_v62  ;;  %v4972_v19 = vld [vmem:[#allocation3 + $0xd0] sm:$0xff] }
 0x4dd   : > { %5347 = vmatpush.msra.mxu0 %v8754_v24  ;;  %5418 = vmatpush.msrb.mxu2 %v5281_v11  ;;  %v8894_v35 = vand.u32 4294901760, %v4972_v19  ;;  %v4963_v11 = vld [vmem:[#allocation3 + $0x88] sm:$0xff]  ;;  %v4957_v24 = vld [vmem:[#allocation3 + $0x58] sm:$0xff]  ;;  %v5562_v28 = vsub.f32 %v8976_v21, %v5561_v44 }
 0x4de   : > { %5224 = vmatpush.msrb.mxu1 %v8732_v32  ;;  %5320 = vmatpush.msra.mxu3 %v5319_v52  ;;  %v4960_v32 = vld [vmem:[#allocation3 + $0x70] sm:$0xff]  ;;  %v8919_v4 = vand.u32 4294901760, %v4963_v11 }
 0x4df   : > { %5350 = vmatpush.msra.mxu0 %v8800_v0  ;;  %5422 = vmatpush.msrb.mxu2 %v5287_v1  ;;  %v8908_v38 = vsub.f32 %v4972_v19, %v8894_v35  ;;  %v8929_v5 = vand.u32 4294901760, %v4960_v32  ;;  %v8939_v1 = vand.u32 4294901760, %v4957_v24 }
 0x4e0   : > { %5226 = vmatpush.msrb.mxu1 %v8696_v49  ;;  %5326 = vmatpush.msra.mxu3 %v5325_v55  ;;  %v4969_v49 = vld [vmem:[#allocation3 + $0xb8] sm:$0xff] }
 0x4e1   : > { %5228 = vmatmul.f32.vlgmr.msrb.gmra.mxu1 %v8686_v20  ;;  %5353 = vmatpush.msra.mxu0 %v8778_v59  ;;  %v5525_v34 = vand.u32 4294901760, %v8908_v38  ;;  %v8950_v6 = vsub.f32 %v4960_v32, %v8929_v5  ;;  %v4948_v59 = vld [vmem:[#allocation3 + $0x10] sm:$0xff]  ;;  %v8963_v51 = vsub.f32 %v4957_v24, %v8939_v1 }
 0x4e2   : > { %5380 = vmatpush.msra.mxu1 %v8672_v41  ;;  %5426 = vmatpush.msrb.mxu2 %v5293_v26  ;;  %v8978_v0 = vand.u32 4294901760, %v4948_v59  ;;  %v5566_v26 = vsub.f32 %v4951_v18, %v8965_v43 }
 0x4e3   : > { %5328 = vmatmul.f32.vlgmr.msra.gmra.mxu3 %v8686_v20  ;;  %5356 = vmatpush.msra.mxu0 %v8804_v12  ;;  %v5526_v25 = vsub.f32 %v8908_v38, %v5525_v34 }
 0x4e4   : > { %5460 = vmatpush.msrb.mxu3 %v8672_v41  ;;  %5382 = vmatpush.msra.mxu1 %v8693_v33  ;;  %v8903_v41 = vand.u32 4294901760, %v4969_v49  ;;  %v5572_v29 = vsub.f32 %v4948_v59, %v8978_v0  ;;  %v5567_v56 = vand.u32 4294901760, %v5566_v26 }
 0x4e5   : > { %5430 = vmatpush.msrb.mxu2 %v5299_v2  ;;  %5359 = vmatpush.msra.mxu0 %v5310_v27  ;;  %v5549_v2 = vand.u32 4294901760, %v8950_v6 }
 0x4e6   : > { %5462 = vmatpush.msrb.mxu3 %v8693_v33  ;;  %5384 = vmatpush.msra.mxu1 %v8737_v50  ;;  %v8911_v33 = vand.u32 4294901760, %v4966_v14  ;;  %v5568_v27 = vsub.f32 %v5566_v26, %v5567_v56 }
 0x4e7   : > { %5434 = vmatpush.msrb.mxu2 %v5305_v46  ;;  %5362 = vmatpush.msra.mxu0 %v8837_v39  ;;  %v5555_v46 = vand.u32 4294901760, %v8963_v51  ;;  %v5550_v16 = vsub.f32 %v8950_v6, %v5549_v2 }
 0x4e8   : > { %5464 = vmatpush.msrb.mxu3 %v8737_v50  ;;  %5386 = vmatpush.msra.mxu1 %v8790_v40  ;;  %v8917_v50 = vsub.f32 %v4969_v49, %v8903_v41  ;;  %v8927_v57 = vsub.f32 %v4966_v14, %v8911_v33 }
 0x4e9   : > { %5438 = vmatpush.msrb.mxu2 %v5311_v8  ;;  %5365 = vmatpush.msra.mxu0 %v8851_v54  ;;  %v5556_v39 = vsub.f32 %v8963_v51, %v5555_v46  ;;  %v5573_v54 = vand.u32 4294901760, %v5572_v29  ;;  %v5569_v8 = vand.u32 4294901760, %v5568_v27 }
 0x4ea   : > { %5466 = vmatpush.msrb.mxu3 %v8790_v40  ;;  %5388 = vmatpush.msra.mxu1 %v8741_v17  ;;  %v5531_v42 = vand.u32 4294901760, %v8917_v50  ;;  %v5537_v48 = vand.u32 4294901760, %v8927_v57  ;;  %v5527_v40 = vand.u32 4294901760, %v5526_v25 }
 0x4eb   : > { %5442 = vmatpush.msrb.mxu2 %v5317_v63  ;;  %5368 = vmatmul.f32.vlgmr.msra.gmra.mxu0 %v8707_v7  ;;  %v5557_v61 = vand.u32 4294901760, %v5556_v39  ;;  %v5563_v63 = vand.u32 4294901760, %v5562_v28  ;;  %v5574_v3 = vsub.f32 %v5572_v29, %v5573_v54 }
 0x4ec   : > { %5468 = vmatpush.msrb.mxu3 %v8741_v17  ;;  %5490 = vmatpush.msrb.mxu0 %v8894_v35  ;;  %v8937_v17 = vsub.f32 %v4963_v11, %v8919_v4  ;;  %v5532_v15 = vsub.f32 %v8917_v50, %v5531_v42 }
 0x4ed   : > { %5390 = vmatpush.msra.mxu1 %v8792_v13  ;;  %5446 = vmatpush.msrb.mxu2 %v5323_v45 }
 0x4ee   : > { %5470 = vmatpush.msrb.mxu3 %v8792_v13  ;;  %5492 = vmatpush.msrb.mxu0 %v8903_v41  ;;  %v5543_v31 = vand.u32 4294901760, %v8937_v17  ;;  %v5538_v13 = vsub.f32 %v8927_v57, %v5537_v48  ;;  %v5533_v12 = vand.u32 4294901760, %v5532_v15 }
 0x4ef   : > { %5591 = vmatpush.msra.mxu2 %v8908_v38  ;;  %5392 = vmatpush.msra.mxu1 %v8840_v10 }
 0x4f0   : > { %5448 = vmatmul.f32.vlgmr.msrb.gmra.mxu2 %v8686_v20  ;;  %5472 = vmatpush.msrb.mxu3 %v8840_v10  ;;  %v5551_v10 = vand.u32 4294901760, %v5550_v16 }
 0x4f1   : > { %5494 = vmatpush.msrb.mxu0 %v8911_v33  ;;  %5594 = vmatpush.msra.mxu2 %v8917_v50 }
 0x4f2   : > { %5394 = vmatpush.msra.mxu1 %v8810_v23  ;;  %5474 = vmatpush.msrb.mxu3 %v8810_v23  ;;  %v5544_v23 = vsub.f32 %v8937_v17, %v5543_v31 }
 0x4f3   : > { %5496 = vmatpush.msrb.mxu0 %v8919_v4  ;;  %5597 = vmatpush.msra.mxu2 %v8927_v57 }
 0x4f4   : > { %5396 = vmatpush.msra.mxu1 %v8819_v53  ;;  %5476 = vmatpush.msrb.mxu3 %v8819_v53  ;;  %v5539_v53 = vand.u32 4294901760, %v5538_v13  ;;  %v5545_v58 = vand.u32 4294901760, %v5544_v23 }
 0x4f5   : > { %5400 = vmatmul.f32.vlgmr.msra.gmra.mxu1 %v8730_v30  ;;  %5498 = vmatpush.msrb.mxu0 %v8929_v5 }
 0x4f6   : > { %5528 = vmatpush.msrb.mxu1 %v5527_v40  ;;  %5600 = vmatpush.msra.mxu2 %v8937_v17 }
 0x4f7   : > { %5478 = vmatmul.f32.vlgmr.msrb.gmra.mxu3 %v8686_v20  ;;  %5500 = vmatpush.msrb.mxu0 %v8939_v1 }
 0x4f8   : > { %5630 = vmatpush.msra.mxu3 %v8894_v35  ;;  %5534 = vmatpush.msrb.mxu1 %v5533_v12 }
 0x4f9   : > { %5603 = vmatpush.msra.mxu2 %v8950_v6  ;;  %5502 = vmatpush.msrb.mxu0 %v8952_v47 }
 0x4fa   : > { %5632 = vmatpush.msra.mxu3 %v8903_v41  ;;  %5540 = vmatpush.msrb.mxu1 %v5539_v53 }
 0x4fb   : > { %5606 = vmatpush.msra.mxu2 %v8963_v51  ;;  %5504 = vmatpush.msrb.mxu0 %v8965_v43 }
 0x4fc   : > { %5634 = vmatpush.msra.mxu3 %v8911_v33  ;;  %5546 = vmatpush.msrb.mxu1 %v5545_v58 }
 0x4fd   : > { %5609 = vmatpush.msra.mxu2 %v8976_v21  ;;  %5506 = vmatpush.msrb.mxu0 %v8978_v0 }
 0x4fe   : > { %5636 = vmatpush.msra.mxu3 %v8919_v4  ;;  %5552 = vmatpush.msrb.mxu1 %v5551_v10 }
 0x4ff   : > { %5612 = vmatpush.msra.mxu2 %v5566_v26  ;;  %5512 = vmatmul.f32.vlgmr.msrb.gmra.mxu0 %v8788_v37  ;;  %v5575_v37 = vand.u32 4294901760, %v5574_v3 }
 0x500   : > { %5638 = vmatpush.msra.mxu3 %v8929_v5  ;;  %5664 = vmatpush.msra.mxu0 %v5525_v34 }
 0x501   : > { %5558 = vmatpush.msrb.mxu1 %v5557_v61  ;;  %5615 = vmatpush.msra.mxu2 %v5572_v29 }
 0x502   : > { %5640 = vmatpush.msra.mxu3 %v8939_v1  ;;  %5668 = vmatpush.msra.mxu0 %v5531_v42 }
 0x503   : > { %5564 = vmatpush.msrb.mxu1 %v5563_v63  ;;  %5618 = vmatmul.f32.vlgmr.msra.gmra.mxu2 %v8707_v7 }
 0x504   : > { %5642 = vmatpush.msra.mxu3 %v8952_v47  ;;  %5672 = vmatpush.msra.mxu0 %v5537_v48 }
 0x505   : > { %5570 = vmatpush.msrb.mxu1 %v5569_v8 }
 0x506   : > { %5644 = vmatpush.msra.mxu3 %v8965_v43  ;;  %5676 = vmatpush.msra.mxu0 %v5543_v31 }
 0x507   : > { %5576 = vmatpush.msrb.mxu1 %v5575_v37 }
 0x508   : > { %5578 = vmatmul.f32.vlgmr.msrb.gmra.mxu1 %v8686_v20  ;;  %5646 = vmatpush.msra.mxu3 %v8978_v0 }
 0x509   : > { %5680 = vmatpush.msra.mxu0 %v5549_v2  ;;  %5710 = vmatpush.msra.mxu1 %v8894_v35 }
 0x50a   : > { %5650 = vmatmul.f32.vlgmr.msra.gmra.mxu3 %v8730_v30 }
 0x50b   : > { %5684 = vmatpush.msra.mxu0 %v5555_v46  ;;  %5712 = vmatpush.msra.mxu1 %v8903_v41 }
 0x50d   : > { %5688 = vmatpush.msra.mxu0 %v5561_v44  ;;  %5714 = vmatpush.msra.mxu1 %v8911_v33 }
 0x50f   : > { %5692 = vmatpush.msra.mxu0 %v5567_v56  ;;  %5716 = vmatpush.msra.mxu1 %v8919_v4 }
 0x511   : > { %5696 = vmatpush.msra.mxu0 %v5573_v54  ;;  %5718 = vmatpush.msra.mxu1 %v8929_v5 }
 0x512   : > { %5698 = vmatmul.f32.vlgmr.msra.gmra.mxu0 %v8686_v20 }
 0x513   : > { %5720 = vmatpush.msra.mxu1 %v8939_v1 }
 0x515   : > { %5722 = vmatpush.msra.mxu1 %v8952_v47 }
 0x517   : > { %5724 = vmatpush.msra.mxu1 %v8965_v43 }
 0x519   : > { %5726 = vmatpush.msra.mxu1 %v8978_v0 }
 0x51a   : > { %5728 = vmatmul.f32.vlgmr.msra.gmra.mxu1 %v8686_v20 }
 0x532   : > { %v4977_v7 = vpop.permute.xlu0 %4976 }
 0x542   : > { %v5013_v30 = vpop.f32.mrf.mxu0 }
 0x543   : > { %v5014_v45 = vadd.f32 %v5013_v30, %v4977_v7 }
 0x54a   : > { %v5119_v62 = vpop.f32.mrf.mxu2 }
 0x54f   : > { %v5079_v22 = vpop.f32.mrf.mxu1 }
 0x550   : > { %v5080_v60 = vadd.f32 %v5079_v22, %v5014_v45  ;;  %v5151_v52 = vpop.f32.mrf.mxu3 }
 0x552   : > { %v5120_v9 = vadd.f32 %v5119_v62, %v5080_v60 }
 0x554   : > { %v5152_v55 = vadd.f32 %v5151_v52, %v5120_v9 }
 0x557   : > { %v5199_v19 = vpop.f32.mrf.mxu0 }
 0x558   : > { %v5200_v35 = vadd.f32 %v5199_v19, %v5152_v55 }
 0x55d   : > { %v5263_v20 = vpop.f32.mrf.mxu2 }
 0x55e   : > { %v5229_v49 = vpop.f32.mrf.mxu1  ;;  %v5264_v11 = vadd.f32 %v5263_v20, %v4977_v7 }
 0x55f   : > { %v5230_v14 = vadd.f32 %v5229_v49, %v5200_v35 }
 0x561   : > { %v5732_v41 = vmax.f32 %v5230_v14, 0.0 }
 0x563   : > { %5746 = vrot.lane.b32.xlu0 %v5732_v41, %s6048_s16  ;;  %5736 = vrot.lane.b32.xlu1 %v5732_v41, %s6044_s23  ;;  %s6053_s23 = smov 89  }
 0x564   : > { %5761 = vrot.lane.b32.xlu2 %v5732_v41, %s6049_s18 }
 0x566   : > { %v5329_v38 = vpop.f32.mrf.mxu3 }
 0x567   : > { %v5330_v33 = vadd.f32 %v5329_v38, %v5264_v11 }
 0x568   : > { %v5369_v32 = vpop.f32.mrf.mxu0 }
 0x569   : > { %v5370_v4 = vadd.f32 %v5369_v32, %v5330_v33 }
 0x56b   : > { %5751 = vrot.lane.b32.xlu0 %v5732_v41, %s6050_s19  ;;  %5741 = vrot.lane.b32.xlu1 %v5732_v41, %s6051_s21 }
 0x572   : > { %v5401_v50 = vpop.f32.mrf.mxu1 }
 0x573   : > { %5756 = vrot.lane.b32.xlu0 %v5732_v41, %s6052_s24  ;;  %v5402_v34 = vadd.f32 %v5401_v50, %v5370_v4  ;;  %v5449_v24 = vpop.f32.mrf.mxu2 }
 0x575   : > { %v5450_v57 = vadd.f32 %v5449_v24, %v5402_v34 }
 0x57a   : > { %v5479_v5 = vpop.f32.mrf.mxu3 }
 0x57b   : > { %v5480_v36 = vadd.f32 %v5479_v5, %v5450_v57 }
 0x57c   : > { %v5513_v1 = vpop.f32.mrf.mxu0 }
 0x57d   : > { %v5733_v17 = vmax.f32 %v5480_v36, 0.0  ;;  %v5514_v25 = vadd.f32 %v5513_v1, %v4977_v7 }
 0x57f   : > { %5791 = vrot.lane.b32.xlu1 %v5733_v17, %s6053_s23  ;;  %5783 = vrot.lane.b32.xlu2 %v5733_v17, %s6054_s27  ;;  %v5767_v18 = vrot.slane %v5733_v17, 4 }
 0x581   : > { %v5769_v48 = vsel %vm5768_vm5, %v5732_v41, %v5767_v18 }
 0x585   : > { %v5579_v42 = vpop.f32.mrf.mxu1 }
 0x586   : > { %v5580_v6 = vadd.f32 %v5579_v42, %v5514_v25  ;;  %v5619_v47 = vpop.f32.mrf.mxu2 }
 0x587   : > { %5799 = vrot.lane.b32.xlu1 %v5733_v17, %s6055_s28  ;;  %5787 = vrot.lane.b32.xlu2 %v5733_v17, %s6042_s20  ;;  %s6058_s20 = smov 95  }
 0x588   : > { %v5620_v15 = vadd.f32 %v5619_v47, %v5580_v6 }
 0x58d   : > { %v5651_v59 = vpop.f32.mrf.mxu3 }
 0x58e   : > { %v5652_v51 = vadd.f32 %v5651_v59, %v5620_v15 }
 0x58f   : > { %5795 = vrot.lane.b32.xlu2 %v5733_v17, %s6056_s29  ;;  %5770 = vrot.lane.b32.xlu1 %v5769_v48, %s6057_s30  ;;  %v5699_v43 = vpop.f32.mrf.mxu0 }
 0x590   : > { %v5700_v31 = vadd.f32 %v5699_v43, %v5652_v51 }
 0x597   : > { %v5729_v40 = vpop.f32.mrf.mxu1  ;;  %5778 = vrot.lane.b32.xlu1 %v5733_v17, %s6058_s20 }
 0x598   : > { %v5730_v13 = vadd.f32 %v5729_v40, %v5700_v31 }
 0x59a   : > { %v5734_v21 = vmax.f32 %v5730_v13, 0.0 }
 0x59c   : > { %v5804_v0 = vrot.slane %v5734_v21, 4  ;;  %5813 = vrot.lane.b32.xlu0 %v5734_v21, %s6059_s11 }
 0x59e   : > { %v5805_v2 = vsel %vm5768_vm5, %v5733_v17, %v5804_v0 }
 0x59f   : > { %5806 = vrot.lane.b32.xlu2 %v5805_v2, %s6060_s12 }
 0x5a7   : > { %5817 = vrot.lane.b32.xlu2 %v5734_v21, %s6061_s15 }
 0x5be   : > { %v5762_v12 = vpop.permute.xlu2 %5761 }
 0x5d5   : > { %v5747_v23 = vpop.permute.xlu0 %5746  ;;  %v5737_v26 = vpop.permute.xlu1 %5736 }
 0x5d6   : > { %5740 = vst.msk [vmem:[%s9038_s14] sm:$0xf] %vm5739_vm6, %v5737_v26 }
 0x5d9   : > { %v5784_v46 = vpop.permute.xlu2 %5783 }
 0x5da   : > { %5786 = vst.msk [vmem:[%s9038_s14 + $0x4] sm:$0xf] %vm5739_vm6, %v5784_v46 }
 0x5dd   : > { %v5752_v53 = vpop.permute.xlu0 %5751  ;;  %v5742_v16 = vpop.permute.xlu1 %5741 }
 0x5de   : > { %5745 = vst.msk [vmem:[%s9038_s14] sm:$0xf] %vm5744_vm7, %v5742_v16 }
 0x5df   : > { %5750 = vst.msk [vmem:[%s9038_s14] sm:$0xf] %vm5749_vm8, %v5747_v23 }
 0x5e0   : > { %5755 = vst.msk [vmem:[%s9038_s14] sm:$0xf] %vm5754_vm9, %v5752_v53 }
 0x5e1   : > { %v5788_v29 = vpop.permute.xlu2 %5787 }
 0x5e2   : > { %5790 = vst.msk [vmem:[%s9038_s14 + $0x4] sm:$0xf] %vm5744_vm7, %v5788_v29 }
 0x5e5   : > { %v5757_v44 = vpop.permute.xlu0 %5756 }
 0x5e6   : > { %5760 = vst.msk [vmem:[%s9038_s14] sm:$0xf] %vm5759_vm10, %v5757_v44 }
 0x5e7   : > { %5765 = vst.msk [vmem:[%s9038_s14] sm:$0xf] %vm5764_vm11, %v5762_v12 }
 0x5e9   : > { %v5796_v58 = vpop.permute.xlu2 %5795 }
 0x5f1   : > { %v5792_v39 = vpop.permute.xlu1 %5791 }
 0x5f2   : > { %5794 = vst.msk [vmem:[%s9038_s14 + $0x4] sm:$0xf] %vm5749_vm8, %v5792_v39 }
 0x5f3   : > { %5798 = vst.msk [vmem:[%s9038_s14 + $0x4] sm:$0xf] %vm5754_vm9, %v5796_v58 }
 0x5f9   : > { %v5807_v56 = vpop.permute.xlu2 %5806  ;;  %v5800_v10 = vpop.permute.xlu1 %5799 }
 0x5fa   : > { %v5808_v28 = vrot.slane %v5807_v56, 4  ;;  %5802 = vst.msk [vmem:[%s9038_s14 + $0x4] sm:$0xf] %vm5759_vm10, %v5800_v10 }
 0x5fc   : > { %v5810_v54 = vsel %vm5809_vm12, %v5807_v56, %v5808_v28 }
 0x5fd   : > { %5812 = vst.msk [vmem:[%s9038_s14 + $0x4] sm:$0xf] %vm5764_vm11, %v5810_v54 }
 0x601   : > { %v5771_v61 = vpop.permute.xlu1 %5770  ;;  %v5818_v37 = vpop.permute.xlu2 %5817 }
 0x602   : > { %v5772_v27 = vrot.slane %v5771_v61, 4 }
 0x604   : > { %v5774_v63 = vsel %vm5773_vm13, %v5771_v61, %v5772_v27 }
 0x605   : > { %5777 = vst.msk [vmem:[%s9038_s14] sm:$0xf] %vm5776_vm14, %v5774_v63 }
 0x609   : > { %v5779_v3 = vpop.permute.xlu1 %5778 }
 0x60a   : > { %5782 = vst.msk [vmem:[%s9038_s14] sm:$0xf] %vm5781_vm15, %v5779_v3 }
 0x60e   : > { %v5814_v8 = vpop.permute.xlu0 %5813 }
 0x60f   : > { %5816 = vst.msk [vmem:[%s9038_s14 + $0x4] sm:$0xf] %vm5776_vm14, %v5814_v8 }
 0x610   : > { %5820 = vst.msk [vmem:[%s9038_s14 + $0x4] sm:$0xf] %vm5781_vm15, %v5818_v37 }
 0x611 PF: > { %s21_s13 = sadd.s32 1, %s6019_s13  }
 0x612   : > { %p18_p7 = scmp.ge.s32.totalorder %s21_s13, 4  }
 0x614   :  { %20 = sbr.rel (!%p18_p7) target bundleno = 1 (0x1), region = 101 }
 0x619   :  { %5842 = vsyncpa [#allocation5], 1 }
 0x61a   :  { %5844 = vsyncpa [#allocation5 + $0x1], 1 }

</bundles_post_ra>
